<compile_context>
chip_gen: v6e
topology: v6e:2x2x1
jax: 0.10.0
libtpu: 0.0.40
codegen_flags: <defaults>
</compile_context>

<pallas_src>
import math

import numpy as np
import jax
import jax.numpy as jnp
from jax.experimental import pallas as pl
from jax.experimental.pallas import tpu as pltpu

EPS = 1e-5


# ------------------------------ fused kernel --------------------------------
def _transition_kernel(x_ref, scale_ref, shift_ref, w1_ref, pw_ref,
                       fc1_ref, fc2_ref, wsa_ref, coords_ref, o_ref):
    # Per grid step (batch dim squeezed via None block dims):
    #   x_ref:      (Cin, H*W)   channels on sublanes, pixels on lanes
    #   scale_ref:  (Cin, 1)     gamma / sqrt(batch_var + eps)
    #   shift_ref:  (Cin, 1)     beta  - batch_mean * scale
    #   w1_ref:     (Cout, Cin)  1x1 conv weight (torch-native orientation)
    #   pw_ref:     (W, W2)      W-direction 2x2-pool operator (0.25 taps)
    #   fc1_ref:    (hid, Cout)  CBAM channel-attention shared MLP (bias-free)
    #   fc2_ref:    (Cout, hid)
    #   wsa_ref:    (2, 49)      CBAM 7x7 spatial conv weights, rows = (avg, max)
    #   coords_ref: (2, P)       row 0 = pixel row index g, row 1 = pixel col index j (f32)
    #   o_ref:      (Cout, P)    P = (H/2)*(W/2)
    _, hw = x_ref.shape
    cout = w1_ref.shape[0]
    w, w2 = pw_ref.shape
    h2 = hw // (2 * w)
    p = h2 * w2

    # ---- BatchNorm (folded scale/shift) + ReLU.
    a = jnp.maximum(x_ref[...] * scale_ref[...] + shift_ref[...], 0.0)          # (Cin, HW)

    # ---- 2x2 average pool before the 1x1 conv (both linear, order commutes).
    #      H direction: shifted adds via static lane slices (VPU); W direction: one tiny
    #      (W, W2) matmul.  No O(HW*P) pool operator, no O(P*P) conv operators anywhere.
    pw = pw_ref[...]
    parts = []
    for g in range(h2):
        base = 2 * g * w
        hsum = a[:, base:base + w] + a[:, base + w:base + 2 * w]                # (Cin, W)
        parts.append(jnp.dot(hsum, pw, preferred_element_type=jnp.float32))     # (Cin, W2)
    pooled = jnp.concatenate(parts, axis=1)                                     # (Cin, P)

    # ---- 1x1 conv: single lane-dense MXU matmul, output columns = P.
    y = jnp.dot(w1_ref[...], pooled, preferred_element_type=jnp.float32)        # (Cout, P)

    # ---- CBAM channel attention: global avg+max pools -> shared MLP (avg/max branches
    #      fused into 2-column matmuls) -> sigmoid -> per-channel scale.
    s_avg = jnp.sum(y, axis=1, keepdims=True) * (1.0 / p)                       # (Cout, 1)
    s_max = jnp.max(y, axis=1, keepdims=True)                                   # (Cout, 1)
    stats = jnp.concatenate([s_avg, s_max], axis=1)                             # (Cout, 2)
    hmlp = jnp.maximum(
        jnp.dot(fc1_ref[...], stats, preferred_element_type=jnp.float32), 0.0)  # (hid, 2)
    lg = jnp.dot(fc2_ref[...], hmlp, preferred_element_type=jnp.float32)        # (Cout, 2)
    logits = lg[:, 0:1] + lg[:, 1:2]                                            # (Cout, 1)
    # exact reciprocal keeps 1e-3 parity; switch to approx=True (EUP) at production sizes.
    ca = pl.reciprocal(1.0 + jnp.exp(-logits), approx=False)                    # (Cout, 1)
    y = y * ca                                                                   # (Cout, P)

    # ---- CBAM spatial attention: channel mean/max maps -> 7x7 conv (padding=3) as 49
    #      masked roll-and-accumulate taps on the stacked (2, P) maps -> sigmoid -> scale.
    avg_map = jnp.sum(y, axis=0, keepdims=True) * (1.0 / cout)                  # (1, P)
    max_map = jnp.max(y, axis=0, keepdims=True)                                 # (1, P)
    maps = jnp.concatenate([avg_map, max_map], axis=0)                          # (2, P)
    wsa = wsa_ref[...]                                                          # (2, 49)
    gi = coords_ref[0:1, :]                                                     # (1, P)
    ji = coords_ref[1:2, :]                                                     # (1, P)
    acc = jnp.zeros((2, p), jnp.float32)
    for ka in range(7):
        dg = ka - 3
        for kb in range(7):
            dj = kb - 3
            shift = dg * w2 + dj
            tap = maps if shift == 0 else jnp.roll(maps, -shift, axis=1)        # (2, P)
            valid = ((gi + dg >= 0) & (gi + dg <= h2 - 1) &
                     (ji + dj >= 0) & (ji + dj <= w2 - 1))                      # (1, P)
            k = ka * 7 + kb
            acc = acc + jnp.where(valid, tap, 0.0) * wsa[:, k:k + 1]
    s_map = acc[0:1, :] + acc[1:2, :]                                           # (1, P)
    sa = pl.reciprocal(1.0 + jnp.exp(-s_map), approx=False)                     # (1, P)

    o_ref[...] = (y * sa).astype(o_ref.dtype)


# --------------------------- host-side constants ------------------------------
def _wpool_operator(w):
    """(W, W//2) matrix with 0.25 taps: applies the full 2x2-average weight along W."""
    w2 = w // 2
    m = np.zeros((w, w2), np.float32)
    for j in range(w2):
        m[2 * j, j] = 0.25
        m[2 * j + 1, j] = 0.25
    return jnp.asarray(m)


def _pixel_coords(h2, w2):
    """(2, P) f32: row 0 = output row index g, row 1 = output col index j (flat row-major)."""
    g = np.repeat(np.arange(h2, dtype=np.float32), w2)
    j = np.tile(np.arange(w2, dtype=np.float32), h2)
    return jnp.asarray(np.stack([g, j], axis=0))


# --------------------------------- wrapper -----------------------------------
def transition_forward(x_nchw, params):
    """NCHW in, NCHW out — same interface as the PyTorch module (training-mode BN)."""
    gamma, beta = params["gamma"], params["beta"]
    w1 = params["w1"]          # (Cout, Cin)   torch conv weight (Cout, Cin, 1, 1) squeezed
    fc1_w = params["fc1_w"]    # (hid, Cout)   torch fc1 weight, native orientation
    fc2_w = params["fc2_w"]    # (Cout, hid)   torch fc2 weight, native orientation
    w_sa = params["w_sa"]      # (2, 7, 7)     torch spatial conv weight (1, 2, 7, 7) squeezed

    n, cin, h, w = x_nchw.shape
    cout = w1.shape[0]
    assert h % 2 == 0 and w % 2 == 0, "avg_pool2d(2) requires even H and W"
    h2, w2 = h // 2, w // 2
    p = h2 * w2

    xf = x_nchw.astype(jnp.float32)
    # Training-mode BatchNorm statistics (biased variance), folded into scale/shift.
    # TODO(synk): fold this reduction into a small preliminary Pallas pass to cut one HBM
    #             pass over x (largest relative win on v5e).  Running stats are not updated.
    mean = jnp.mean(xf, axis=(0, 2, 3))
    var = jnp.mean((xf - mean[None, :, None, None]) ** 2, axis=(0, 2, 3))
    scale = gamma * jax.lax.rsqrt(var + EPS)
    shift = beta - mean * scale

    # Channels-first, pixels-on-lanes layout: free (contiguous) view of NCHW, no transpose.
    x_flat = xf.reshape(n, cin, h * w)

    # Host-side constants (constant-folded under jit).
    pw = _wpool_operator(w)                    # (W, W2)
    coords = _pixel_coords(h2, w2)             # (2, P)
    wsa2 = w_sa.reshape(2, 49).astype(jnp.float32)

    out_flat = pl.pallas_call(
        _transition_kernel,
        grid=(n,),
        in_specs=[
            pl.BlockSpec((None, cin, h * w), lambda i: (i, 0, 0)),
            pl.BlockSpec((cin, 1), lambda i: (0, 0)),
            pl.BlockSpec((cin, 1), lambda i: (0, 0)),
            pl.BlockSpec((cout, cin), lambda i: (0, 0)),
            pl.BlockSpec((w, w2), lambda i: (0, 0)),
            pl.BlockSpec((fc1_w.shape[0], cout), lambda i: (0, 0)),
            pl.BlockSpec((cout, fc2_w.shape[1]), lambda i: (0, 0)),
            pl.BlockSpec((2, 49), lambda i: (0, 0)),
            pl.BlockSpec((2, p), lambda i: (0, 0)),
        ],
        out_specs=pl.BlockSpec((None, cout, p), lambda i: (i, 0, 0)),
        out_shape=jax.ShapeDtypeStruct((n, cout, p), jnp.float32),
        compiler_params=pltpu.CompilerParams(dimension_semantics=("parallel",)),
    )(x_flat, scale.reshape(cin, 1), shift.reshape(cin, 1), w1.astype(jnp.float32),
      pw, fc1_w.astype(jnp.float32), fc2_w.astype(jnp.float32), wsa2, coords)

    # Free reshape back to NCHW (channels-first layout needs no output transpose).
    return out_flat.reshape(n, cout, h2, w2)


# --------------------------- pure-JAX reference ------------------------------
def transition_reference(x_nchw, params):
    gamma, beta = params["gamma"], params["beta"]
    w1, fc1_w, fc2_w, w_sa = params["w1"], params["fc1_w"], params["fc2_w"], params["w_sa"]
    x = x_nchw.astype(jnp.float32)
    m = jnp.mean(x, axis=(0, 2, 3))
    v = jnp.mean((x - m[None, :, None, None]) ** 2, axis=(0, 2, 3))
    xn = (x - m[None, :, None, None]) * jax.lax.rsqrt(v + EPS)[None, :, None, None]
    xn = xn * gamma[None, :, None, None] + beta[None, :, None, None]
    a = jnp.maximum(xn, 0.0)
    y = jnp.einsum("nchw,oc->nohw", a, w1)
    n, c, h, w = y.shape
    y = y.reshape(n, c, h // 2, 2, w // 2, 2).mean(axis=(3, 5))
    # channel attention
    avgp = y.mean(axis=(2, 3))
    maxp = y.max(axis=(2, 3))
    oa = jnp.maximum(avgp @ fc1_w.T, 0.0) @ fc2_w.T
    om = jnp.maximum(maxp @ fc1_w.T, 0.0) @ fc2_w.T
    ca = jax.nn.sigmoid(oa + om)
    y = y * ca[:, :, None, None]
    # spatial attention
    avg_c = y.mean(axis=1, keepdims=True)
    max_c = y.max(axis=1, keepdims=True)
    cat = jnp.concatenate([avg_c, max_c], axis=1)
    s = jax.lax.conv_general_dilated(
        cat, w_sa.reshape(1, 2, 7, 7), window_strides=(1, 1),
        padding=[(3, 3), (3, 3)], dimension_numbers=("NCHW", "OIHW", "NCHW"))
    return y * jax.nn.sigmoid(s)


# ----------------------------------- main ------------------------------------
if __name__ == "__main__":
    in_planes, out_planes = 4, 8
    N, H, W = 2, 16, 16

    key = jax.random.PRNGKey(0)
    ks = jax.random.split(key, 7)
    params = {
        # BN affine (deterministic, non-trivial)
        "gamma": jax.random.uniform(ks[0], (in_planes,), minval=0.5, maxval=1.5,
                                    dtype=jnp.float32),
        "beta": 0.1 * jax.random.normal(ks[1], (in_planes,), dtype=jnp.float32),
        # conv1x1: torch (Cout, Cin, 1, 1) squeezed -> (Cout, Cin)
        "w1": (jax.random.normal(ks[2], (out_planes, in_planes), dtype=jnp.float32)
               / math.sqrt(in_planes)),
        # CBAM channel-attention shared MLP (bias-free), ratio = 2, torch-native layouts
        "fc1_w": (jax.random.normal(ks[3], (out_planes // 2, out_planes), dtype=jnp.float32)
                  / math.sqrt(out_planes)),
        "fc2_w": (jax.random.normal(ks[4], (out_planes, out_planes // 2), dtype=jnp.float32)
                  / math.sqrt(out_planes // 2)),
        # CBAM spatial-attention 7x7 conv: torch (1, 2, 7, 7) squeezed -> (2, 7, 7)
        "w_sa": (jax.random.normal(ks[5], (2, 7, 7), dtype=jnp.float32)
                 / math.sqrt(2 * 49)),
    }

    x = jax.random.normal(ks[6], (N, in_planes, H, W), dtype=jnp.float32)

    fwd = jax.jit(transition_forward)
    out = jax.block_until_ready(fwd(x, params))
    ref = jax.block_until_ready(transition_reference(x, params))

    assert out.shape == (N, out_planes, H // 2, W // 2), out.shape
    assert jnp.allclose(out, ref, atol=1e-3, rtol=1e-3), float(jnp.max(jnp.abs(out - ref)))

    print("KERNEL_OK")
</pallas_src>

<mosaic_0001>
module attributes {stable_mosaic.version = 11 : i64} {
  func.func @_transition_kernel(%arg0: i32, %arg1: memref<1x4x256xf32, #tpu.memory_space<vmem>>, %arg2: memref<4x1xf32, #tpu.memory_space<vmem>>, %arg3: memref<4x1xf32, #tpu.memory_space<vmem>>, %arg4: memref<8x4xf32, #tpu.memory_space<vmem>>, %arg5: memref<16x8xf32, #tpu.memory_space<vmem>>, %arg6: memref<4x8xf32, #tpu.memory_space<vmem>>, %arg7: memref<8x4xf32, #tpu.memory_space<vmem>>, %arg8: memref<2x49xf32, #tpu.memory_space<vmem>>, %arg9: memref<2x64xf32, #tpu.memory_space<vmem>>, %arg10: memref<1x8x64xf32, #tpu.memory_space<vmem>>) attributes {dimension_semantics = [#tpu.dimension_semantics<parallel>], iteration_bounds = array<i64: 2>, scalar_prefetch = 0 : i64, scratch_operands = 0 : i64, tpu.core_type = #tpu.core_type<tc>, window_params = [{transform_indices = @transform_0, window_bounds = array<i64: 1, 4, 256>}, {pipeline_mode = #tpu.pipeline_mode<synchronous>, transform_indices = @transform_1, window_bounds = array<i64: 4, 1>}, {pipeline_mode = #tpu.pipeline_mode<synchronous>, transform_indices = @transform_2, window_bounds = array<i64: 4, 1>}, {pipeline_mode = #tpu.pipeline_mode<synchronous>, transform_indices = @transform_3, window_bounds = array<i64: 8, 4>}, {pipeline_mode = #tpu.pipeline_mode<synchronous>, transform_indices = @transform_4, window_bounds = array<i64: 16, 8>}, {pipeline_mode = #tpu.pipeline_mode<synchronous>, transform_indices = @transform_5, window_bounds = array<i64: 4, 8>}, {pipeline_mode = #tpu.pipeline_mode<synchronous>, transform_indices = @transform_6, window_bounds = array<i64: 8, 4>}, {pipeline_mode = #tpu.pipeline_mode<synchronous>, transform_indices = @transform_7, window_bounds = array<i64: 2, 49>}, {pipeline_mode = #tpu.pipeline_mode<synchronous>, transform_indices = @transform_8, window_bounds = array<i64: 2, 64>}, {transform_indices = @transform_9, window_bounds = array<i64: 1, 8, 64>}]} {
    %c0 = arith.constant 0 : index
    %c0_0 = arith.constant 0 : index
    %c0_1 = arith.constant 0 : index
    %0 = vector.load %arg1[%c0, %c0_0, %c0_1] : memref<1x4x256xf32, #tpu.memory_space<vmem>>, vector<1x4x256xf32>
    %1 = vector.shape_cast %0 : vector<1x4x256xf32> to vector<4x256xf32>
    %c0_2 = arith.constant 0 : index
    %c0_3 = arith.constant 0 : index
    %2 = vector.load %arg2[%c0_2, %c0_3] : memref<4x1xf32, #tpu.memory_space<vmem>>, vector<4x1xf32>
    %3 = vector.broadcast %2 : vector<4x1xf32> to vector<4x256xf32>
    %4 = arith.mulf %1, %3 : vector<4x256xf32>
    %c0_4 = arith.constant 0 : index
    %c0_5 = arith.constant 0 : index
    %5 = vector.load %arg3[%c0_4, %c0_5] : memref<4x1xf32, #tpu.memory_space<vmem>>, vector<4x1xf32>
    %6 = vector.broadcast %5 : vector<4x1xf32> to vector<4x256xf32>
    %7 = arith.addf %4, %6 : vector<4x256xf32>
    %cst = arith.constant 0.000000e+00 : f32
    %8 = vector.broadcast %cst : f32 to vector<4x256xf32>
    %9 = arith.maximumf %7, %8 : vector<4x256xf32>
    %c0_6 = arith.constant 0 : index
    %c0_7 = arith.constant 0 : index
    %10 = vector.load %arg5[%c0_6, %c0_7] : memref<16x8xf32, #tpu.memory_space<vmem>>, vector<16x8xf32>
    %11 = vector.extract_strided_slice %9 {offsets = [0, 0], sizes = [4, 16], strides = [1, 1]} : vector<4x256xf32> to vector<4x16xf32>
    %12 = vector.extract_strided_slice %9 {offsets = [0, 16], sizes = [4, 16], strides = [1, 1]} : vector<4x256xf32> to vector<4x16xf32>
    %13 = arith.addf %11, %12 : vector<4x16xf32>
    %cst_8 = arith.constant dense<0.000000e+00> : vector<4x8xf32>
    %14 = tpu.matmul %13, %10, %cst_8 {dimension_numbers = #tpu.dot_dimension_numbers<[1], [0], [0], [1], [0, 0, 1, 1], [], []>} : vector<4x16xf32>, vector<16x8xf32>, vector<4x8xf32> -> vector<4x8xf32>
    %15 = vector.extract_strided_slice %9 {offsets = [0, 32], sizes = [4, 16], strides = [1, 1]} : vector<4x256xf32> to vector<4x16xf32>
    %16 = vector.extract_strided_slice %9 {offsets = [0, 48], sizes = [4, 16], strides = [1, 1]} : vector<4x256xf32> to vector<4x16xf32>
    %17 = arith.addf %15, %16 : vector<4x16xf32>
    %cst_9 = arith.constant dense<0.000000e+00> : vector<4x8xf32>
    %18 = tpu.matmul %17, %10, %cst_9 {dimension_numbers = #tpu.dot_dimension_numbers<[1], [0], [0], [1], [0, 0, 1, 1], [], []>} : vector<4x16xf32>, vector<16x8xf32>, vector<4x8xf32> -> vector<4x8xf32>
    %19 = vector.extract_strided_slice %9 {offsets = [0, 64], sizes = [4, 16], strides = [1, 1]} : vector<4x256xf32> to vector<4x16xf32>
    %20 = vector.extract_strided_slice %9 {offsets = [0, 80], sizes = [4, 16], strides = [1, 1]} : vector<4x256xf32> to vector<4x16xf32>
    %21 = arith.addf %19, %20 : vector<4x16xf32>
    %cst_10 = arith.constant dense<0.000000e+00> : vector<4x8xf32>
    %22 = tpu.matmul %21, %10, %cst_10 {dimension_numbers = #tpu.dot_dimension_numbers<[1], [0], [0], [1], [0, 0, 1, 1], [], []>} : vector<4x16xf32>, vector<16x8xf32>, vector<4x8xf32> -> vector<4x8xf32>
    %23 = vector.extract_strided_slice %9 {offsets = [0, 96], sizes = [4, 16], strides = [1, 1]} : vector<4x256xf32> to vector<4x16xf32>
    %24 = vector.extract_strided_slice %9 {offsets = [0, 112], sizes = [4, 16], strides = [1, 1]} : vector<4x256xf32> to vector<4x16xf32>
    %25 = arith.addf %23, %24 : vector<4x16xf32>
    %cst_11 = arith.constant dense<0.000000e+00> : vector<4x8xf32>
    %26 = tpu.matmul %25, %10, %cst_11 {dimension_numbers = #tpu.dot_dimension_numbers<[1], [0], [0], [1], [0, 0, 1, 1], [], []>} : vector<4x16xf32>, vector<16x8xf32>, vector<4x8xf32> -> vector<4x8xf32>
    %27 = vector.extract_strided_slice %9 {offsets = [0, 128], sizes = [4, 16], strides = [1, 1]} : vector<4x256xf32> to vector<4x16xf32>
    %28 = vector.extract_strided_slice %9 {offsets = [0, 144], sizes = [4, 16], strides = [1, 1]} : vector<4x256xf32> to vector<4x16xf32>
    %29 = arith.addf %27, %28 : vector<4x16xf32>
    %cst_12 = arith.constant dense<0.000000e+00> : vector<4x8xf32>
    %30 = tpu.matmul %29, %10, %cst_12 {dimension_numbers = #tpu.dot_dimension_numbers<[1], [0], [0], [1], [0, 0, 1, 1], [], []>} : vector<4x16xf32>, vector<16x8xf32>, vector<4x8xf32> -> vector<4x8xf32>
    %31 = vector.extract_strided_slice %9 {offsets = [0, 160], sizes = [4, 16], strides = [1, 1]} : vector<4x256xf32> to vector<4x16xf32>
    %32 = vector.extract_strided_slice %9 {offsets = [0, 176], sizes = [4, 16], strides = [1, 1]} : vector<4x256xf32> to vector<4x16xf32>
    %33 = arith.addf %31, %32 : vector<4x16xf32>
    %cst_13 = arith.constant dense<0.000000e+00> : vector<4x8xf32>
    %34 = tpu.matmul %33, %10, %cst_13 {dimension_numbers = #tpu.dot_dimension_numbers<[1], [0], [0], [1], [0, 0, 1, 1], [], []>} : vector<4x16xf32>, vector<16x8xf32>, vector<4x8xf32> -> vector<4x8xf32>
    %35 = vector.extract_strided_slice %9 {offsets = [0, 192], sizes = [4, 16], strides = [1, 1]} : vector<4x256xf32> to vector<4x16xf32>
    %36 = vector.extract_strided_slice %9 {offsets = [0, 208], sizes = [4, 16], strides = [1, 1]} : vector<4x256xf32> to vector<4x16xf32>
    %37 = arith.addf %35, %36 : vector<4x16xf32>
    %cst_14 = arith.constant dense<0.000000e+00> : vector<4x8xf32>
    %38 = tpu.matmul %37, %10, %cst_14 {dimension_numbers = #tpu.dot_dimension_numbers<[1], [0], [0], [1], [0, 0, 1, 1], [], []>} : vector<4x16xf32>, vector<16x8xf32>, vector<4x8xf32> -> vector<4x8xf32>
    %39 = vector.extract_strided_slice %9 {offsets = [0, 224], sizes = [4, 16], strides = [1, 1]} : vector<4x256xf32> to vector<4x16xf32>
    %40 = vector.extract_strided_slice %9 {offsets = [0, 240], sizes = [4, 16], strides = [1, 1]} : vector<4x256xf32> to vector<4x16xf32>
    %41 = arith.addf %39, %40 : vector<4x16xf32>
    %cst_15 = arith.constant dense<0.000000e+00> : vector<4x8xf32>
    %42 = tpu.matmul %41, %10, %cst_15 {dimension_numbers = #tpu.dot_dimension_numbers<[1], [0], [0], [1], [0, 0, 1, 1], [], []>} : vector<4x16xf32>, vector<16x8xf32>, vector<4x8xf32> -> vector<4x8xf32>
    %43 = tpu.concatenate %14, %18, %22, %26, %30, %34, %38, %42 in 1 : vector<4x8xf32>, vector<4x8xf32>, vector<4x8xf32>, vector<4x8xf32>, vector<4x8xf32>, vector<4x8xf32>, vector<4x8xf32>, vector<4x8xf32> -> vector<4x64xf32>
    %c0_16 = arith.constant 0 : index
    %c0_17 = arith.constant 0 : index
    %44 = vector.load %arg4[%c0_16, %c0_17] : memref<8x4xf32, #tpu.memory_space<vmem>>, vector<8x4xf32>
    %cst_18 = arith.constant dense<0.000000e+00> : vector<8x64xf32>
    %45 = tpu.matmul %44, %43, %cst_18 {dimension_numbers = #tpu.dot_dimension_numbers<[1], [0], [0], [1], [0, 0, 1, 1], [], []>} : vector<8x4xf32>, vector<4x64xf32>, vector<8x64xf32> -> vector<8x64xf32>
    %cst_19 = arith.constant dense<0.000000e+00> : vector<8xf32>
    %46 = vector.multi_reduction <add>, %45, %cst_19 [1] : vector<8x64xf32> to vector<8xf32>
    %47 = vector.shape_cast %46 : vector<8xf32> to vector<8x1xf32>
    %cst_20 = arith.constant 1.562500e-02 : f32
    %48 = vector.broadcast %cst_20 : f32 to vector<8x1xf32>
    %49 = arith.mulf %47, %48 : vector<8x1xf32>
    %cst_21 = arith.constant dense<0xFF800000> : vector<8xf32>
    %50 = vector.multi_reduction <maximumf>, %45, %cst_21 [1] : vector<8x64xf32> to vector<8xf32>
    %51 = vector.shape_cast %50 : vector<8xf32> to vector<8x1xf32>
    %52 = tpu.concatenate %49, %51 in 1 : vector<8x1xf32>, vector<8x1xf32> -> vector<8x2xf32>
    %c0_22 = arith.constant 0 : index
    %c0_23 = arith.constant 0 : index
    %53 = vector.load %arg6[%c0_22, %c0_23] : memref<4x8xf32, #tpu.memory_space<vmem>>, vector<4x8xf32>
    %cst_24 = arith.constant dense<0.000000e+00> : vector<4x2xf32>
    %54 = tpu.matmul %53, %52, %cst_24 {dimension_numbers = #tpu.dot_dimension_numbers<[1], [0], [0], [1], [0, 0, 1, 1], [], []>} : vector<4x8xf32>, vector<8x2xf32>, vector<4x2xf32> -> vector<4x2xf32>
    %cst_25 = arith.constant 0.000000e+00 : f32
    %55 = vector.broadcast %cst_25 : f32 to vector<4x2xf32>
    %56 = arith.maximumf %54, %55 : vector<4x2xf32>
    %c0_26 = arith.constant 0 : index
    %c0_27 = arith.constant 0 : index
    %57 = vector.load %arg7[%c0_26, %c0_27] : memref<8x4xf32, #tpu.memory_space<vmem>>, vector<8x4xf32>
    %cst_28 = arith.constant dense<0.000000e+00> : vector<8x2xf32>
    %58 = tpu.matmul %57, %56, %cst_28 {dimension_numbers = #tpu.dot_dimension_numbers<[1], [0], [0], [1], [0, 0, 1, 1], [], []>} : vector<8x4xf32>, vector<4x2xf32>, vector<8x2xf32> -> vector<8x2xf32>
    %59 = vector.extract_strided_slice %58 {offsets = [0, 0], sizes = [8, 1], strides = [1, 1]} : vector<8x2xf32> to vector<8x1xf32>
    %60 = vector.extract_strided_slice %58 {offsets = [0, 1], sizes = [8, 1], strides = [1, 1]} : vector<8x2xf32> to vector<8x1xf32>
    %61 = arith.addf %59, %60 : vector<8x1xf32>
    %cst_29 = arith.constant 0.000000e+00 : f32
    %62 = vector.broadcast %cst_29 : f32 to vector<8x1xf32>
    %63 = arith.subf %62, %61 : vector<8x1xf32>
    %64 = math.exp %63 : vector<8x1xf32>
    %cst_30 = arith.constant 1.000000e+00 : f32
    %65 = vector.broadcast %cst_30 : f32 to vector<8x1xf32>
    %66 = arith.addf %65, %64 : vector<8x1xf32>
    %67 = tpu.reciprocal %66 : vector<8x1xf32> -> vector<8x1xf32>
    %68 = vector.broadcast %67 : vector<8x1xf32> to vector<8x64xf32>
    %69 = arith.mulf %45, %68 : vector<8x64xf32>
    %cst_31 = arith.constant dense<0.000000e+00> : vector<64xf32>
    %70 = vector.multi_reduction <add>, %69, %cst_31 [0] : vector<8x64xf32> to vector<64xf32>
    %71 = vector.shape_cast %70 : vector<64xf32> to vector<1x64xf32>
    %cst_32 = arith.constant 1.250000e-01 : f32
    %72 = vector.broadcast %cst_32 : f32 to vector<1x64xf32>
    %73 = arith.mulf %71, %72 : vector<1x64xf32>
    %cst_33 = arith.constant dense<0xFF800000> : vector<64xf32>
    %74 = vector.multi_reduction <maximumf>, %69, %cst_33 [0] : vector<8x64xf32> to vector<64xf32>
    %75 = vector.shape_cast %74 : vector<64xf32> to vector<1x64xf32>
    %76 = tpu.concatenate %73, %75 in 0 : vector<1x64xf32>, vector<1x64xf32> -> vector<2x64xf32>
    %c0_34 = arith.constant 0 : index
    %c0_35 = arith.constant 0 : index
    %77 = vector.load %arg8[%c0_34, %c0_35] : memref<2x49xf32, #tpu.memory_space<vmem>>, vector<2x49xf32>
    %c0_36 = arith.constant 0 : index
    %c0_37 = arith.constant 0 : index
    %78 = vector.load %arg9[%c0_36, %c0_37] : memref<2x64xf32, #tpu.memory_space<vmem>>, vector<1x64xf32>
    %c1 = arith.constant 1 : index
    %c0_38 = arith.constant 0 : index
    %79 = vector.load %arg9[%c1, %c0_38] : memref<2x64xf32, #tpu.memory_space<vmem>>, vector<1x64xf32>
    %cst_39 = arith.constant 0.000000e+00 : f32
    %80 = vector.broadcast %cst_39 : f32 to vector<2x64xf32>
    %81 = vector.extract_strided_slice %76 {offsets = [0, 37], sizes = [2, 27], strides = [1, 1]} : vector<2x64xf32> to vector<2x27xf32>
    %82 = vector.extract_strided_slice %76 {offsets = [0, 0], sizes = [2, 37], strides = [1, 1]} : vector<2x64xf32> to vector<2x37xf32>
    %83 = tpu.concatenate %81, %82 in 1 : vector<2x27xf32>, vector<2x37xf32> -> vector<2x64xf32>
    %cst_40 = arith.constant -3.000000e+00 : f32
    %84 = vector.broadcast %cst_40 : f32 to vector<1x64xf32>
    %85 = arith.addf %78, %84 : vector<1x64xf32>
    %cst_41 = arith.constant 0.000000e+00 : f32
    %86 = vector.broadcast %cst_41 : f32 to vector<1x64xf32>
    %87 = arith.cmpf oge, %85, %86 : vector<1x64xf32>
    %cst_42 = arith.constant -3.000000e+00 : f32
    %88 = vector.broadcast %cst_42 : f32 to vector<1x64xf32>
    %89 = arith.addf %78, %88 : vector<1x64xf32>
    %cst_43 = arith.constant 7.000000e+00 : f32
    %90 = vector.broadcast %cst_43 : f32 to vector<1x64xf32>
    %91 = arith.cmpf ole, %89, %90 : vector<1x64xf32>
    %92 = arith.andi %87, %91 : vector<1x64xi1>
    %cst_44 = arith.constant -3.000000e+00 : f32
    %93 = vector.broadcast %cst_44 : f32 to vector<1x64xf32>
    %94 = arith.addf %79, %93 : vector<1x64xf32>
    %cst_45 = arith.constant 0.000000e+00 : f32
    %95 = vector.broadcast %cst_45 : f32 to vector<1x64xf32>
    %96 = arith.cmpf oge, %94, %95 : vector<1x64xf32>
    %97 = arith.andi %92, %96 : vector<1x64xi1>
    %cst_46 = arith.constant -3.000000e+00 : f32
    %98 = vector.broadcast %cst_46 : f32 to vector<1x64xf32>
    %99 = arith.addf %79, %98 : vector<1x64xf32>
    %cst_47 = arith.constant 7.000000e+00 : f32
    %100 = vector.broadcast %cst_47 : f32 to vector<1x64xf32>
    %101 = arith.cmpf ole, %99, %100 : vector<1x64xf32>
    %102 = arith.andi %97, %101 : vector<1x64xi1>
    %cst_48 = arith.constant 0.000000e+00 : f32
    %103 = vector.shape_cast %102 : vector<1x64xi1> to vector<1x64xi1>
    %104 = vector.broadcast %103 : vector<1x64xi1> to vector<2x64xi1>
    %105 = vector.broadcast %cst_48 : f32 to vector<2x64xf32>
    %106 = arith.select %104, %83, %105 : vector<2x64xi1>, vector<2x64xf32>
    %107 = vector.extract_strided_slice %77 {offsets = [0, 0], sizes = [2, 1], strides = [1, 1]} : vector<2x49xf32> to vector<2x1xf32>
    %108 = vector.broadcast %107 : vector<2x1xf32> to vector<2x64xf32>
    %109 = arith.mulf %106, %108 : vector<2x64xf32>
    %110 = arith.addf %80, %109 : vector<2x64xf32>
    %111 = vector.extract_strided_slice %76 {offsets = [0, 38], sizes = [2, 26], strides = [1, 1]} : vector<2x64xf32> to vector<2x26xf32>
    %112 = vector.extract_strided_slice %76 {offsets = [0, 0], sizes = [2, 38], strides = [1, 1]} : vector<2x64xf32> to vector<2x38xf32>
    %113 = tpu.concatenate %111, %112 in 1 : vector<2x26xf32>, vector<2x38xf32> -> vector<2x64xf32>
    %cst_49 = arith.constant -3.000000e+00 : f32
    %114 = vector.broadcast %cst_49 : f32 to vector<1x64xf32>
    %115 = arith.addf %78, %114 : vector<1x64xf32>
    %cst_50 = arith.constant 0.000000e+00 : f32
    %116 = vector.broadcast %cst_50 : f32 to vector<1x64xf32>
    %117 = arith.cmpf oge, %115, %116 : vector<1x64xf32>
    %cst_51 = arith.constant -3.000000e+00 : f32
    %118 = vector.broadcast %cst_51 : f32 to vector<1x64xf32>
    %119 = arith.addf %78, %118 : vector<1x64xf32>
    %cst_52 = arith.constant 7.000000e+00 : f32
    %120 = vector.broadcast %cst_52 : f32 to vector<1x64xf32>
    %121 = arith.cmpf ole, %119, %120 : vector<1x64xf32>
    %122 = arith.andi %117, %121 : vector<1x64xi1>
    %cst_53 = arith.constant -2.000000e+00 : f32
    %123 = vector.broadcast %cst_53 : f32 to vector<1x64xf32>
    %124 = arith.addf %79, %123 : vector<1x64xf32>
    %cst_54 = arith.constant 0.000000e+00 : f32
    %125 = vector.broadcast %cst_54 : f32 to vector<1x64xf32>
    %126 = arith.cmpf oge, %124, %125 : vector<1x64xf32>
    %127 = arith.andi %122, %126 : vector<1x64xi1>
    %cst_55 = arith.constant -2.000000e+00 : f32
    %128 = vector.broadcast %cst_55 : f32 to vector<1x64xf32>
    %129 = arith.addf %79, %128 : vector<1x64xf32>
    %cst_56 = arith.constant 7.000000e+00 : f32
    %130 = vector.broadcast %cst_56 : f32 to vector<1x64xf32>
    %131 = arith.cmpf ole, %129, %130 : vector<1x64xf32>
    %132 = arith.andi %127, %131 : vector<1x64xi1>
    %cst_57 = arith.constant 0.000000e+00 : f32
    %133 = vector.shape_cast %132 : vector<1x64xi1> to vector<1x64xi1>
    %134 = vector.broadcast %133 : vector<1x64xi1> to vector<2x64xi1>
    %135 = vector.broadcast %cst_57 : f32 to vector<2x64xf32>
    %136 = arith.select %134, %113, %135 : vector<2x64xi1>, vector<2x64xf32>
    %137 = vector.extract_strided_slice %77 {offsets = [0, 1], sizes = [2, 1], strides = [1, 1]} : vector<2x49xf32> to vector<2x1xf32>
    %138 = vector.broadcast %137 : vector<2x1xf32> to vector<2x64xf32>
    %139 = arith.mulf %136, %138 : vector<2x64xf32>
    %140 = arith.addf %110, %139 : vector<2x64xf32>
    %141 = vector.extract_strided_slice %76 {offsets = [0, 39], sizes = [2, 25], strides = [1, 1]} : vector<2x64xf32> to vector<2x25xf32>
    %142 = vector.extract_strided_slice %76 {offsets = [0, 0], sizes = [2, 39], strides = [1, 1]} : vector<2x64xf32> to vector<2x39xf32>
    %143 = tpu.concatenate %141, %142 in 1 : vector<2x25xf32>, vector<2x39xf32> -> vector<2x64xf32>
    %cst_58 = arith.constant -3.000000e+00 : f32
    %144 = vector.broadcast %cst_58 : f32 to vector<1x64xf32>
    %145 = arith.addf %78, %144 : vector<1x64xf32>
    %cst_59 = arith.constant 0.000000e+00 : f32
    %146 = vector.broadcast %cst_59 : f32 to vector<1x64xf32>
    %147 = arith.cmpf oge, %145, %146 : vector<1x64xf32>
    %cst_60 = arith.constant -3.000000e+00 : f32
    %148 = vector.broadcast %cst_60 : f32 to vector<1x64xf32>
    %149 = arith.addf %78, %148 : vector<1x64xf32>
    %cst_61 = arith.constant 7.000000e+00 : f32
    %150 = vector.broadcast %cst_61 : f32 to vector<1x64xf32>
    %151 = arith.cmpf ole, %149, %150 : vector<1x64xf32>
    %152 = arith.andi %147, %151 : vector<1x64xi1>
    %cst_62 = arith.constant -1.000000e+00 : f32
    %153 = vector.broadcast %cst_62 : f32 to vector<1x64xf32>
    %154 = arith.addf %79, %153 : vector<1x64xf32>
    %cst_63 = arith.constant 0.000000e+00 : f32
    %155 = vector.broadcast %cst_63 : f32 to vector<1x64xf32>
    %156 = arith.cmpf oge, %154, %155 : vector<1x64xf32>
    %157 = arith.andi %152, %156 : vector<1x64xi1>
    %cst_64 = arith.constant -1.000000e+00 : f32
    %158 = vector.broadcast %cst_64 : f32 to vector<1x64xf32>
    %159 = arith.addf %79, %158 : vector<1x64xf32>
    %cst_65 = arith.constant 7.000000e+00 : f32
    %160 = vector.broadcast %cst_65 : f32 to vector<1x64xf32>
    %161 = arith.cmpf ole, %159, %160 : vector<1x64xf32>
    %162 = arith.andi %157, %161 : vector<1x64xi1>
    %cst_66 = arith.constant 0.000000e+00 : f32
    %163 = vector.shape_cast %162 : vector<1x64xi1> to vector<1x64xi1>
    %164 = vector.broadcast %163 : vector<1x64xi1> to vector<2x64xi1>
    %165 = vector.broadcast %cst_66 : f32 to vector<2x64xf32>
    %166 = arith.select %164, %143, %165 : vector<2x64xi1>, vector<2x64xf32>
    %167 = vector.extract_strided_slice %77 {offsets = [0, 2], sizes = [2, 1], strides = [1, 1]} : vector<2x49xf32> to vector<2x1xf32>
    %168 = vector.broadcast %167 : vector<2x1xf32> to vector<2x64xf32>
    %169 = arith.mulf %166, %168 : vector<2x64xf32>
    %170 = arith.addf %140, %169 : vector<2x64xf32>
    %171 = vector.extract_strided_slice %76 {offsets = [0, 40], sizes = [2, 24], strides = [1, 1]} : vector<2x64xf32> to vector<2x24xf32>
    %172 = vector.extract_strided_slice %76 {offsets = [0, 0], sizes = [2, 40], strides = [1, 1]} : vector<2x64xf32> to vector<2x40xf32>
    %173 = tpu.concatenate %171, %172 in 1 : vector<2x24xf32>, vector<2x40xf32> -> vector<2x64xf32>
    %cst_67 = arith.constant -3.000000e+00 : f32
    %174 = vector.broadcast %cst_67 : f32 to vector<1x64xf32>
    %175 = arith.addf %78, %174 : vector<1x64xf32>
    %cst_68 = arith.constant 0.000000e+00 : f32
    %176 = vector.broadcast %cst_68 : f32 to vector<1x64xf32>
    %177 = arith.cmpf oge, %175, %176 : vector<1x64xf32>
    %cst_69 = arith.constant -3.000000e+00 : f32
    %178 = vector.broadcast %cst_69 : f32 to vector<1x64xf32>
    %179 = arith.addf %78, %178 : vector<1x64xf32>
    %cst_70 = arith.constant 7.000000e+00 : f32
    %180 = vector.broadcast %cst_70 : f32 to vector<1x64xf32>
    %181 = arith.cmpf ole, %179, %180 : vector<1x64xf32>
    %182 = arith.andi %177, %181 : vector<1x64xi1>
    %cst_71 = arith.constant 0.000000e+00 : f32
    %183 = vector.broadcast %cst_71 : f32 to vector<1x64xf32>
    %184 = arith.addf %79, %183 : vector<1x64xf32>
    %cst_72 = arith.constant 0.000000e+00 : f32
    %185 = vector.broadcast %cst_72 : f32 to vector<1x64xf32>
    %186 = arith.cmpf oge, %184, %185 : vector<1x64xf32>
    %187 = arith.andi %182, %186 : vector<1x64xi1>
    %cst_73 = arith.constant 0.000000e+00 : f32
    %188 = vector.broadcast %cst_73 : f32 to vector<1x64xf32>
    %189 = arith.addf %79, %188 : vector<1x64xf32>
    %cst_74 = arith.constant 7.000000e+00 : f32
    %190 = vector.broadcast %cst_74 : f32 to vector<1x64xf32>
    %191 = arith.cmpf ole, %189, %190 : vector<1x64xf32>
    %192 = arith.andi %187, %191 : vector<1x64xi1>
    %cst_75 = arith.constant 0.000000e+00 : f32
    %193 = vector.shape_cast %192 : vector<1x64xi1> to vector<1x64xi1>
    %194 = vector.broadcast %193 : vector<1x64xi1> to vector<2x64xi1>
    %195 = vector.broadcast %cst_75 : f32 to vector<2x64xf32>
    %196 = arith.select %194, %173, %195 : vector<2x64xi1>, vector<2x64xf32>
    %197 = vector.extract_strided_slice %77 {offsets = [0, 3], sizes = [2, 1], strides = [1, 1]} : vector<2x49xf32> to vector<2x1xf32>
    %198 = vector.broadcast %197 : vector<2x1xf32> to vector<2x64xf32>
    %199 = arith.mulf %196, %198 : vector<2x64xf32>
    %200 = arith.addf %170, %199 : vector<2x64xf32>
    %201 = vector.extract_strided_slice %76 {offsets = [0, 41], sizes = [2, 23], strides = [1, 1]} : vector<2x64xf32> to vector<2x23xf32>
    %202 = vector.extract_strided_slice %76 {offsets = [0, 0], sizes = [2, 41], strides = [1, 1]} : vector<2x64xf32> to vector<2x41xf32>
    %203 = tpu.concatenate %201, %202 in 1 : vector<2x23xf32>, vector<2x41xf32> -> vector<2x64xf32>
    %cst_76 = arith.constant -3.000000e+00 : f32
    %204 = vector.broadcast %cst_76 : f32 to vector<1x64xf32>
    %205 = arith.addf %78, %204 : vector<1x64xf32>
    %cst_77 = arith.constant 0.000000e+00 : f32
    %206 = vector.broadcast %cst_77 : f32 to vector<1x64xf32>
    %207 = arith.cmpf oge, %205, %206 : vector<1x64xf32>
    %cst_78 = arith.constant -3.000000e+00 : f32
    %208 = vector.broadcast %cst_78 : f32 to vector<1x64xf32>
    %209 = arith.addf %78, %208 : vector<1x64xf32>
    %cst_79 = arith.constant 7.000000e+00 : f32
    %210 = vector.broadcast %cst_79 : f32 to vector<1x64xf32>
    %211 = arith.cmpf ole, %209, %210 : vector<1x64xf32>
    %212 = arith.andi %207, %211 : vector<1x64xi1>
    %cst_80 = arith.constant 1.000000e+00 : f32
    %213 = vector.broadcast %cst_80 : f32 to vector<1x64xf32>
    %214 = arith.addf %79, %213 : vector<1x64xf32>
    %cst_81 = arith.constant 0.000000e+00 : f32
    %215 = vector.broadcast %cst_81 : f32 to vector<1x64xf32>
    %216 = arith.cmpf oge, %214, %215 : vector<1x64xf32>
    %217 = arith.andi %212, %216 : vector<1x64xi1>
    %cst_82 = arith.constant 1.000000e+00 : f32
    %218 = vector.broadcast %cst_82 : f32 to vector<1x64xf32>
    %219 = arith.addf %79, %218 : vector<1x64xf32>
    %cst_83 = arith.constant 7.000000e+00 : f32
    %220 = vector.broadcast %cst_83 : f32 to vector<1x64xf32>
    %221 = arith.cmpf ole, %219, %220 : vector<1x64xf32>
    %222 = arith.andi %217, %221 : vector<1x64xi1>
    %cst_84 = arith.constant 0.000000e+00 : f32
    %223 = vector.shape_cast %222 : vector<1x64xi1> to vector<1x64xi1>
    %224 = vector.broadcast %223 : vector<1x64xi1> to vector<2x64xi1>
    %225 = vector.broadcast %cst_84 : f32 to vector<2x64xf32>
    %226 = arith.select %224, %203, %225 : vector<2x64xi1>, vector<2x64xf32>
    %227 = vector.extract_strided_slice %77 {offsets = [0, 4], sizes = [2, 1], strides = [1, 1]} : vector<2x49xf32> to vector<2x1xf32>
    %228 = vector.broadcast %227 : vector<2x1xf32> to vector<2x64xf32>
    %229 = arith.mulf %226, %228 : vector<2x64xf32>
    %230 = arith.addf %200, %229 : vector<2x64xf32>
    %231 = vector.extract_strided_slice %76 {offsets = [0, 42], sizes = [2, 22], strides = [1, 1]} : vector<2x64xf32> to vector<2x22xf32>
    %232 = vector.extract_strided_slice %76 {offsets = [0, 0], sizes = [2, 42], strides = [1, 1]} : vector<2x64xf32> to vector<2x42xf32>
    %233 = tpu.concatenate %231, %232 in 1 : vector<2x22xf32>, vector<2x42xf32> -> vector<2x64xf32>
    %cst_85 = arith.constant -3.000000e+00 : f32
    %234 = vector.broadcast %cst_85 : f32 to vector<1x64xf32>
    %235 = arith.addf %78, %234 : vector<1x64xf32>
    %cst_86 = arith.constant 0.000000e+00 : f32
    %236 = vector.broadcast %cst_86 : f32 to vector<1x64xf32>
    %237 = arith.cmpf oge, %235, %236 : vector<1x64xf32>
    %cst_87 = arith.constant -3.000000e+00 : f32
    %238 = vector.broadcast %cst_87 : f32 to vector<1x64xf32>
    %239 = arith.addf %78, %238 : vector<1x64xf32>
    %cst_88 = arith.constant 7.000000e+00 : f32
    %240 = vector.broadcast %cst_88 : f32 to vector<1x64xf32>
    %241 = arith.cmpf ole, %239, %240 : vector<1x64xf32>
    %242 = arith.andi %237, %241 : vector<1x64xi1>
    %cst_89 = arith.constant 2.000000e+00 : f32
    %243 = vector.broadcast %cst_89 : f32 to vector<1x64xf32>
    %244 = arith.addf %79, %243 : vector<1x64xf32>
    %cst_90 = arith.constant 0.000000e+00 : f32
    %245 = vector.broadcast %cst_90 : f32 to vector<1x64xf32>
    %246 = arith.cmpf oge, %244, %245 : vector<1x64xf32>
    %247 = arith.andi %242, %246 : vector<1x64xi1>
    %cst_91 = arith.constant 2.000000e+00 : f32
    %248 = vector.broadcast %cst_91 : f32 to vector<1x64xf32>
    %249 = arith.addf %79, %248 : vector<1x64xf32>
    %cst_92 = arith.constant 7.000000e+00 : f32
    %250 = vector.broadcast %cst_92 : f32 to vector<1x64xf32>
    %251 = arith.cmpf ole, %249, %250 : vector<1x64xf32>
    %252 = arith.andi %247, %251 : vector<1x64xi1>
    %cst_93 = arith.constant 0.000000e+00 : f32
    %253 = vector.shape_cast %252 : vector<1x64xi1> to vector<1x64xi1>
    %254 = vector.broadcast %253 : vector<1x64xi1> to vector<2x64xi1>
    %255 = vector.broadcast %cst_93 : f32 to vector<2x64xf32>
    %256 = arith.select %254, %233, %255 : vector<2x64xi1>, vector<2x64xf32>
    %257 = vector.extract_strided_slice %77 {offsets = [0, 5], sizes = [2, 1], strides = [1, 1]} : vector<2x49xf32> to vector<2x1xf32>
    %258 = vector.broadcast %257 : vector<2x1xf32> to vector<2x64xf32>
    %259 = arith.mulf %256, %258 : vector<2x64xf32>
    %260 = arith.addf %230, %259 : vector<2x64xf32>
    %261 = vector.extract_strided_slice %76 {offsets = [0, 43], sizes = [2, 21], strides = [1, 1]} : vector<2x64xf32> to vector<2x21xf32>
    %262 = vector.extract_strided_slice %76 {offsets = [0, 0], sizes = [2, 43], strides = [1, 1]} : vector<2x64xf32> to vector<2x43xf32>
    %263 = tpu.concatenate %261, %262 in 1 : vector<2x21xf32>, vector<2x43xf32> -> vector<2x64xf32>
    %cst_94 = arith.constant -3.000000e+00 : f32
    %264 = vector.broadcast %cst_94 : f32 to vector<1x64xf32>
    %265 = arith.addf %78, %264 : vector<1x64xf32>
    %cst_95 = arith.constant 0.000000e+00 : f32
    %266 = vector.broadcast %cst_95 : f32 to vector<1x64xf32>
    %267 = arith.cmpf oge, %265, %266 : vector<1x64xf32>
    %cst_96 = arith.constant -3.000000e+00 : f32
    %268 = vector.broadcast %cst_96 : f32 to vector<1x64xf32>
    %269 = arith.addf %78, %268 : vector<1x64xf32>
    %cst_97 = arith.constant 7.000000e+00 : f32
    %270 = vector.broadcast %cst_97 : f32 to vector<1x64xf32>
    %271 = arith.cmpf ole, %269, %270 : vector<1x64xf32>
    %272 = arith.andi %267, %271 : vector<1x64xi1>
    %cst_98 = arith.constant 3.000000e+00 : f32
    %273 = vector.broadcast %cst_98 : f32 to vector<1x64xf32>
    %274 = arith.addf %79, %273 : vector<1x64xf32>
    %cst_99 = arith.constant 0.000000e+00 : f32
    %275 = vector.broadcast %cst_99 : f32 to vector<1x64xf32>
    %276 = arith.cmpf oge, %274, %275 : vector<1x64xf32>
    %277 = arith.andi %272, %276 : vector<1x64xi1>
    %cst_100 = arith.constant 3.000000e+00 : f32
    %278 = vector.broadcast %cst_100 : f32 to vector<1x64xf32>
    %279 = arith.addf %79, %278 : vector<1x64xf32>
    %cst_101 = arith.constant 7.000000e+00 : f32
    %280 = vector.broadcast %cst_101 : f32 to vector<1x64xf32>
    %281 = arith.cmpf ole, %279, %280 : vector<1x64xf32>
    %282 = arith.andi %277, %281 : vector<1x64xi1>
    %cst_102 = arith.constant 0.000000e+00 : f32
    %283 = vector.shape_cast %282 : vector<1x64xi1> to vector<1x64xi1>
    %284 = vector.broadcast %283 : vector<1x64xi1> to vector<2x64xi1>
    %285 = vector.broadcast %cst_102 : f32 to vector<2x64xf32>
    %286 = arith.select %284, %263, %285 : vector<2x64xi1>, vector<2x64xf32>
    %287 = vector.extract_strided_slice %77 {offsets = [0, 6], sizes = [2, 1], strides = [1, 1]} : vector<2x49xf32> to vector<2x1xf32>
    %288 = vector.broadcast %287 : vector<2x1xf32> to vector<2x64xf32>
    %289 = arith.mulf %286, %288 : vector<2x64xf32>
    %290 = arith.addf %260, %289 : vector<2x64xf32>
    %291 = vector.extract_strided_slice %76 {offsets = [0, 45], sizes = [2, 19], strides = [1, 1]} : vector<2x64xf32> to vector<2x19xf32>
    %292 = vector.extract_strided_slice %76 {offsets = [0, 0], sizes = [2, 45], strides = [1, 1]} : vector<2x64xf32> to vector<2x45xf32>
    %293 = tpu.concatenate %291, %292 in 1 : vector<2x19xf32>, vector<2x45xf32> -> vector<2x64xf32>
    %cst_103 = arith.constant -2.000000e+00 : f32
    %294 = vector.broadcast %cst_103 : f32 to vector<1x64xf32>
    %295 = arith.addf %78, %294 : vector<1x64xf32>
    %cst_104 = arith.constant 0.000000e+00 : f32
    %296 = vector.broadcast %cst_104 : f32 to vector<1x64xf32>
    %297 = arith.cmpf oge, %295, %296 : vector<1x64xf32>
    %cst_105 = arith.constant -2.000000e+00 : f32
    %298 = vector.broadcast %cst_105 : f32 to vector<1x64xf32>
    %299 = arith.addf %78, %298 : vector<1x64xf32>
    %cst_106 = arith.constant 7.000000e+00 : f32
    %300 = vector.broadcast %cst_106 : f32 to vector<1x64xf32>
    %301 = arith.cmpf ole, %299, %300 : vector<1x64xf32>
    %302 = arith.andi %297, %301 : vector<1x64xi1>
    %cst_107 = arith.constant -3.000000e+00 : f32
    %303 = vector.broadcast %cst_107 : f32 to vector<1x64xf32>
    %304 = arith.addf %79, %303 : vector<1x64xf32>
    %cst_108 = arith.constant 0.000000e+00 : f32
    %305 = vector.broadcast %cst_108 : f32 to vector<1x64xf32>
    %306 = arith.cmpf oge, %304, %305 : vector<1x64xf32>
    %307 = arith.andi %302, %306 : vector<1x64xi1>
    %cst_109 = arith.constant -3.000000e+00 : f32
    %308 = vector.broadcast %cst_109 : f32 to vector<1x64xf32>
    %309 = arith.addf %79, %308 : vector<1x64xf32>
    %cst_110 = arith.constant 7.000000e+00 : f32
    %310 = vector.broadcast %cst_110 : f32 to vector<1x64xf32>
    %311 = arith.cmpf ole, %309, %310 : vector<1x64xf32>
    %312 = arith.andi %307, %311 : vector<1x64xi1>
    %cst_111 = arith.constant 0.000000e+00 : f32
    %313 = vector.shape_cast %312 : vector<1x64xi1> to vector<1x64xi1>
    %314 = vector.broadcast %313 : vector<1x64xi1> to vector<2x64xi1>
    %315 = vector.broadcast %cst_111 : f32 to vector<2x64xf32>
    %316 = arith.select %314, %293, %315 : vector<2x64xi1>, vector<2x64xf32>
    %317 = vector.extract_strided_slice %77 {offsets = [0, 7], sizes = [2, 1], strides = [1, 1]} : vector<2x49xf32> to vector<2x1xf32>
    %318 = vector.broadcast %317 : vector<2x1xf32> to vector<2x64xf32>
    %319 = arith.mulf %316, %318 : vector<2x64xf32>
    %320 = arith.addf %290, %319 : vector<2x64xf32>
    %321 = vector.extract_strided_slice %76 {offsets = [0, 46], sizes = [2, 18], strides = [1, 1]} : vector<2x64xf32> to vector<2x18xf32>
    %322 = vector.extract_strided_slice %76 {offsets = [0, 0], sizes = [2, 46], strides = [1, 1]} : vector<2x64xf32> to vector<2x46xf32>
    %323 = tpu.concatenate %321, %322 in 1 : vector<2x18xf32>, vector<2x46xf32> -> vector<2x64xf32>
    %cst_112 = arith.constant -2.000000e+00 : f32
    %324 = vector.broadcast %cst_112 : f32 to vector<1x64xf32>
    %325 = arith.addf %78, %324 : vector<1x64xf32>
    %cst_113 = arith.constant 0.000000e+00 : f32
    %326 = vector.broadcast %cst_113 : f32 to vector<1x64xf32>
    %327 = arith.cmpf oge, %325, %326 : vector<1x64xf32>
    %cst_114 = arith.constant -2.000000e+00 : f32
    %328 = vector.broadcast %cst_114 : f32 to vector<1x64xf32>
    %329 = arith.addf %78, %328 : vector<1x64xf32>
    %cst_115 = arith.constant 7.000000e+00 : f32
    %330 = vector.broadcast %cst_115 : f32 to vector<1x64xf32>
    %331 = arith.cmpf ole, %329, %330 : vector<1x64xf32>
    %332 = arith.andi %327, %331 : vector<1x64xi1>
    %cst_116 = arith.constant -2.000000e+00 : f32
    %333 = vector.broadcast %cst_116 : f32 to vector<1x64xf32>
    %334 = arith.addf %79, %333 : vector<1x64xf32>
    %cst_117 = arith.constant 0.000000e+00 : f32
    %335 = vector.broadcast %cst_117 : f32 to vector<1x64xf32>
    %336 = arith.cmpf oge, %334, %335 : vector<1x64xf32>
    %337 = arith.andi %332, %336 : vector<1x64xi1>
    %cst_118 = arith.constant -2.000000e+00 : f32
    %338 = vector.broadcast %cst_118 : f32 to vector<1x64xf32>
    %339 = arith.addf %79, %338 : vector<1x64xf32>
    %cst_119 = arith.constant 7.000000e+00 : f32
    %340 = vector.broadcast %cst_119 : f32 to vector<1x64xf32>
    %341 = arith.cmpf ole, %339, %340 : vector<1x64xf32>
    %342 = arith.andi %337, %341 : vector<1x64xi1>
    %cst_120 = arith.constant 0.000000e+00 : f32
    %343 = vector.shape_cast %342 : vector<1x64xi1> to vector<1x64xi1>
    %344 = vector.broadcast %343 : vector<1x64xi1> to vector<2x64xi1>
    %345 = vector.broadcast %cst_120 : f32 to vector<2x64xf32>
    %346 = arith.select %344, %323, %345 : vector<2x64xi1>, vector<2x64xf32>
    %347 = vector.extract_strided_slice %77 {offsets = [0, 8], sizes = [2, 1], strides = [1, 1]} : vector<2x49xf32> to vector<2x1xf32>
    %348 = vector.broadcast %347 : vector<2x1xf32> to vector<2x64xf32>
    %349 = arith.mulf %346, %348 : vector<2x64xf32>
    %350 = arith.addf %320, %349 : vector<2x64xf32>
    %351 = vector.extract_strided_slice %76 {offsets = [0, 47], sizes = [2, 17], strides = [1, 1]} : vector<2x64xf32> to vector<2x17xf32>
    %352 = vector.extract_strided_slice %76 {offsets = [0, 0], sizes = [2, 47], strides = [1, 1]} : vector<2x64xf32> to vector<2x47xf32>
    %353 = tpu.concatenate %351, %352 in 1 : vector<2x17xf32>, vector<2x47xf32> -> vector<2x64xf32>
    %cst_121 = arith.constant -2.000000e+00 : f32
    %354 = vector.broadcast %cst_121 : f32 to vector<1x64xf32>
    %355 = arith.addf %78, %354 : vector<1x64xf32>
    %cst_122 = arith.constant 0.000000e+00 : f32
    %356 = vector.broadcast %cst_122 : f32 to vector<1x64xf32>
    %357 = arith.cmpf oge, %355, %356 : vector<1x64xf32>
    %cst_123 = arith.constant -2.000000e+00 : f32
    %358 = vector.broadcast %cst_123 : f32 to vector<1x64xf32>
    %359 = arith.addf %78, %358 : vector<1x64xf32>
    %cst_124 = arith.constant 7.000000e+00 : f32
    %360 = vector.broadcast %cst_124 : f32 to vector<1x64xf32>
    %361 = arith.cmpf ole, %359, %360 : vector<1x64xf32>
    %362 = arith.andi %357, %361 : vector<1x64xi1>
    %cst_125 = arith.constant -1.000000e+00 : f32
    %363 = vector.broadcast %cst_125 : f32 to vector<1x64xf32>
    %364 = arith.addf %79, %363 : vector<1x64xf32>
    %cst_126 = arith.constant 0.000000e+00 : f32
    %365 = vector.broadcast %cst_126 : f32 to vector<1x64xf32>
    %366 = arith.cmpf oge, %364, %365 : vector<1x64xf32>
    %367 = arith.andi %362, %366 : vector<1x64xi1>
    %cst_127 = arith.constant -1.000000e+00 : f32
    %368 = vector.broadcast %cst_127 : f32 to vector<1x64xf32>
    %369 = arith.addf %79, %368 : vector<1x64xf32>
    %cst_128 = arith.constant 7.000000e+00 : f32
    %370 = vector.broadcast %cst_128 : f32 to vector<1x64xf32>
    %371 = arith.cmpf ole, %369, %370 : vector<1x64xf32>
    %372 = arith.andi %367, %371 : vector<1x64xi1>
    %cst_129 = arith.constant 0.000000e+00 : f32
    %373 = vector.shape_cast %372 : vector<1x64xi1> to vector<1x64xi1>
    %374 = vector.broadcast %373 : vector<1x64xi1> to vector<2x64xi1>
    %375 = vector.broadcast %cst_129 : f32 to vector<2x64xf32>
    %376 = arith.select %374, %353, %375 : vector<2x64xi1>, vector<2x64xf32>
    %377 = vector.extract_strided_slice %77 {offsets = [0, 9], sizes = [2, 1], strides = [1, 1]} : vector<2x49xf32> to vector<2x1xf32>
    %378 = vector.broadcast %377 : vector<2x1xf32> to vector<2x64xf32>
    %379 = arith.mulf %376, %378 : vector<2x64xf32>
    %380 = arith.addf %350, %379 : vector<2x64xf32>
    %381 = vector.extract_strided_slice %76 {offsets = [0, 48], sizes = [2, 16], strides = [1, 1]} : vector<2x64xf32> to vector<2x16xf32>
    %382 = vector.extract_strided_slice %76 {offsets = [0, 0], sizes = [2, 48], strides = [1, 1]} : vector<2x64xf32> to vector<2x48xf32>
    %383 = tpu.concatenate %381, %382 in 1 : vector<2x16xf32>, vector<2x48xf32> -> vector<2x64xf32>
    %cst_130 = arith.constant -2.000000e+00 : f32
    %384 = vector.broadcast %cst_130 : f32 to vector<1x64xf32>
    %385 = arith.addf %78, %384 : vector<1x64xf32>
    %cst_131 = arith.constant 0.000000e+00 : f32
    %386 = vector.broadcast %cst_131 : f32 to vector<1x64xf32>
    %387 = arith.cmpf oge, %385, %386 : vector<1x64xf32>
    %cst_132 = arith.constant -2.000000e+00 : f32
    %388 = vector.broadcast %cst_132 : f32 to vector<1x64xf32>
    %389 = arith.addf %78, %388 : vector<1x64xf32>
    %cst_133 = arith.constant 7.000000e+00 : f32
    %390 = vector.broadcast %cst_133 : f32 to vector<1x64xf32>
    %391 = arith.cmpf ole, %389, %390 : vector<1x64xf32>
    %392 = arith.andi %387, %391 : vector<1x64xi1>
    %cst_134 = arith.constant 0.000000e+00 : f32
    %393 = vector.broadcast %cst_134 : f32 to vector<1x64xf32>
    %394 = arith.addf %79, %393 : vector<1x64xf32>
    %cst_135 = arith.constant 0.000000e+00 : f32
    %395 = vector.broadcast %cst_135 : f32 to vector<1x64xf32>
    %396 = arith.cmpf oge, %394, %395 : vector<1x64xf32>
    %397 = arith.andi %392, %396 : vector<1x64xi1>
    %cst_136 = arith.constant 0.000000e+00 : f32
    %398 = vector.broadcast %cst_136 : f32 to vector<1x64xf32>
    %399 = arith.addf %79, %398 : vector<1x64xf32>
    %cst_137 = arith.constant 7.000000e+00 : f32
    %400 = vector.broadcast %cst_137 : f32 to vector<1x64xf32>
    %401 = arith.cmpf ole, %399, %400 : vector<1x64xf32>
    %402 = arith.andi %397, %401 : vector<1x64xi1>
    %cst_138 = arith.constant 0.000000e+00 : f32
    %403 = vector.shape_cast %402 : vector<1x64xi1> to vector<1x64xi1>
    %404 = vector.broadcast %403 : vector<1x64xi1> to vector<2x64xi1>
    %405 = vector.broadcast %cst_138 : f32 to vector<2x64xf32>
    %406 = arith.select %404, %383, %405 : vector<2x64xi1>, vector<2x64xf32>
    %407 = vector.extract_strided_slice %77 {offsets = [0, 10], sizes = [2, 1], strides = [1, 1]} : vector<2x49xf32> to vector<2x1xf32>
    %408 = vector.broadcast %407 : vector<2x1xf32> to vector<2x64xf32>
    %409 = arith.mulf %406, %408 : vector<2x64xf32>
    %410 = arith.addf %380, %409 : vector<2x64xf32>
    %411 = vector.extract_strided_slice %76 {offsets = [0, 49], sizes = [2, 15], strides = [1, 1]} : vector<2x64xf32> to vector<2x15xf32>
    %412 = vector.extract_strided_slice %76 {offsets = [0, 0], sizes = [2, 49], strides = [1, 1]} : vector<2x64xf32> to vector<2x49xf32>
    %413 = tpu.concatenate %411, %412 in 1 : vector<2x15xf32>, vector<2x49xf32> -> vector<2x64xf32>
    %cst_139 = arith.constant -2.000000e+00 : f32
    %414 = vector.broadcast %cst_139 : f32 to vector<1x64xf32>
    %415 = arith.addf %78, %414 : vector<1x64xf32>
    %cst_140 = arith.constant 0.000000e+00 : f32
    %416 = vector.broadcast %cst_140 : f32 to vector<1x64xf32>
    %417 = arith.cmpf oge, %415, %416 : vector<1x64xf32>
    %cst_141 = arith.constant -2.000000e+00 : f32
    %418 = vector.broadcast %cst_141 : f32 to vector<1x64xf32>
    %419 = arith.addf %78, %418 : vector<1x64xf32>
    %cst_142 = arith.constant 7.000000e+00 : f32
    %420 = vector.broadcast %cst_142 : f32 to vector<1x64xf32>
    %421 = arith.cmpf ole, %419, %420 : vector<1x64xf32>
    %422 = arith.andi %417, %421 : vector<1x64xi1>
    %cst_143 = arith.constant 1.000000e+00 : f32
    %423 = vector.broadcast %cst_143 : f32 to vector<1x64xf32>
    %424 = arith.addf %79, %423 : vector<1x64xf32>
    %cst_144 = arith.constant 0.000000e+00 : f32
    %425 = vector.broadcast %cst_144 : f32 to vector<1x64xf32>
    %426 = arith.cmpf oge, %424, %425 : vector<1x64xf32>
    %427 = arith.andi %422, %426 : vector<1x64xi1>
    %cst_145 = arith.constant 1.000000e+00 : f32
    %428 = vector.broadcast %cst_145 : f32 to vector<1x64xf32>
    %429 = arith.addf %79, %428 : vector<1x64xf32>
    %cst_146 = arith.constant 7.000000e+00 : f32
    %430 = vector.broadcast %cst_146 : f32 to vector<1x64xf32>
    %431 = arith.cmpf ole, %429, %430 : vector<1x64xf32>
    %432 = arith.andi %427, %431 : vector<1x64xi1>
    %cst_147 = arith.constant 0.000000e+00 : f32
    %433 = vector.shape_cast %432 : vector<1x64xi1> to vector<1x64xi1>
    %434 = vector.broadcast %433 : vector<1x64xi1> to vector<2x64xi1>
    %435 = vector.broadcast %cst_147 : f32 to vector<2x64xf32>
    %436 = arith.select %434, %413, %435 : vector<2x64xi1>, vector<2x64xf32>
    %437 = vector.extract_strided_slice %77 {offsets = [0, 11], sizes = [2, 1], strides = [1, 1]} : vector<2x49xf32> to vector<2x1xf32>
    %438 = vector.broadcast %437 : vector<2x1xf32> to vector<2x64xf32>
    %439 = arith.mulf %436, %438 : vector<2x64xf32>
    %440 = arith.addf %410, %439 : vector<2x64xf32>
    %441 = vector.extract_strided_slice %76 {offsets = [0, 50], sizes = [2, 14], strides = [1, 1]} : vector<2x64xf32> to vector<2x14xf32>
    %442 = vector.extract_strided_slice %76 {offsets = [0, 0], sizes = [2, 50], strides = [1, 1]} : vector<2x64xf32> to vector<2x50xf32>
    %443 = tpu.concatenate %441, %442 in 1 : vector<2x14xf32>, vector<2x50xf32> -> vector<2x64xf32>
    %cst_148 = arith.constant -2.000000e+00 : f32
    %444 = vector.broadcast %cst_148 : f32 to vector<1x64xf32>
    %445 = arith.addf %78, %444 : vector<1x64xf32>
    %cst_149 = arith.constant 0.000000e+00 : f32
    %446 = vector.broadcast %cst_149 : f32 to vector<1x64xf32>
    %447 = arith.cmpf oge, %445, %446 : vector<1x64xf32>
    %cst_150 = arith.constant -2.000000e+00 : f32
    %448 = vector.broadcast %cst_150 : f32 to vector<1x64xf32>
    %449 = arith.addf %78, %448 : vector<1x64xf32>
    %cst_151 = arith.constant 7.000000e+00 : f32
    %450 = vector.broadcast %cst_151 : f32 to vector<1x64xf32>
    %451 = arith.cmpf ole, %449, %450 : vector<1x64xf32>
    %452 = arith.andi %447, %451 : vector<1x64xi1>
    %cst_152 = arith.constant 2.000000e+00 : f32
    %453 = vector.broadcast %cst_152 : f32 to vector<1x64xf32>
    %454 = arith.addf %79, %453 : vector<1x64xf32>
    %cst_153 = arith.constant 0.000000e+00 : f32
    %455 = vector.broadcast %cst_153 : f32 to vector<1x64xf32>
    %456 = arith.cmpf oge, %454, %455 : vector<1x64xf32>
    %457 = arith.andi %452, %456 : vector<1x64xi1>
    %cst_154 = arith.constant 2.000000e+00 : f32
    %458 = vector.broadcast %cst_154 : f32 to vector<1x64xf32>
    %459 = arith.addf %79, %458 : vector<1x64xf32>
    %cst_155 = arith.constant 7.000000e+00 : f32
    %460 = vector.broadcast %cst_155 : f32 to vector<1x64xf32>
    %461 = arith.cmpf ole, %459, %460 : vector<1x64xf32>
    %462 = arith.andi %457, %461 : vector<1x64xi1>
    %cst_156 = arith.constant 0.000000e+00 : f32
    %463 = vector.shape_cast %462 : vector<1x64xi1> to vector<1x64xi1>
    %464 = vector.broadcast %463 : vector<1x64xi1> to vector<2x64xi1>
    %465 = vector.broadcast %cst_156 : f32 to vector<2x64xf32>
    %466 = arith.select %464, %443, %465 : vector<2x64xi1>, vector<2x64xf32>
    %467 = vector.extract_strided_slice %77 {offsets = [0, 12], sizes = [2, 1], strides = [1, 1]} : vector<2x49xf32> to vector<2x1xf32>
    %468 = vector.broadcast %467 : vector<2x1xf32> to vector<2x64xf32>
    %469 = arith.mulf %466, %468 : vector<2x64xf32>
    %470 = arith.addf %440, %469 : vector<2x64xf32>
    %471 = vector.extract_strided_slice %76 {offsets = [0, 51], sizes = [2, 13], strides = [1, 1]} : vector<2x64xf32> to vector<2x13xf32>
    %472 = vector.extract_strided_slice %76 {offsets = [0, 0], sizes = [2, 51], strides = [1, 1]} : vector<2x64xf32> to vector<2x51xf32>
    %473 = tpu.concatenate %471, %472 in 1 : vector<2x13xf32>, vector<2x51xf32> -> vector<2x64xf32>
    %cst_157 = arith.constant -2.000000e+00 : f32
    %474 = vector.broadcast %cst_157 : f32 to vector<1x64xf32>
    %475 = arith.addf %78, %474 : vector<1x64xf32>
    %cst_158 = arith.constant 0.000000e+00 : f32
    %476 = vector.broadcast %cst_158 : f32 to vector<1x64xf32>
    %477 = arith.cmpf oge, %475, %476 : vector<1x64xf32>
    %cst_159 = arith.constant -2.000000e+00 : f32
    %478 = vector.broadcast %cst_159 : f32 to vector<1x64xf32>
    %479 = arith.addf %78, %478 : vector<1x64xf32>
    %cst_160 = arith.constant 7.000000e+00 : f32
    %480 = vector.broadcast %cst_160 : f32 to vector<1x64xf32>
    %481 = arith.cmpf ole, %479, %480 : vector<1x64xf32>
    %482 = arith.andi %477, %481 : vector<1x64xi1>
    %cst_161 = arith.constant 3.000000e+00 : f32
    %483 = vector.broadcast %cst_161 : f32 to vector<1x64xf32>
    %484 = arith.addf %79, %483 : vector<1x64xf32>
    %cst_162 = arith.constant 0.000000e+00 : f32
    %485 = vector.broadcast %cst_162 : f32 to vector<1x64xf32>
    %486 = arith.cmpf oge, %484, %485 : vector<1x64xf32>
    %487 = arith.andi %482, %486 : vector<1x64xi1>
    %cst_163 = arith.constant 3.000000e+00 : f32
    %488 = vector.broadcast %cst_163 : f32 to vector<1x64xf32>
    %489 = arith.addf %79, %488 : vector<1x64xf32>
    %cst_164 = arith.constant 7.000000e+00 : f32
    %490 = vector.broadcast %cst_164 : f32 to vector<1x64xf32>
    %491 = arith.cmpf ole, %489, %490 : vector<1x64xf32>
    %492 = arith.andi %487, %491 : vector<1x64xi1>
    %cst_165 = arith.constant 0.000000e+00 : f32
    %493 = vector.shape_cast %492 : vector<1x64xi1> to vector<1x64xi1>
    %494 = vector.broadcast %493 : vector<1x64xi1> to vector<2x64xi1>
    %495 = vector.broadcast %cst_165 : f32 to vector<2x64xf32>
    %496 = arith.select %494, %473, %495 : vector<2x64xi1>, vector<2x64xf32>
    %497 = vector.extract_strided_slice %77 {offsets = [0, 13], sizes = [2, 1], strides = [1, 1]} : vector<2x49xf32> to vector<2x1xf32>
    %498 = vector.broadcast %497 : vector<2x1xf32> to vector<2x64xf32>
    %499 = arith.mulf %496, %498 : vector<2x64xf32>
    %500 = arith.addf %470, %499 : vector<2x64xf32>
    %501 = vector.extract_strided_slice %76 {offsets = [0, 53], sizes = [2, 11], strides = [1, 1]} : vector<2x64xf32> to vector<2x11xf32>
    %502 = vector.extract_strided_slice %76 {offsets = [0, 0], sizes = [2, 53], strides = [1, 1]} : vector<2x64xf32> to vector<2x53xf32>
    %503 = tpu.concatenate %501, %502 in 1 : vector<2x11xf32>, vector<2x53xf32> -> vector<2x64xf32>
    %cst_166 = arith.constant -1.000000e+00 : f32
    %504 = vector.broadcast %cst_166 : f32 to vector<1x64xf32>
    %505 = arith.addf %78, %504 : vector<1x64xf32>
    %cst_167 = arith.constant 0.000000e+00 : f32
    %506 = vector.broadcast %cst_167 : f32 to vector<1x64xf32>
    %507 = arith.cmpf oge, %505, %506 : vector<1x64xf32>
    %cst_168 = arith.constant -1.000000e+00 : f32
    %508 = vector.broadcast %cst_168 : f32 to vector<1x64xf32>
    %509 = arith.addf %78, %508 : vector<1x64xf32>
    %cst_169 = arith.constant 7.000000e+00 : f32
    %510 = vector.broadcast %cst_169 : f32 to vector<1x64xf32>
    %511 = arith.cmpf ole, %509, %510 : vector<1x64xf32>
    %512 = arith.andi %507, %511 : vector<1x64xi1>
    %cst_170 = arith.constant -3.000000e+00 : f32
    %513 = vector.broadcast %cst_170 : f32 to vector<1x64xf32>
    %514 = arith.addf %79, %513 : vector<1x64xf32>
    %cst_171 = arith.constant 0.000000e+00 : f32
    %515 = vector.broadcast %cst_171 : f32 to vector<1x64xf32>
    %516 = arith.cmpf oge, %514, %515 : vector<1x64xf32>
    %517 = arith.andi %512, %516 : vector<1x64xi1>
    %cst_172 = arith.constant -3.000000e+00 : f32
    %518 = vector.broadcast %cst_172 : f32 to vector<1x64xf32>
    %519 = arith.addf %79, %518 : vector<1x64xf32>
    %cst_173 = arith.constant 7.000000e+00 : f32
    %520 = vector.broadcast %cst_173 : f32 to vector<1x64xf32>
    %521 = arith.cmpf ole, %519, %520 : vector<1x64xf32>
    %522 = arith.andi %517, %521 : vector<1x64xi1>
    %cst_174 = arith.constant 0.000000e+00 : f32
    %523 = vector.shape_cast %522 : vector<1x64xi1> to vector<1x64xi1>
    %524 = vector.broadcast %523 : vector<1x64xi1> to vector<2x64xi1>
    %525 = vector.broadcast %cst_174 : f32 to vector<2x64xf32>
    %526 = arith.select %524, %503, %525 : vector<2x64xi1>, vector<2x64xf32>
    %527 = vector.extract_strided_slice %77 {offsets = [0, 14], sizes = [2, 1], strides = [1, 1]} : vector<2x49xf32> to vector<2x1xf32>
    %528 = vector.broadcast %527 : vector<2x1xf32> to vector<2x64xf32>
    %529 = arith.mulf %526, %528 : vector<2x64xf32>
    %530 = arith.addf %500, %529 : vector<2x64xf32>
    %531 = vector.extract_strided_slice %76 {offsets = [0, 54], sizes = [2, 10], strides = [1, 1]} : vector<2x64xf32> to vector<2x10xf32>
    %532 = vector.extract_strided_slice %76 {offsets = [0, 0], sizes = [2, 54], strides = [1, 1]} : vector<2x64xf32> to vector<2x54xf32>
    %533 = tpu.concatenate %531, %532 in 1 : vector<2x10xf32>, vector<2x54xf32> -> vector<2x64xf32>
    %cst_175 = arith.constant -1.000000e+00 : f32
    %534 = vector.broadcast %cst_175 : f32 to vector<1x64xf32>
    %535 = arith.addf %78, %534 : vector<1x64xf32>
    %cst_176 = arith.constant 0.000000e+00 : f32
    %536 = vector.broadcast %cst_176 : f32 to vector<1x64xf32>
    %537 = arith.cmpf oge, %535, %536 : vector<1x64xf32>
    %cst_177 = arith.constant -1.000000e+00 : f32
    %538 = vector.broadcast %cst_177 : f32 to vector<1x64xf32>
    %539 = arith.addf %78, %538 : vector<1x64xf32>
    %cst_178 = arith.constant 7.000000e+00 : f32
    %540 = vector.broadcast %cst_178 : f32 to vector<1x64xf32>
    %541 = arith.cmpf ole, %539, %540 : vector<1x64xf32>
    %542 = arith.andi %537, %541 : vector<1x64xi1>
    %cst_179 = arith.constant -2.000000e+00 : f32
    %543 = vector.broadcast %cst_179 : f32 to vector<1x64xf32>
    %544 = arith.addf %79, %543 : vector<1x64xf32>
    %cst_180 = arith.constant 0.000000e+00 : f32
    %545 = vector.broadcast %cst_180 : f32 to vector<1x64xf32>
    %546 = arith.cmpf oge, %544, %545 : vector<1x64xf32>
    %547 = arith.andi %542, %546 : vector<1x64xi1>
    %cst_181 = arith.constant -2.000000e+00 : f32
    %548 = vector.broadcast %cst_181 : f32 to vector<1x64xf32>
    %549 = arith.addf %79, %548 : vector<1x64xf32>
    %cst_182 = arith.constant 7.000000e+00 : f32
    %550 = vector.broadcast %cst_182 : f32 to vector<1x64xf32>
    %551 = arith.cmpf ole, %549, %550 : vector<1x64xf32>
    %552 = arith.andi %547, %551 : vector<1x64xi1>
    %cst_183 = arith.constant 0.000000e+00 : f32
    %553 = vector.shape_cast %552 : vector<1x64xi1> to vector<1x64xi1>
    %554 = vector.broadcast %553 : vector<1x64xi1> to vector<2x64xi1>
    %555 = vector.broadcast %cst_183 : f32 to vector<2x64xf32>
    %556 = arith.select %554, %533, %555 : vector<2x64xi1>, vector<2x64xf32>
    %557 = vector.extract_strided_slice %77 {offsets = [0, 15], sizes = [2, 1], strides = [1, 1]} : vector<2x49xf32> to vector<2x1xf32>
    %558 = vector.broadcast %557 : vector<2x1xf32> to vector<2x64xf32>
    %559 = arith.mulf %556, %558 : vector<2x64xf32>
    %560 = arith.addf %530, %559 : vector<2x64xf32>
    %561 = vector.extract_strided_slice %76 {offsets = [0, 55], sizes = [2, 9], strides = [1, 1]} : vector<2x64xf32> to vector<2x9xf32>
    %562 = vector.extract_strided_slice %76 {offsets = [0, 0], sizes = [2, 55], strides = [1, 1]} : vector<2x64xf32> to vector<2x55xf32>
    %563 = tpu.concatenate %561, %562 in 1 : vector<2x9xf32>, vector<2x55xf32> -> vector<2x64xf32>
    %cst_184 = arith.constant -1.000000e+00 : f32
    %564 = vector.broadcast %cst_184 : f32 to vector<1x64xf32>
    %565 = arith.addf %78, %564 : vector<1x64xf32>
    %cst_185 = arith.constant 0.000000e+00 : f32
    %566 = vector.broadcast %cst_185 : f32 to vector<1x64xf32>
    %567 = arith.cmpf oge, %565, %566 : vector<1x64xf32>
    %cst_186 = arith.constant -1.000000e+00 : f32
    %568 = vector.broadcast %cst_186 : f32 to vector<1x64xf32>
    %569 = arith.addf %78, %568 : vector<1x64xf32>
    %cst_187 = arith.constant 7.000000e+00 : f32
    %570 = vector.broadcast %cst_187 : f32 to vector<1x64xf32>
    %571 = arith.cmpf ole, %569, %570 : vector<1x64xf32>
    %572 = arith.andi %567, %571 : vector<1x64xi1>
    %cst_188 = arith.constant -1.000000e+00 : f32
    %573 = vector.broadcast %cst_188 : f32 to vector<1x64xf32>
    %574 = arith.addf %79, %573 : vector<1x64xf32>
    %cst_189 = arith.constant 0.000000e+00 : f32
    %575 = vector.broadcast %cst_189 : f32 to vector<1x64xf32>
    %576 = arith.cmpf oge, %574, %575 : vector<1x64xf32>
    %577 = arith.andi %572, %576 : vector<1x64xi1>
    %cst_190 = arith.constant -1.000000e+00 : f32
    %578 = vector.broadcast %cst_190 : f32 to vector<1x64xf32>
    %579 = arith.addf %79, %578 : vector<1x64xf32>
    %cst_191 = arith.constant 7.000000e+00 : f32
    %580 = vector.broadcast %cst_191 : f32 to vector<1x64xf32>
    %581 = arith.cmpf ole, %579, %580 : vector<1x64xf32>
    %582 = arith.andi %577, %581 : vector<1x64xi1>
    %cst_192 = arith.constant 0.000000e+00 : f32
    %583 = vector.shape_cast %582 : vector<1x64xi1> to vector<1x64xi1>
    %584 = vector.broadcast %583 : vector<1x64xi1> to vector<2x64xi1>
    %585 = vector.broadcast %cst_192 : f32 to vector<2x64xf32>
    %586 = arith.select %584, %563, %585 : vector<2x64xi1>, vector<2x64xf32>
    %587 = vector.extract_strided_slice %77 {offsets = [0, 16], sizes = [2, 1], strides = [1, 1]} : vector<2x49xf32> to vector<2x1xf32>
    %588 = vector.broadcast %587 : vector<2x1xf32> to vector<2x64xf32>
    %589 = arith.mulf %586, %588 : vector<2x64xf32>
    %590 = arith.addf %560, %589 : vector<2x64xf32>
    %591 = vector.extract_strided_slice %76 {offsets = [0, 56], sizes = [2, 8], strides = [1, 1]} : vector<2x64xf32> to vector<2x8xf32>
    %592 = vector.extract_strided_slice %76 {offsets = [0, 0], sizes = [2, 56], strides = [1, 1]} : vector<2x64xf32> to vector<2x56xf32>
    %593 = tpu.concatenate %591, %592 in 1 : vector<2x8xf32>, vector<2x56xf32> -> vector<2x64xf32>
    %cst_193 = arith.constant -1.000000e+00 : f32
    %594 = vector.broadcast %cst_193 : f32 to vector<1x64xf32>
    %595 = arith.addf %78, %594 : vector<1x64xf32>
    %cst_194 = arith.constant 0.000000e+00 : f32
    %596 = vector.broadcast %cst_194 : f32 to vector<1x64xf32>
    %597 = arith.cmpf oge, %595, %596 : vector<1x64xf32>
    %cst_195 = arith.constant -1.000000e+00 : f32
    %598 = vector.broadcast %cst_195 : f32 to vector<1x64xf32>
    %599 = arith.addf %78, %598 : vector<1x64xf32>
    %cst_196 = arith.constant 7.000000e+00 : f32
    %600 = vector.broadcast %cst_196 : f32 to vector<1x64xf32>
    %601 = arith.cmpf ole, %599, %600 : vector<1x64xf32>
    %602 = arith.andi %597, %601 : vector<1x64xi1>
    %cst_197 = arith.constant 0.000000e+00 : f32
    %603 = vector.broadcast %cst_197 : f32 to vector<1x64xf32>
    %604 = arith.addf %79, %603 : vector<1x64xf32>
    %cst_198 = arith.constant 0.000000e+00 : f32
    %605 = vector.broadcast %cst_198 : f32 to vector<1x64xf32>
    %606 = arith.cmpf oge, %604, %605 : vector<1x64xf32>
    %607 = arith.andi %602, %606 : vector<1x64xi1>
    %cst_199 = arith.constant 0.000000e+00 : f32
    %608 = vector.broadcast %cst_199 : f32 to vector<1x64xf32>
    %609 = arith.addf %79, %608 : vector<1x64xf32>
    %cst_200 = arith.constant 7.000000e+00 : f32
    %610 = vector.broadcast %cst_200 : f32 to vector<1x64xf32>
    %611 = arith.cmpf ole, %609, %610 : vector<1x64xf32>
    %612 = arith.andi %607, %611 : vector<1x64xi1>
    %cst_201 = arith.constant 0.000000e+00 : f32
    %613 = vector.shape_cast %612 : vector<1x64xi1> to vector<1x64xi1>
    %614 = vector.broadcast %613 : vector<1x64xi1> to vector<2x64xi1>
    %615 = vector.broadcast %cst_201 : f32 to vector<2x64xf32>
    %616 = arith.select %614, %593, %615 : vector<2x64xi1>, vector<2x64xf32>
    %617 = vector.extract_strided_slice %77 {offsets = [0, 17], sizes = [2, 1], strides = [1, 1]} : vector<2x49xf32> to vector<2x1xf32>
    %618 = vector.broadcast %617 : vector<2x1xf32> to vector<2x64xf32>
    %619 = arith.mulf %616, %618 : vector<2x64xf32>
    %620 = arith.addf %590, %619 : vector<2x64xf32>
    %621 = vector.extract_strided_slice %76 {offsets = [0, 57], sizes = [2, 7], strides = [1, 1]} : vector<2x64xf32> to vector<2x7xf32>
    %622 = vector.extract_strided_slice %76 {offsets = [0, 0], sizes = [2, 57], strides = [1, 1]} : vector<2x64xf32> to vector<2x57xf32>
    %623 = tpu.concatenate %621, %622 in 1 : vector<2x7xf32>, vector<2x57xf32> -> vector<2x64xf32>
    %cst_202 = arith.constant -1.000000e+00 : f32
    %624 = vector.broadcast %cst_202 : f32 to vector<1x64xf32>
    %625 = arith.addf %78, %624 : vector<1x64xf32>
    %cst_203 = arith.constant 0.000000e+00 : f32
    %626 = vector.broadcast %cst_203 : f32 to vector<1x64xf32>
    %627 = arith.cmpf oge, %625, %626 : vector<1x64xf32>
    %cst_204 = arith.constant -1.000000e+00 : f32
    %628 = vector.broadcast %cst_204 : f32 to vector<1x64xf32>
    %629 = arith.addf %78, %628 : vector<1x64xf32>
    %cst_205 = arith.constant 7.000000e+00 : f32
    %630 = vector.broadcast %cst_205 : f32 to vector<1x64xf32>
    %631 = arith.cmpf ole, %629, %630 : vector<1x64xf32>
    %632 = arith.andi %627, %631 : vector<1x64xi1>
    %cst_206 = arith.constant 1.000000e+00 : f32
    %633 = vector.broadcast %cst_206 : f32 to vector<1x64xf32>
    %634 = arith.addf %79, %633 : vector<1x64xf32>
    %cst_207 = arith.constant 0.000000e+00 : f32
    %635 = vector.broadcast %cst_207 : f32 to vector<1x64xf32>
    %636 = arith.cmpf oge, %634, %635 : vector<1x64xf32>
    %637 = arith.andi %632, %636 : vector<1x64xi1>
    %cst_208 = arith.constant 1.000000e+00 : f32
    %638 = vector.broadcast %cst_208 : f32 to vector<1x64xf32>
    %639 = arith.addf %79, %638 : vector<1x64xf32>
    %cst_209 = arith.constant 7.000000e+00 : f32
    %640 = vector.broadcast %cst_209 : f32 to vector<1x64xf32>
    %641 = arith.cmpf ole, %639, %640 : vector<1x64xf32>
    %642 = arith.andi %637, %641 : vector<1x64xi1>
    %cst_210 = arith.constant 0.000000e+00 : f32
    %643 = vector.shape_cast %642 : vector<1x64xi1> to vector<1x64xi1>
    %644 = vector.broadcast %643 : vector<1x64xi1> to vector<2x64xi1>
    %645 = vector.broadcast %cst_210 : f32 to vector<2x64xf32>
    %646 = arith.select %644, %623, %645 : vector<2x64xi1>, vector<2x64xf32>
    %647 = vector.extract_strided_slice %77 {offsets = [0, 18], sizes = [2, 1], strides = [1, 1]} : vector<2x49xf32> to vector<2x1xf32>
    %648 = vector.broadcast %647 : vector<2x1xf32> to vector<2x64xf32>
    %649 = arith.mulf %646, %648 : vector<2x64xf32>
    %650 = arith.addf %620, %649 : vector<2x64xf32>
    %651 = vector.extract_strided_slice %76 {offsets = [0, 58], sizes = [2, 6], strides = [1, 1]} : vector<2x64xf32> to vector<2x6xf32>
    %652 = vector.extract_strided_slice %76 {offsets = [0, 0], sizes = [2, 58], strides = [1, 1]} : vector<2x64xf32> to vector<2x58xf32>
    %653 = tpu.concatenate %651, %652 in 1 : vector<2x6xf32>, vector<2x58xf32> -> vector<2x64xf32>
    %cst_211 = arith.constant -1.000000e+00 : f32
    %654 = vector.broadcast %cst_211 : f32 to vector<1x64xf32>
    %655 = arith.addf %78, %654 : vector<1x64xf32>
    %cst_212 = arith.constant 0.000000e+00 : f32
    %656 = vector.broadcast %cst_212 : f32 to vector<1x64xf32>
    %657 = arith.cmpf oge, %655, %656 : vector<1x64xf32>
    %cst_213 = arith.constant -1.000000e+00 : f32
    %658 = vector.broadcast %cst_213 : f32 to vector<1x64xf32>
    %659 = arith.addf %78, %658 : vector<1x64xf32>
    %cst_214 = arith.constant 7.000000e+00 : f32
    %660 = vector.broadcast %cst_214 : f32 to vector<1x64xf32>
    %661 = arith.cmpf ole, %659, %660 : vector<1x64xf32>
    %662 = arith.andi %657, %661 : vector<1x64xi1>
    %cst_215 = arith.constant 2.000000e+00 : f32
    %663 = vector.broadcast %cst_215 : f32 to vector<1x64xf32>
    %664 = arith.addf %79, %663 : vector<1x64xf32>
    %cst_216 = arith.constant 0.000000e+00 : f32
    %665 = vector.broadcast %cst_216 : f32 to vector<1x64xf32>
    %666 = arith.cmpf oge, %664, %665 : vector<1x64xf32>
    %667 = arith.andi %662, %666 : vector<1x64xi1>
    %cst_217 = arith.constant 2.000000e+00 : f32
    %668 = vector.broadcast %cst_217 : f32 to vector<1x64xf32>
    %669 = arith.addf %79, %668 : vector<1x64xf32>
    %cst_218 = arith.constant 7.000000e+00 : f32
    %670 = vector.broadcast %cst_218 : f32 to vector<1x64xf32>
    %671 = arith.cmpf ole, %669, %670 : vector<1x64xf32>
    %672 = arith.andi %667, %671 : vector<1x64xi1>
    %cst_219 = arith.constant 0.000000e+00 : f32
    %673 = vector.shape_cast %672 : vector<1x64xi1> to vector<1x64xi1>
    %674 = vector.broadcast %673 : vector<1x64xi1> to vector<2x64xi1>
    %675 = vector.broadcast %cst_219 : f32 to vector<2x64xf32>
    %676 = arith.select %674, %653, %675 : vector<2x64xi1>, vector<2x64xf32>
    %677 = vector.extract_strided_slice %77 {offsets = [0, 19], sizes = [2, 1], strides = [1, 1]} : vector<2x49xf32> to vector<2x1xf32>
    %678 = vector.broadcast %677 : vector<2x1xf32> to vector<2x64xf32>
    %679 = arith.mulf %676, %678 : vector<2x64xf32>
    %680 = arith.addf %650, %679 : vector<2x64xf32>
    %681 = vector.extract_strided_slice %76 {offsets = [0, 59], sizes = [2, 5], strides = [1, 1]} : vector<2x64xf32> to vector<2x5xf32>
    %682 = vector.extract_strided_slice %76 {offsets = [0, 0], sizes = [2, 59], strides = [1, 1]} : vector<2x64xf32> to vector<2x59xf32>
    %683 = tpu.concatenate %681, %682 in 1 : vector<2x5xf32>, vector<2x59xf32> -> vector<2x64xf32>
    %cst_220 = arith.constant -1.000000e+00 : f32
    %684 = vector.broadcast %cst_220 : f32 to vector<1x64xf32>
    %685 = arith.addf %78, %684 : vector<1x64xf32>
    %cst_221 = arith.constant 0.000000e+00 : f32
    %686 = vector.broadcast %cst_221 : f32 to vector<1x64xf32>
    %687 = arith.cmpf oge, %685, %686 : vector<1x64xf32>
    %cst_222 = arith.constant -1.000000e+00 : f32
    %688 = vector.broadcast %cst_222 : f32 to vector<1x64xf32>
    %689 = arith.addf %78, %688 : vector<1x64xf32>
    %cst_223 = arith.constant 7.000000e+00 : f32
    %690 = vector.broadcast %cst_223 : f32 to vector<1x64xf32>
    %691 = arith.cmpf ole, %689, %690 : vector<1x64xf32>
    %692 = arith.andi %687, %691 : vector<1x64xi1>
    %cst_224 = arith.constant 3.000000e+00 : f32
    %693 = vector.broadcast %cst_224 : f32 to vector<1x64xf32>
    %694 = arith.addf %79, %693 : vector<1x64xf32>
    %cst_225 = arith.constant 0.000000e+00 : f32
    %695 = vector.broadcast %cst_225 : f32 to vector<1x64xf32>
    %696 = arith.cmpf oge, %694, %695 : vector<1x64xf32>
    %697 = arith.andi %692, %696 : vector<1x64xi1>
    %cst_226 = arith.constant 3.000000e+00 : f32
    %698 = vector.broadcast %cst_226 : f32 to vector<1x64xf32>
    %699 = arith.addf %79, %698 : vector<1x64xf32>
    %cst_227 = arith.constant 7.000000e+00 : f32
    %700 = vector.broadcast %cst_227 : f32 to vector<1x64xf32>
    %701 = arith.cmpf ole, %699, %700 : vector<1x64xf32>
    %702 = arith.andi %697, %701 : vector<1x64xi1>
    %cst_228 = arith.constant 0.000000e+00 : f32
    %703 = vector.shape_cast %702 : vector<1x64xi1> to vector<1x64xi1>
    %704 = vector.broadcast %703 : vector<1x64xi1> to vector<2x64xi1>
    %705 = vector.broadcast %cst_228 : f32 to vector<2x64xf32>
    %706 = arith.select %704, %683, %705 : vector<2x64xi1>, vector<2x64xf32>
    %707 = vector.extract_strided_slice %77 {offsets = [0, 20], sizes = [2, 1], strides = [1, 1]} : vector<2x49xf32> to vector<2x1xf32>
    %708 = vector.broadcast %707 : vector<2x1xf32> to vector<2x64xf32>
    %709 = arith.mulf %706, %708 : vector<2x64xf32>
    %710 = arith.addf %680, %709 : vector<2x64xf32>
    %711 = vector.extract_strided_slice %76 {offsets = [0, 61], sizes = [2, 3], strides = [1, 1]} : vector<2x64xf32> to vector<2x3xf32>
    %712 = vector.extract_strided_slice %76 {offsets = [0, 0], sizes = [2, 61], strides = [1, 1]} : vector<2x64xf32> to vector<2x61xf32>
    %713 = tpu.concatenate %711, %712 in 1 : vector<2x3xf32>, vector<2x61xf32> -> vector<2x64xf32>
    %cst_229 = arith.constant 0.000000e+00 : f32
    %714 = vector.broadcast %cst_229 : f32 to vector<1x64xf32>
    %715 = arith.addf %78, %714 : vector<1x64xf32>
    %cst_230 = arith.constant 0.000000e+00 : f32
    %716 = vector.broadcast %cst_230 : f32 to vector<1x64xf32>
    %717 = arith.cmpf oge, %715, %716 : vector<1x64xf32>
    %cst_231 = arith.constant 0.000000e+00 : f32
    %718 = vector.broadcast %cst_231 : f32 to vector<1x64xf32>
    %719 = arith.addf %78, %718 : vector<1x64xf32>
    %cst_232 = arith.constant 7.000000e+00 : f32
    %720 = vector.broadcast %cst_232 : f32 to vector<1x64xf32>
    %721 = arith.cmpf ole, %719, %720 : vector<1x64xf32>
    %722 = arith.andi %717, %721 : vector<1x64xi1>
    %cst_233 = arith.constant -3.000000e+00 : f32
    %723 = vector.broadcast %cst_233 : f32 to vector<1x64xf32>
    %724 = arith.addf %79, %723 : vector<1x64xf32>
    %cst_234 = arith.constant 0.000000e+00 : f32
    %725 = vector.broadcast %cst_234 : f32 to vector<1x64xf32>
    %726 = arith.cmpf oge, %724, %725 : vector<1x64xf32>
    %727 = arith.andi %722, %726 : vector<1x64xi1>
    %cst_235 = arith.constant -3.000000e+00 : f32
    %728 = vector.broadcast %cst_235 : f32 to vector<1x64xf32>
    %729 = arith.addf %79, %728 : vector<1x64xf32>
    %cst_236 = arith.constant 7.000000e+00 : f32
    %730 = vector.broadcast %cst_236 : f32 to vector<1x64xf32>
    %731 = arith.cmpf ole, %729, %730 : vector<1x64xf32>
    %732 = arith.andi %727, %731 : vector<1x64xi1>
    %cst_237 = arith.constant 0.000000e+00 : f32
    %733 = vector.shape_cast %732 : vector<1x64xi1> to vector<1x64xi1>
    %734 = vector.broadcast %733 : vector<1x64xi1> to vector<2x64xi1>
    %735 = vector.broadcast %cst_237 : f32 to vector<2x64xf32>
    %736 = arith.select %734, %713, %735 : vector<2x64xi1>, vector<2x64xf32>
    %737 = vector.extract_strided_slice %77 {offsets = [0, 21], sizes = [2, 1], strides = [1, 1]} : vector<2x49xf32> to vector<2x1xf32>
    %738 = vector.broadcast %737 : vector<2x1xf32> to vector<2x64xf32>
    %739 = arith.mulf %736, %738 : vector<2x64xf32>
    %740 = arith.addf %710, %739 : vector<2x64xf32>
    %741 = vector.extract_strided_slice %76 {offsets = [0, 62], sizes = [2, 2], strides = [1, 1]} : vector<2x64xf32> to vector<2x2xf32>
    %742 = vector.extract_strided_slice %76 {offsets = [0, 0], sizes = [2, 62], strides = [1, 1]} : vector<2x64xf32> to vector<2x62xf32>
    %743 = tpu.concatenate %741, %742 in 1 : vector<2x2xf32>, vector<2x62xf32> -> vector<2x64xf32>
    %cst_238 = arith.constant 0.000000e+00 : f32
    %744 = vector.broadcast %cst_238 : f32 to vector<1x64xf32>
    %745 = arith.addf %78, %744 : vector<1x64xf32>
    %cst_239 = arith.constant 0.000000e+00 : f32
    %746 = vector.broadcast %cst_239 : f32 to vector<1x64xf32>
    %747 = arith.cmpf oge, %745, %746 : vector<1x64xf32>
    %cst_240 = arith.constant 0.000000e+00 : f32
    %748 = vector.broadcast %cst_240 : f32 to vector<1x64xf32>
    %749 = arith.addf %78, %748 : vector<1x64xf32>
    %cst_241 = arith.constant 7.000000e+00 : f32
    %750 = vector.broadcast %cst_241 : f32 to vector<1x64xf32>
    %751 = arith.cmpf ole, %749, %750 : vector<1x64xf32>
    %752 = arith.andi %747, %751 : vector<1x64xi1>
    %cst_242 = arith.constant -2.000000e+00 : f32
    %753 = vector.broadcast %cst_242 : f32 to vector<1x64xf32>
    %754 = arith.addf %79, %753 : vector<1x64xf32>
    %cst_243 = arith.constant 0.000000e+00 : f32
    %755 = vector.broadcast %cst_243 : f32 to vector<1x64xf32>
    %756 = arith.cmpf oge, %754, %755 : vector<1x64xf32>
    %757 = arith.andi %752, %756 : vector<1x64xi1>
    %cst_244 = arith.constant -2.000000e+00 : f32
    %758 = vector.broadcast %cst_244 : f32 to vector<1x64xf32>
    %759 = arith.addf %79, %758 : vector<1x64xf32>
    %cst_245 = arith.constant 7.000000e+00 : f32
    %760 = vector.broadcast %cst_245 : f32 to vector<1x64xf32>
    %761 = arith.cmpf ole, %759, %760 : vector<1x64xf32>
    %762 = arith.andi %757, %761 : vector<1x64xi1>
    %cst_246 = arith.constant 0.000000e+00 : f32
    %763 = vector.shape_cast %762 : vector<1x64xi1> to vector<1x64xi1>
    %764 = vector.broadcast %763 : vector<1x64xi1> to vector<2x64xi1>
    %765 = vector.broadcast %cst_246 : f32 to vector<2x64xf32>
    %766 = arith.select %764, %743, %765 : vector<2x64xi1>, vector<2x64xf32>
    %767 = vector.extract_strided_slice %77 {offsets = [0, 22], sizes = [2, 1], strides = [1, 1]} : vector<2x49xf32> to vector<2x1xf32>
    %768 = vector.broadcast %767 : vector<2x1xf32> to vector<2x64xf32>
    %769 = arith.mulf %766, %768 : vector<2x64xf32>
    %770 = arith.addf %740, %769 : vector<2x64xf32>
    %771 = vector.extract_strided_slice %76 {offsets = [0, 63], sizes = [2, 1], strides = [1, 1]} : vector<2x64xf32> to vector<2x1xf32>
    %772 = vector.extract_strided_slice %76 {offsets = [0, 0], sizes = [2, 63], strides = [1, 1]} : vector<2x64xf32> to vector<2x63xf32>
    %773 = tpu.concatenate %771, %772 in 1 : vector<2x1xf32>, vector<2x63xf32> -> vector<2x64xf32>
    %cst_247 = arith.constant 0.000000e+00 : f32
    %774 = vector.broadcast %cst_247 : f32 to vector<1x64xf32>
    %775 = arith.addf %78, %774 : vector<1x64xf32>
    %cst_248 = arith.constant 0.000000e+00 : f32
    %776 = vector.broadcast %cst_248 : f32 to vector<1x64xf32>
    %777 = arith.cmpf oge, %775, %776 : vector<1x64xf32>
    %cst_249 = arith.constant 0.000000e+00 : f32
    %778 = vector.broadcast %cst_249 : f32 to vector<1x64xf32>
    %779 = arith.addf %78, %778 : vector<1x64xf32>
    %cst_250 = arith.constant 7.000000e+00 : f32
    %780 = vector.broadcast %cst_250 : f32 to vector<1x64xf32>
    %781 = arith.cmpf ole, %779, %780 : vector<1x64xf32>
    %782 = arith.andi %777, %781 : vector<1x64xi1>
    %cst_251 = arith.constant -1.000000e+00 : f32
    %783 = vector.broadcast %cst_251 : f32 to vector<1x64xf32>
    %784 = arith.addf %79, %783 : vector<1x64xf32>
    %cst_252 = arith.constant 0.000000e+00 : f32
    %785 = vector.broadcast %cst_252 : f32 to vector<1x64xf32>
    %786 = arith.cmpf oge, %784, %785 : vector<1x64xf32>
    %787 = arith.andi %782, %786 : vector<1x64xi1>
    %cst_253 = arith.constant -1.000000e+00 : f32
    %788 = vector.broadcast %cst_253 : f32 to vector<1x64xf32>
    %789 = arith.addf %79, %788 : vector<1x64xf32>
    %cst_254 = arith.constant 7.000000e+00 : f32
    %790 = vector.broadcast %cst_254 : f32 to vector<1x64xf32>
    %791 = arith.cmpf ole, %789, %790 : vector<1x64xf32>
    %792 = arith.andi %787, %791 : vector<1x64xi1>
    %cst_255 = arith.constant 0.000000e+00 : f32
    %793 = vector.shape_cast %792 : vector<1x64xi1> to vector<1x64xi1>
    %794 = vector.broadcast %793 : vector<1x64xi1> to vector<2x64xi1>
    %795 = vector.broadcast %cst_255 : f32 to vector<2x64xf32>
    %796 = arith.select %794, %773, %795 : vector<2x64xi1>, vector<2x64xf32>
    %797 = vector.extract_strided_slice %77 {offsets = [0, 23], sizes = [2, 1], strides = [1, 1]} : vector<2x49xf32> to vector<2x1xf32>
    %798 = vector.broadcast %797 : vector<2x1xf32> to vector<2x64xf32>
    %799 = arith.mulf %796, %798 : vector<2x64xf32>
    %800 = arith.addf %770, %799 : vector<2x64xf32>
    %cst_256 = arith.constant 0.000000e+00 : f32
    %801 = vector.broadcast %cst_256 : f32 to vector<1x64xf32>
    %802 = arith.addf %78, %801 : vector<1x64xf32>
    %cst_257 = arith.constant 0.000000e+00 : f32
    %803 = vector.broadcast %cst_257 : f32 to vector<1x64xf32>
    %804 = arith.cmpf oge, %802, %803 : vector<1x64xf32>
    %cst_258 = arith.constant 0.000000e+00 : f32
    %805 = vector.broadcast %cst_258 : f32 to vector<1x64xf32>
    %806 = arith.addf %78, %805 : vector<1x64xf32>
    %cst_259 = arith.constant 7.000000e+00 : f32
    %807 = vector.broadcast %cst_259 : f32 to vector<1x64xf32>
    %808 = arith.cmpf ole, %806, %807 : vector<1x64xf32>
    %809 = arith.andi %804, %808 : vector<1x64xi1>
    %cst_260 = arith.constant 0.000000e+00 : f32
    %810 = vector.broadcast %cst_260 : f32 to vector<1x64xf32>
    %811 = arith.addf %79, %810 : vector<1x64xf32>
    %cst_261 = arith.constant 0.000000e+00 : f32
    %812 = vector.broadcast %cst_261 : f32 to vector<1x64xf32>
    %813 = arith.cmpf oge, %811, %812 : vector<1x64xf32>
    %814 = arith.andi %809, %813 : vector<1x64xi1>
    %cst_262 = arith.constant 0.000000e+00 : f32
    %815 = vector.broadcast %cst_262 : f32 to vector<1x64xf32>
    %816 = arith.addf %79, %815 : vector<1x64xf32>
    %cst_263 = arith.constant 7.000000e+00 : f32
    %817 = vector.broadcast %cst_263 : f32 to vector<1x64xf32>
    %818 = arith.cmpf ole, %816, %817 : vector<1x64xf32>
    %819 = arith.andi %814, %818 : vector<1x64xi1>
    %cst_264 = arith.constant 0.000000e+00 : f32
    %820 = vector.shape_cast %819 : vector<1x64xi1> to vector<1x64xi1>
    %821 = vector.broadcast %820 : vector<1x64xi1> to vector<2x64xi1>
    %822 = vector.broadcast %cst_264 : f32 to vector<2x64xf32>
    %823 = arith.select %821, %76, %822 : vector<2x64xi1>, vector<2x64xf32>
    %824 = vector.extract_strided_slice %77 {offsets = [0, 24], sizes = [2, 1], strides = [1, 1]} : vector<2x49xf32> to vector<2x1xf32>
    %825 = vector.broadcast %824 : vector<2x1xf32> to vector<2x64xf32>
    %826 = arith.mulf %823, %825 : vector<2x64xf32>
    %827 = arith.addf %800, %826 : vector<2x64xf32>
    %828 = vector.extract_strided_slice %76 {offsets = [0, 1], sizes = [2, 63], strides = [1, 1]} : vector<2x64xf32> to vector<2x63xf32>
    %829 = vector.extract_strided_slice %76 {offsets = [0, 0], sizes = [2, 1], strides = [1, 1]} : vector<2x64xf32> to vector<2x1xf32>
    %830 = tpu.concatenate %828, %829 in 1 : vector<2x63xf32>, vector<2x1xf32> -> vector<2x64xf32>
    %cst_265 = arith.constant 0.000000e+00 : f32
    %831 = vector.broadcast %cst_265 : f32 to vector<1x64xf32>
    %832 = arith.addf %78, %831 : vector<1x64xf32>
    %cst_266 = arith.constant 0.000000e+00 : f32
    %833 = vector.broadcast %cst_266 : f32 to vector<1x64xf32>
    %834 = arith.cmpf oge, %832, %833 : vector<1x64xf32>
    %cst_267 = arith.constant 0.000000e+00 : f32
    %835 = vector.broadcast %cst_267 : f32 to vector<1x64xf32>
    %836 = arith.addf %78, %835 : vector<1x64xf32>
    %cst_268 = arith.constant 7.000000e+00 : f32
    %837 = vector.broadcast %cst_268 : f32 to vector<1x64xf32>
    %838 = arith.cmpf ole, %836, %837 : vector<1x64xf32>
    %839 = arith.andi %834, %838 : vector<1x64xi1>
    %cst_269 = arith.constant 1.000000e+00 : f32
    %840 = vector.broadcast %cst_269 : f32 to vector<1x64xf32>
    %841 = arith.addf %79, %840 : vector<1x64xf32>
    %cst_270 = arith.constant 0.000000e+00 : f32
    %842 = vector.broadcast %cst_270 : f32 to vector<1x64xf32>
    %843 = arith.cmpf oge, %841, %842 : vector<1x64xf32>
    %844 = arith.andi %839, %843 : vector<1x64xi1>
    %cst_271 = arith.constant 1.000000e+00 : f32
    %845 = vector.broadcast %cst_271 : f32 to vector<1x64xf32>
    %846 = arith.addf %79, %845 : vector<1x64xf32>
    %cst_272 = arith.constant 7.000000e+00 : f32
    %847 = vector.broadcast %cst_272 : f32 to vector<1x64xf32>
    %848 = arith.cmpf ole, %846, %847 : vector<1x64xf32>
    %849 = arith.andi %844, %848 : vector<1x64xi1>
    %cst_273 = arith.constant 0.000000e+00 : f32
    %850 = vector.shape_cast %849 : vector<1x64xi1> to vector<1x64xi1>
    %851 = vector.broadcast %850 : vector<1x64xi1> to vector<2x64xi1>
    %852 = vector.broadcast %cst_273 : f32 to vector<2x64xf32>
    %853 = arith.select %851, %830, %852 : vector<2x64xi1>, vector<2x64xf32>
    %854 = vector.extract_strided_slice %77 {offsets = [0, 25], sizes = [2, 1], strides = [1, 1]} : vector<2x49xf32> to vector<2x1xf32>
    %855 = vector.broadcast %854 : vector<2x1xf32> to vector<2x64xf32>
    %856 = arith.mulf %853, %855 : vector<2x64xf32>
    %857 = arith.addf %827, %856 : vector<2x64xf32>
    %858 = vector.extract_strided_slice %76 {offsets = [0, 2], sizes = [2, 62], strides = [1, 1]} : vector<2x64xf32> to vector<2x62xf32>
    %859 = vector.extract_strided_slice %76 {offsets = [0, 0], sizes = [2, 2], strides = [1, 1]} : vector<2x64xf32> to vector<2x2xf32>
    %860 = tpu.concatenate %858, %859 in 1 : vector<2x62xf32>, vector<2x2xf32> -> vector<2x64xf32>
    %cst_274 = arith.constant 0.000000e+00 : f32
    %861 = vector.broadcast %cst_274 : f32 to vector<1x64xf32>
    %862 = arith.addf %78, %861 : vector<1x64xf32>
    %cst_275 = arith.constant 0.000000e+00 : f32
    %863 = vector.broadcast %cst_275 : f32 to vector<1x64xf32>
    %864 = arith.cmpf oge, %862, %863 : vector<1x64xf32>
    %cst_276 = arith.constant 0.000000e+00 : f32
    %865 = vector.broadcast %cst_276 : f32 to vector<1x64xf32>
    %866 = arith.addf %78, %865 : vector<1x64xf32>
    %cst_277 = arith.constant 7.000000e+00 : f32
    %867 = vector.broadcast %cst_277 : f32 to vector<1x64xf32>
    %868 = arith.cmpf ole, %866, %867 : vector<1x64xf32>
    %869 = arith.andi %864, %868 : vector<1x64xi1>
    %cst_278 = arith.constant 2.000000e+00 : f32
    %870 = vector.broadcast %cst_278 : f32 to vector<1x64xf32>
    %871 = arith.addf %79, %870 : vector<1x64xf32>
    %cst_279 = arith.constant 0.000000e+00 : f32
    %872 = vector.broadcast %cst_279 : f32 to vector<1x64xf32>
    %873 = arith.cmpf oge, %871, %872 : vector<1x64xf32>
    %874 = arith.andi %869, %873 : vector<1x64xi1>
    %cst_280 = arith.constant 2.000000e+00 : f32
    %875 = vector.broadcast %cst_280 : f32 to vector<1x64xf32>
    %876 = arith.addf %79, %875 : vector<1x64xf32>
    %cst_281 = arith.constant 7.000000e+00 : f32
    %877 = vector.broadcast %cst_281 : f32 to vector<1x64xf32>
    %878 = arith.cmpf ole, %876, %877 : vector<1x64xf32>
    %879 = arith.andi %874, %878 : vector<1x64xi1>
    %cst_282 = arith.constant 0.000000e+00 : f32
    %880 = vector.shape_cast %879 : vector<1x64xi1> to vector<1x64xi1>
    %881 = vector.broadcast %880 : vector<1x64xi1> to vector<2x64xi1>
    %882 = vector.broadcast %cst_282 : f32 to vector<2x64xf32>
    %883 = arith.select %881, %860, %882 : vector<2x64xi1>, vector<2x64xf32>
    %884 = vector.extract_strided_slice %77 {offsets = [0, 26], sizes = [2, 1], strides = [1, 1]} : vector<2x49xf32> to vector<2x1xf32>
    %885 = vector.broadcast %884 : vector<2x1xf32> to vector<2x64xf32>
    %886 = arith.mulf %883, %885 : vector<2x64xf32>
    %887 = arith.addf %857, %886 : vector<2x64xf32>
    %888 = vector.extract_strided_slice %76 {offsets = [0, 3], sizes = [2, 61], strides = [1, 1]} : vector<2x64xf32> to vector<2x61xf32>
    %889 = vector.extract_strided_slice %76 {offsets = [0, 0], sizes = [2, 3], strides = [1, 1]} : vector<2x64xf32> to vector<2x3xf32>
    %890 = tpu.concatenate %888, %889 in 1 : vector<2x61xf32>, vector<2x3xf32> -> vector<2x64xf32>
    %cst_283 = arith.constant 0.000000e+00 : f32
    %891 = vector.broadcast %cst_283 : f32 to vector<1x64xf32>
    %892 = arith.addf %78, %891 : vector<1x64xf32>
    %cst_284 = arith.constant 0.000000e+00 : f32
    %893 = vector.broadcast %cst_284 : f32 to vector<1x64xf32>
    %894 = arith.cmpf oge, %892, %893 : vector<1x64xf32>
    %cst_285 = arith.constant 0.000000e+00 : f32
    %895 = vector.broadcast %cst_285 : f32 to vector<1x64xf32>
    %896 = arith.addf %78, %895 : vector<1x64xf32>
    %cst_286 = arith.constant 7.000000e+00 : f32
    %897 = vector.broadcast %cst_286 : f32 to vector<1x64xf32>
    %898 = arith.cmpf ole, %896, %897 : vector<1x64xf32>
    %899 = arith.andi %894, %898 : vector<1x64xi1>
    %cst_287 = arith.constant 3.000000e+00 : f32
    %900 = vector.broadcast %cst_287 : f32 to vector<1x64xf32>
    %901 = arith.addf %79, %900 : vector<1x64xf32>
    %cst_288 = arith.constant 0.000000e+00 : f32
    %902 = vector.broadcast %cst_288 : f32 to vector<1x64xf32>
    %903 = arith.cmpf oge, %901, %902 : vector<1x64xf32>
    %904 = arith.andi %899, %903 : vector<1x64xi1>
    %cst_289 = arith.constant 3.000000e+00 : f32
    %905 = vector.broadcast %cst_289 : f32 to vector<1x64xf32>
    %906 = arith.addf %79, %905 : vector<1x64xf32>
    %cst_290 = arith.constant 7.000000e+00 : f32
    %907 = vector.broadcast %cst_290 : f32 to vector<1x64xf32>
    %908 = arith.cmpf ole, %906, %907 : vector<1x64xf32>
    %909 = arith.andi %904, %908 : vector<1x64xi1>
    %cst_291 = arith.constant 0.000000e+00 : f32
    %910 = vector.shape_cast %909 : vector<1x64xi1> to vector<1x64xi1>
    %911 = vector.broadcast %910 : vector<1x64xi1> to vector<2x64xi1>
    %912 = vector.broadcast %cst_291 : f32 to vector<2x64xf32>
    %913 = arith.select %911, %890, %912 : vector<2x64xi1>, vector<2x64xf32>
    %914 = vector.extract_strided_slice %77 {offsets = [0, 27], sizes = [2, 1], strides = [1, 1]} : vector<2x49xf32> to vector<2x1xf32>
    %915 = vector.broadcast %914 : vector<2x1xf32> to vector<2x64xf32>
    %916 = arith.mulf %913, %915 : vector<2x64xf32>
    %917 = arith.addf %887, %916 : vector<2x64xf32>
    %918 = vector.extract_strided_slice %76 {offsets = [0, 5], sizes = [2, 59], strides = [1, 1]} : vector<2x64xf32> to vector<2x59xf32>
    %919 = vector.extract_strided_slice %76 {offsets = [0, 0], sizes = [2, 5], strides = [1, 1]} : vector<2x64xf32> to vector<2x5xf32>
    %920 = tpu.concatenate %918, %919 in 1 : vector<2x59xf32>, vector<2x5xf32> -> vector<2x64xf32>
    %cst_292 = arith.constant 1.000000e+00 : f32
    %921 = vector.broadcast %cst_292 : f32 to vector<1x64xf32>
    %922 = arith.addf %78, %921 : vector<1x64xf32>
    %cst_293 = arith.constant 0.000000e+00 : f32
    %923 = vector.broadcast %cst_293 : f32 to vector<1x64xf32>
    %924 = arith.cmpf oge, %922, %923 : vector<1x64xf32>
    %cst_294 = arith.constant 1.000000e+00 : f32
    %925 = vector.broadcast %cst_294 : f32 to vector<1x64xf32>
    %926 = arith.addf %78, %925 : vector<1x64xf32>
    %cst_295 = arith.constant 7.000000e+00 : f32
    %927 = vector.broadcast %cst_295 : f32 to vector<1x64xf32>
    %928 = arith.cmpf ole, %926, %927 : vector<1x64xf32>
    %929 = arith.andi %924, %928 : vector<1x64xi1>
    %cst_296 = arith.constant -3.000000e+00 : f32
    %930 = vector.broadcast %cst_296 : f32 to vector<1x64xf32>
    %931 = arith.addf %79, %930 : vector<1x64xf32>
    %cst_297 = arith.constant 0.000000e+00 : f32
    %932 = vector.broadcast %cst_297 : f32 to vector<1x64xf32>
    %933 = arith.cmpf oge, %931, %932 : vector<1x64xf32>
    %934 = arith.andi %929, %933 : vector<1x64xi1>
    %cst_298 = arith.constant -3.000000e+00 : f32
    %935 = vector.broadcast %cst_298 : f32 to vector<1x64xf32>
    %936 = arith.addf %79, %935 : vector<1x64xf32>
    %cst_299 = arith.constant 7.000000e+00 : f32
    %937 = vector.broadcast %cst_299 : f32 to vector<1x64xf32>
    %938 = arith.cmpf ole, %936, %937 : vector<1x64xf32>
    %939 = arith.andi %934, %938 : vector<1x64xi1>
    %cst_300 = arith.constant 0.000000e+00 : f32
    %940 = vector.shape_cast %939 : vector<1x64xi1> to vector<1x64xi1>
    %941 = vector.broadcast %940 : vector<1x64xi1> to vector<2x64xi1>
    %942 = vector.broadcast %cst_300 : f32 to vector<2x64xf32>
    %943 = arith.select %941, %920, %942 : vector<2x64xi1>, vector<2x64xf32>
    %944 = vector.extract_strided_slice %77 {offsets = [0, 28], sizes = [2, 1], strides = [1, 1]} : vector<2x49xf32> to vector<2x1xf32>
    %945 = vector.broadcast %944 : vector<2x1xf32> to vector<2x64xf32>
    %946 = arith.mulf %943, %945 : vector<2x64xf32>
    %947 = arith.addf %917, %946 : vector<2x64xf32>
    %948 = vector.extract_strided_slice %76 {offsets = [0, 6], sizes = [2, 58], strides = [1, 1]} : vector<2x64xf32> to vector<2x58xf32>
    %949 = vector.extract_strided_slice %76 {offsets = [0, 0], sizes = [2, 6], strides = [1, 1]} : vector<2x64xf32> to vector<2x6xf32>
    %950 = tpu.concatenate %948, %949 in 1 : vector<2x58xf32>, vector<2x6xf32> -> vector<2x64xf32>
    %cst_301 = arith.constant 1.000000e+00 : f32
    %951 = vector.broadcast %cst_301 : f32 to vector<1x64xf32>
    %952 = arith.addf %78, %951 : vector<1x64xf32>
    %cst_302 = arith.constant 0.000000e+00 : f32
    %953 = vector.broadcast %cst_302 : f32 to vector<1x64xf32>
    %954 = arith.cmpf oge, %952, %953 : vector<1x64xf32>
    %cst_303 = arith.constant 1.000000e+00 : f32
    %955 = vector.broadcast %cst_303 : f32 to vector<1x64xf32>
    %956 = arith.addf %78, %955 : vector<1x64xf32>
    %cst_304 = arith.constant 7.000000e+00 : f32
    %957 = vector.broadcast %cst_304 : f32 to vector<1x64xf32>
    %958 = arith.cmpf ole, %956, %957 : vector<1x64xf32>
    %959 = arith.andi %954, %958 : vector<1x64xi1>
    %cst_305 = arith.constant -2.000000e+00 : f32
    %960 = vector.broadcast %cst_305 : f32 to vector<1x64xf32>
    %961 = arith.addf %79, %960 : vector<1x64xf32>
    %cst_306 = arith.constant 0.000000e+00 : f32
    %962 = vector.broadcast %cst_306 : f32 to vector<1x64xf32>
    %963 = arith.cmpf oge, %961, %962 : vector<1x64xf32>
    %964 = arith.andi %959, %963 : vector<1x64xi1>
    %cst_307 = arith.constant -2.000000e+00 : f32
    %965 = vector.broadcast %cst_307 : f32 to vector<1x64xf32>
    %966 = arith.addf %79, %965 : vector<1x64xf32>
    %cst_308 = arith.constant 7.000000e+00 : f32
    %967 = vector.broadcast %cst_308 : f32 to vector<1x64xf32>
    %968 = arith.cmpf ole, %966, %967 : vector<1x64xf32>
    %969 = arith.andi %964, %968 : vector<1x64xi1>
    %cst_309 = arith.constant 0.000000e+00 : f32
    %970 = vector.shape_cast %969 : vector<1x64xi1> to vector<1x64xi1>
    %971 = vector.broadcast %970 : vector<1x64xi1> to vector<2x64xi1>
    %972 = vector.broadcast %cst_309 : f32 to vector<2x64xf32>
    %973 = arith.select %971, %950, %972 : vector<2x64xi1>, vector<2x64xf32>
    %974 = vector.extract_strided_slice %77 {offsets = [0, 29], sizes = [2, 1], strides = [1, 1]} : vector<2x49xf32> to vector<2x1xf32>
    %975 = vector.broadcast %974 : vector<2x1xf32> to vector<2x64xf32>
    %976 = arith.mulf %973, %975 : vector<2x64xf32>
    %977 = arith.addf %947, %976 : vector<2x64xf32>
    %978 = vector.extract_strided_slice %76 {offsets = [0, 7], sizes = [2, 57], strides = [1, 1]} : vector<2x64xf32> to vector<2x57xf32>
    %979 = vector.extract_strided_slice %76 {offsets = [0, 0], sizes = [2, 7], strides = [1, 1]} : vector<2x64xf32> to vector<2x7xf32>
    %980 = tpu.concatenate %978, %979 in 1 : vector<2x57xf32>, vector<2x7xf32> -> vector<2x64xf32>
    %cst_310 = arith.constant 1.000000e+00 : f32
    %981 = vector.broadcast %cst_310 : f32 to vector<1x64xf32>
    %982 = arith.addf %78, %981 : vector<1x64xf32>
    %cst_311 = arith.constant 0.000000e+00 : f32
    %983 = vector.broadcast %cst_311 : f32 to vector<1x64xf32>
    %984 = arith.cmpf oge, %982, %983 : vector<1x64xf32>
    %cst_312 = arith.constant 1.000000e+00 : f32
    %985 = vector.broadcast %cst_312 : f32 to vector<1x64xf32>
    %986 = arith.addf %78, %985 : vector<1x64xf32>
    %cst_313 = arith.constant 7.000000e+00 : f32
    %987 = vector.broadcast %cst_313 : f32 to vector<1x64xf32>
    %988 = arith.cmpf ole, %986, %987 : vector<1x64xf32>
    %989 = arith.andi %984, %988 : vector<1x64xi1>
    %cst_314 = arith.constant -1.000000e+00 : f32
    %990 = vector.broadcast %cst_314 : f32 to vector<1x64xf32>
    %991 = arith.addf %79, %990 : vector<1x64xf32>
    %cst_315 = arith.constant 0.000000e+00 : f32
    %992 = vector.broadcast %cst_315 : f32 to vector<1x64xf32>
    %993 = arith.cmpf oge, %991, %992 : vector<1x64xf32>
    %994 = arith.andi %989, %993 : vector<1x64xi1>
    %cst_316 = arith.constant -1.000000e+00 : f32
    %995 = vector.broadcast %cst_316 : f32 to vector<1x64xf32>
    %996 = arith.addf %79, %995 : vector<1x64xf32>
    %cst_317 = arith.constant 7.000000e+00 : f32
    %997 = vector.broadcast %cst_317 : f32 to vector<1x64xf32>
    %998 = arith.cmpf ole, %996, %997 : vector<1x64xf32>
    %999 = arith.andi %994, %998 : vector<1x64xi1>
    %cst_318 = arith.constant 0.000000e+00 : f32
    %1000 = vector.shape_cast %999 : vector<1x64xi1> to vector<1x64xi1>
    %1001 = vector.broadcast %1000 : vector<1x64xi1> to vector<2x64xi1>
    %1002 = vector.broadcast %cst_318 : f32 to vector<2x64xf32>
    %1003 = arith.select %1001, %980, %1002 : vector<2x64xi1>, vector<2x64xf32>
    %1004 = vector.extract_strided_slice %77 {offsets = [0, 30], sizes = [2, 1], strides = [1, 1]} : vector<2x49xf32> to vector<2x1xf32>
    %1005 = vector.broadcast %1004 : vector<2x1xf32> to vector<2x64xf32>
    %1006 = arith.mulf %1003, %1005 : vector<2x64xf32>
    %1007 = arith.addf %977, %1006 : vector<2x64xf32>
    %1008 = vector.extract_strided_slice %76 {offsets = [0, 8], sizes = [2, 56], strides = [1, 1]} : vector<2x64xf32> to vector<2x56xf32>
    %1009 = vector.extract_strided_slice %76 {offsets = [0, 0], sizes = [2, 8], strides = [1, 1]} : vector<2x64xf32> to vector<2x8xf32>
    %1010 = tpu.concatenate %1008, %1009 in 1 : vector<2x56xf32>, vector<2x8xf32> -> vector<2x64xf32>
    %cst_319 = arith.constant 1.000000e+00 : f32
    %1011 = vector.broadcast %cst_319 : f32 to vector<1x64xf32>
    %1012 = arith.addf %78, %1011 : vector<1x64xf32>
    %cst_320 = arith.constant 0.000000e+00 : f32
    %1013 = vector.broadcast %cst_320 : f32 to vector<1x64xf32>
    %1014 = arith.cmpf oge, %1012, %1013 : vector<1x64xf32>
    %cst_321 = arith.constant 1.000000e+00 : f32
    %1015 = vector.broadcast %cst_321 : f32 to vector<1x64xf32>
    %1016 = arith.addf %78, %1015 : vector<1x64xf32>
    %cst_322 = arith.constant 7.000000e+00 : f32
    %1017 = vector.broadcast %cst_322 : f32 to vector<1x64xf32>
    %1018 = arith.cmpf ole, %1016, %1017 : vector<1x64xf32>
    %1019 = arith.andi %1014, %1018 : vector<1x64xi1>
    %cst_323 = arith.constant 0.000000e+00 : f32
    %1020 = vector.broadcast %cst_323 : f32 to vector<1x64xf32>
    %1021 = arith.addf %79, %1020 : vector<1x64xf32>
    %cst_324 = arith.constant 0.000000e+00 : f32
    %1022 = vector.broadcast %cst_324 : f32 to vector<1x64xf32>
    %1023 = arith.cmpf oge, %1021, %1022 : vector<1x64xf32>
    %1024 = arith.andi %1019, %1023 : vector<1x64xi1>
    %cst_325 = arith.constant 0.000000e+00 : f32
    %1025 = vector.broadcast %cst_325 : f32 to vector<1x64xf32>
    %1026 = arith.addf %79, %1025 : vector<1x64xf32>
    %cst_326 = arith.constant 7.000000e+00 : f32
    %1027 = vector.broadcast %cst_326 : f32 to vector<1x64xf32>
    %1028 = arith.cmpf ole, %1026, %1027 : vector<1x64xf32>
    %1029 = arith.andi %1024, %1028 : vector<1x64xi1>
    %cst_327 = arith.constant 0.000000e+00 : f32
    %1030 = vector.shape_cast %1029 : vector<1x64xi1> to vector<1x64xi1>
    %1031 = vector.broadcast %1030 : vector<1x64xi1> to vector<2x64xi1>
    %1032 = vector.broadcast %cst_327 : f32 to vector<2x64xf32>
    %1033 = arith.select %1031, %1010, %1032 : vector<2x64xi1>, vector<2x64xf32>
    %1034 = vector.extract_strided_slice %77 {offsets = [0, 31], sizes = [2, 1], strides = [1, 1]} : vector<2x49xf32> to vector<2x1xf32>
    %1035 = vector.broadcast %1034 : vector<2x1xf32> to vector<2x64xf32>
    %1036 = arith.mulf %1033, %1035 : vector<2x64xf32>
    %1037 = arith.addf %1007, %1036 : vector<2x64xf32>
    %1038 = vector.extract_strided_slice %76 {offsets = [0, 9], sizes = [2, 55], strides = [1, 1]} : vector<2x64xf32> to vector<2x55xf32>
    %1039 = vector.extract_strided_slice %76 {offsets = [0, 0], sizes = [2, 9], strides = [1, 1]} : vector<2x64xf32> to vector<2x9xf32>
    %1040 = tpu.concatenate %1038, %1039 in 1 : vector<2x55xf32>, vector<2x9xf32> -> vector<2x64xf32>
    %cst_328 = arith.constant 1.000000e+00 : f32
    %1041 = vector.broadcast %cst_328 : f32 to vector<1x64xf32>
    %1042 = arith.addf %78, %1041 : vector<1x64xf32>
    %cst_329 = arith.constant 0.000000e+00 : f32
    %1043 = vector.broadcast %cst_329 : f32 to vector<1x64xf32>
    %1044 = arith.cmpf oge, %1042, %1043 : vector<1x64xf32>
    %cst_330 = arith.constant 1.000000e+00 : f32
    %1045 = vector.broadcast %cst_330 : f32 to vector<1x64xf32>
    %1046 = arith.addf %78, %1045 : vector<1x64xf32>
    %cst_331 = arith.constant 7.000000e+00 : f32
    %1047 = vector.broadcast %cst_331 : f32 to vector<1x64xf32>
    %1048 = arith.cmpf ole, %1046, %1047 : vector<1x64xf32>
    %1049 = arith.andi %1044, %1048 : vector<1x64xi1>
    %cst_332 = arith.constant 1.000000e+00 : f32
    %1050 = vector.broadcast %cst_332 : f32 to vector<1x64xf32>
    %1051 = arith.addf %79, %1050 : vector<1x64xf32>
    %cst_333 = arith.constant 0.000000e+00 : f32
    %1052 = vector.broadcast %cst_333 : f32 to vector<1x64xf32>
    %1053 = arith.cmpf oge, %1051, %1052 : vector<1x64xf32>
    %1054 = arith.andi %1049, %1053 : vector<1x64xi1>
    %cst_334 = arith.constant 1.000000e+00 : f32
    %1055 = vector.broadcast %cst_334 : f32 to vector<1x64xf32>
    %1056 = arith.addf %79, %1055 : vector<1x64xf32>
    %cst_335 = arith.constant 7.000000e+00 : f32
    %1057 = vector.broadcast %cst_335 : f32 to vector<1x64xf32>
    %1058 = arith.cmpf ole, %1056, %1057 : vector<1x64xf32>
    %1059 = arith.andi %1054, %1058 : vector<1x64xi1>
    %cst_336 = arith.constant 0.000000e+00 : f32
    %1060 = vector.shape_cast %1059 : vector<1x64xi1> to vector<1x64xi1>
    %1061 = vector.broadcast %1060 : vector<1x64xi1> to vector<2x64xi1>
    %1062 = vector.broadcast %cst_336 : f32 to vector<2x64xf32>
    %1063 = arith.select %1061, %1040, %1062 : vector<2x64xi1>, vector<2x64xf32>
    %1064 = vector.extract_strided_slice %77 {offsets = [0, 32], sizes = [2, 1], strides = [1, 1]} : vector<2x49xf32> to vector<2x1xf32>
    %1065 = vector.broadcast %1064 : vector<2x1xf32> to vector<2x64xf32>
    %1066 = arith.mulf %1063, %1065 : vector<2x64xf32>
    %1067 = arith.addf %1037, %1066 : vector<2x64xf32>
    %1068 = vector.extract_strided_slice %76 {offsets = [0, 10], sizes = [2, 54], strides = [1, 1]} : vector<2x64xf32> to vector<2x54xf32>
    %1069 = vector.extract_strided_slice %76 {offsets = [0, 0], sizes = [2, 10], strides = [1, 1]} : vector<2x64xf32> to vector<2x10xf32>
    %1070 = tpu.concatenate %1068, %1069 in 1 : vector<2x54xf32>, vector<2x10xf32> -> vector<2x64xf32>
    %cst_337 = arith.constant 1.000000e+00 : f32
    %1071 = vector.broadcast %cst_337 : f32 to vector<1x64xf32>
    %1072 = arith.addf %78, %1071 : vector<1x64xf32>
    %cst_338 = arith.constant 0.000000e+00 : f32
    %1073 = vector.broadcast %cst_338 : f32 to vector<1x64xf32>
    %1074 = arith.cmpf oge, %1072, %1073 : vector<1x64xf32>
    %cst_339 = arith.constant 1.000000e+00 : f32
    %1075 = vector.broadcast %cst_339 : f32 to vector<1x64xf32>
    %1076 = arith.addf %78, %1075 : vector<1x64xf32>
    %cst_340 = arith.constant 7.000000e+00 : f32
    %1077 = vector.broadcast %cst_340 : f32 to vector<1x64xf32>
    %1078 = arith.cmpf ole, %1076, %1077 : vector<1x64xf32>
    %1079 = arith.andi %1074, %1078 : vector<1x64xi1>
    %cst_341 = arith.constant 2.000000e+00 : f32
    %1080 = vector.broadcast %cst_341 : f32 to vector<1x64xf32>
    %1081 = arith.addf %79, %1080 : vector<1x64xf32>
    %cst_342 = arith.constant 0.000000e+00 : f32
    %1082 = vector.broadcast %cst_342 : f32 to vector<1x64xf32>
    %1083 = arith.cmpf oge, %1081, %1082 : vector<1x64xf32>
    %1084 = arith.andi %1079, %1083 : vector<1x64xi1>
    %cst_343 = arith.constant 2.000000e+00 : f32
    %1085 = vector.broadcast %cst_343 : f32 to vector<1x64xf32>
    %1086 = arith.addf %79, %1085 : vector<1x64xf32>
    %cst_344 = arith.constant 7.000000e+00 : f32
    %1087 = vector.broadcast %cst_344 : f32 to vector<1x64xf32>
    %1088 = arith.cmpf ole, %1086, %1087 : vector<1x64xf32>
    %1089 = arith.andi %1084, %1088 : vector<1x64xi1>
    %cst_345 = arith.constant 0.000000e+00 : f32
    %1090 = vector.shape_cast %1089 : vector<1x64xi1> to vector<1x64xi1>
    %1091 = vector.broadcast %1090 : vector<1x64xi1> to vector<2x64xi1>
    %1092 = vector.broadcast %cst_345 : f32 to vector<2x64xf32>
    %1093 = arith.select %1091, %1070, %1092 : vector<2x64xi1>, vector<2x64xf32>
    %1094 = vector.extract_strided_slice %77 {offsets = [0, 33], sizes = [2, 1], strides = [1, 1]} : vector<2x49xf32> to vector<2x1xf32>
    %1095 = vector.broadcast %1094 : vector<2x1xf32> to vector<2x64xf32>
    %1096 = arith.mulf %1093, %1095 : vector<2x64xf32>
    %1097 = arith.addf %1067, %1096 : vector<2x64xf32>
    %1098 = vector.extract_strided_slice %76 {offsets = [0, 11], sizes = [2, 53], strides = [1, 1]} : vector<2x64xf32> to vector<2x53xf32>
    %1099 = vector.extract_strided_slice %76 {offsets = [0, 0], sizes = [2, 11], strides = [1, 1]} : vector<2x64xf32> to vector<2x11xf32>
    %1100 = tpu.concatenate %1098, %1099 in 1 : vector<2x53xf32>, vector<2x11xf32> -> vector<2x64xf32>
    %cst_346 = arith.constant 1.000000e+00 : f32
    %1101 = vector.broadcast %cst_346 : f32 to vector<1x64xf32>
    %1102 = arith.addf %78, %1101 : vector<1x64xf32>
    %cst_347 = arith.constant 0.000000e+00 : f32
    %1103 = vector.broadcast %cst_347 : f32 to vector<1x64xf32>
    %1104 = arith.cmpf oge, %1102, %1103 : vector<1x64xf32>
    %cst_348 = arith.constant 1.000000e+00 : f32
    %1105 = vector.broadcast %cst_348 : f32 to vector<1x64xf32>
    %1106 = arith.addf %78, %1105 : vector<1x64xf32>
    %cst_349 = arith.constant 7.000000e+00 : f32
    %1107 = vector.broadcast %cst_349 : f32 to vector<1x64xf32>
    %1108 = arith.cmpf ole, %1106, %1107 : vector<1x64xf32>
    %1109 = arith.andi %1104, %1108 : vector<1x64xi1>
    %cst_350 = arith.constant 3.000000e+00 : f32
    %1110 = vector.broadcast %cst_350 : f32 to vector<1x64xf32>
    %1111 = arith.addf %79, %1110 : vector<1x64xf32>
    %cst_351 = arith.constant 0.000000e+00 : f32
    %1112 = vector.broadcast %cst_351 : f32 to vector<1x64xf32>
    %1113 = arith.cmpf oge, %1111, %1112 : vector<1x64xf32>
    %1114 = arith.andi %1109, %1113 : vector<1x64xi1>
    %cst_352 = arith.constant 3.000000e+00 : f32
    %1115 = vector.broadcast %cst_352 : f32 to vector<1x64xf32>
    %1116 = arith.addf %79, %1115 : vector<1x64xf32>
    %cst_353 = arith.constant 7.000000e+00 : f32
    %1117 = vector.broadcast %cst_353 : f32 to vector<1x64xf32>
    %1118 = arith.cmpf ole, %1116, %1117 : vector<1x64xf32>
    %1119 = arith.andi %1114, %1118 : vector<1x64xi1>
    %cst_354 = arith.constant 0.000000e+00 : f32
    %1120 = vector.shape_cast %1119 : vector<1x64xi1> to vector<1x64xi1>
    %1121 = vector.broadcast %1120 : vector<1x64xi1> to vector<2x64xi1>
    %1122 = vector.broadcast %cst_354 : f32 to vector<2x64xf32>
    %1123 = arith.select %1121, %1100, %1122 : vector<2x64xi1>, vector<2x64xf32>
    %1124 = vector.extract_strided_slice %77 {offsets = [0, 34], sizes = [2, 1], strides = [1, 1]} : vector<2x49xf32> to vector<2x1xf32>
    %1125 = vector.broadcast %1124 : vector<2x1xf32> to vector<2x64xf32>
    %1126 = arith.mulf %1123, %1125 : vector<2x64xf32>
    %1127 = arith.addf %1097, %1126 : vector<2x64xf32>
    %1128 = vector.extract_strided_slice %76 {offsets = [0, 13], sizes = [2, 51], strides = [1, 1]} : vector<2x64xf32> to vector<2x51xf32>
    %1129 = vector.extract_strided_slice %76 {offsets = [0, 0], sizes = [2, 13], strides = [1, 1]} : vector<2x64xf32> to vector<2x13xf32>
    %1130 = tpu.concatenate %1128, %1129 in 1 : vector<2x51xf32>, vector<2x13xf32> -> vector<2x64xf32>
    %cst_355 = arith.constant 2.000000e+00 : f32
    %1131 = vector.broadcast %cst_355 : f32 to vector<1x64xf32>
    %1132 = arith.addf %78, %1131 : vector<1x64xf32>
    %cst_356 = arith.constant 0.000000e+00 : f32
    %1133 = vector.broadcast %cst_356 : f32 to vector<1x64xf32>
    %1134 = arith.cmpf oge, %1132, %1133 : vector<1x64xf32>
    %cst_357 = arith.constant 2.000000e+00 : f32
    %1135 = vector.broadcast %cst_357 : f32 to vector<1x64xf32>
    %1136 = arith.addf %78, %1135 : vector<1x64xf32>
    %cst_358 = arith.constant 7.000000e+00 : f32
    %1137 = vector.broadcast %cst_358 : f32 to vector<1x64xf32>
    %1138 = arith.cmpf ole, %1136, %1137 : vector<1x64xf32>
    %1139 = arith.andi %1134, %1138 : vector<1x64xi1>
    %cst_359 = arith.constant -3.000000e+00 : f32
    %1140 = vector.broadcast %cst_359 : f32 to vector<1x64xf32>
    %1141 = arith.addf %79, %1140 : vector<1x64xf32>
    %cst_360 = arith.constant 0.000000e+00 : f32
    %1142 = vector.broadcast %cst_360 : f32 to vector<1x64xf32>
    %1143 = arith.cmpf oge, %1141, %1142 : vector<1x64xf32>
    %1144 = arith.andi %1139, %1143 : vector<1x64xi1>
    %cst_361 = arith.constant -3.000000e+00 : f32
    %1145 = vector.broadcast %cst_361 : f32 to vector<1x64xf32>
    %1146 = arith.addf %79, %1145 : vector<1x64xf32>
    %cst_362 = arith.constant 7.000000e+00 : f32
    %1147 = vector.broadcast %cst_362 : f32 to vector<1x64xf32>
    %1148 = arith.cmpf ole, %1146, %1147 : vector<1x64xf32>
    %1149 = arith.andi %1144, %1148 : vector<1x64xi1>
    %cst_363 = arith.constant 0.000000e+00 : f32
    %1150 = vector.shape_cast %1149 : vector<1x64xi1> to vector<1x64xi1>
    %1151 = vector.broadcast %1150 : vector<1x64xi1> to vector<2x64xi1>
    %1152 = vector.broadcast %cst_363 : f32 to vector<2x64xf32>
    %1153 = arith.select %1151, %1130, %1152 : vector<2x64xi1>, vector<2x64xf32>
    %1154 = vector.extract_strided_slice %77 {offsets = [0, 35], sizes = [2, 1], strides = [1, 1]} : vector<2x49xf32> to vector<2x1xf32>
    %1155 = vector.broadcast %1154 : vector<2x1xf32> to vector<2x64xf32>
    %1156 = arith.mulf %1153, %1155 : vector<2x64xf32>
    %1157 = arith.addf %1127, %1156 : vector<2x64xf32>
    %1158 = vector.extract_strided_slice %76 {offsets = [0, 14], sizes = [2, 50], strides = [1, 1]} : vector<2x64xf32> to vector<2x50xf32>
    %1159 = vector.extract_strided_slice %76 {offsets = [0, 0], sizes = [2, 14], strides = [1, 1]} : vector<2x64xf32> to vector<2x14xf32>
    %1160 = tpu.concatenate %1158, %1159 in 1 : vector<2x50xf32>, vector<2x14xf32> -> vector<2x64xf32>
    %cst_364 = arith.constant 2.000000e+00 : f32
    %1161 = vector.broadcast %cst_364 : f32 to vector<1x64xf32>
    %1162 = arith.addf %78, %1161 : vector<1x64xf32>
    %cst_365 = arith.constant 0.000000e+00 : f32
    %1163 = vector.broadcast %cst_365 : f32 to vector<1x64xf32>
    %1164 = arith.cmpf oge, %1162, %1163 : vector<1x64xf32>
    %cst_366 = arith.constant 2.000000e+00 : f32
    %1165 = vector.broadcast %cst_366 : f32 to vector<1x64xf32>
    %1166 = arith.addf %78, %1165 : vector<1x64xf32>
    %cst_367 = arith.constant 7.000000e+00 : f32
    %1167 = vector.broadcast %cst_367 : f32 to vector<1x64xf32>
    %1168 = arith.cmpf ole, %1166, %1167 : vector<1x64xf32>
    %1169 = arith.andi %1164, %1168 : vector<1x64xi1>
    %cst_368 = arith.constant -2.000000e+00 : f32
    %1170 = vector.broadcast %cst_368 : f32 to vector<1x64xf32>
    %1171 = arith.addf %79, %1170 : vector<1x64xf32>
    %cst_369 = arith.constant 0.000000e+00 : f32
    %1172 = vector.broadcast %cst_369 : f32 to vector<1x64xf32>
    %1173 = arith.cmpf oge, %1171, %1172 : vector<1x64xf32>
    %1174 = arith.andi %1169, %1173 : vector<1x64xi1>
    %cst_370 = arith.constant -2.000000e+00 : f32
    %1175 = vector.broadcast %cst_370 : f32 to vector<1x64xf32>
    %1176 = arith.addf %79, %1175 : vector<1x64xf32>
    %cst_371 = arith.constant 7.000000e+00 : f32
    %1177 = vector.broadcast %cst_371 : f32 to vector<1x64xf32>
    %1178 = arith.cmpf ole, %1176, %1177 : vector<1x64xf32>
    %1179 = arith.andi %1174, %1178 : vector<1x64xi1>
    %cst_372 = arith.constant 0.000000e+00 : f32
    %1180 = vector.shape_cast %1179 : vector<1x64xi1> to vector<1x64xi1>
    %1181 = vector.broadcast %1180 : vector<1x64xi1> to vector<2x64xi1>
    %1182 = vector.broadcast %cst_372 : f32 to vector<2x64xf32>
    %1183 = arith.select %1181, %1160, %1182 : vector<2x64xi1>, vector<2x64xf32>
    %1184 = vector.extract_strided_slice %77 {offsets = [0, 36], sizes = [2, 1], strides = [1, 1]} : vector<2x49xf32> to vector<2x1xf32>
    %1185 = vector.broadcast %1184 : vector<2x1xf32> to vector<2x64xf32>
    %1186 = arith.mulf %1183, %1185 : vector<2x64xf32>
    %1187 = arith.addf %1157, %1186 : vector<2x64xf32>
    %1188 = vector.extract_strided_slice %76 {offsets = [0, 15], sizes = [2, 49], strides = [1, 1]} : vector<2x64xf32> to vector<2x49xf32>
    %1189 = vector.extract_strided_slice %76 {offsets = [0, 0], sizes = [2, 15], strides = [1, 1]} : vector<2x64xf32> to vector<2x15xf32>
    %1190 = tpu.concatenate %1188, %1189 in 1 : vector<2x49xf32>, vector<2x15xf32> -> vector<2x64xf32>
    %cst_373 = arith.constant 2.000000e+00 : f32
    %1191 = vector.broadcast %cst_373 : f32 to vector<1x64xf32>
    %1192 = arith.addf %78, %1191 : vector<1x64xf32>
    %cst_374 = arith.constant 0.000000e+00 : f32
    %1193 = vector.broadcast %cst_374 : f32 to vector<1x64xf32>
    %1194 = arith.cmpf oge, %1192, %1193 : vector<1x64xf32>
    %cst_375 = arith.constant 2.000000e+00 : f32
    %1195 = vector.broadcast %cst_375 : f32 to vector<1x64xf32>
    %1196 = arith.addf %78, %1195 : vector<1x64xf32>
    %cst_376 = arith.constant 7.000000e+00 : f32
    %1197 = vector.broadcast %cst_376 : f32 to vector<1x64xf32>
    %1198 = arith.cmpf ole, %1196, %1197 : vector<1x64xf32>
    %1199 = arith.andi %1194, %1198 : vector<1x64xi1>
    %cst_377 = arith.constant -1.000000e+00 : f32
    %1200 = vector.broadcast %cst_377 : f32 to vector<1x64xf32>
    %1201 = arith.addf %79, %1200 : vector<1x64xf32>
    %cst_378 = arith.constant 0.000000e+00 : f32
    %1202 = vector.broadcast %cst_378 : f32 to vector<1x64xf32>
    %1203 = arith.cmpf oge, %1201, %1202 : vector<1x64xf32>
    %1204 = arith.andi %1199, %1203 : vector<1x64xi1>
    %cst_379 = arith.constant -1.000000e+00 : f32
    %1205 = vector.broadcast %cst_379 : f32 to vector<1x64xf32>
    %1206 = arith.addf %79, %1205 : vector<1x64xf32>
    %cst_380 = arith.constant 7.000000e+00 : f32
    %1207 = vector.broadcast %cst_380 : f32 to vector<1x64xf32>
    %1208 = arith.cmpf ole, %1206, %1207 : vector<1x64xf32>
    %1209 = arith.andi %1204, %1208 : vector<1x64xi1>
    %cst_381 = arith.constant 0.000000e+00 : f32
    %1210 = vector.shape_cast %1209 : vector<1x64xi1> to vector<1x64xi1>
    %1211 = vector.broadcast %1210 : vector<1x64xi1> to vector<2x64xi1>
    %1212 = vector.broadcast %cst_381 : f32 to vector<2x64xf32>
    %1213 = arith.select %1211, %1190, %1212 : vector<2x64xi1>, vector<2x64xf32>
    %1214 = vector.extract_strided_slice %77 {offsets = [0, 37], sizes = [2, 1], strides = [1, 1]} : vector<2x49xf32> to vector<2x1xf32>
    %1215 = vector.broadcast %1214 : vector<2x1xf32> to vector<2x64xf32>
    %1216 = arith.mulf %1213, %1215 : vector<2x64xf32>
    %1217 = arith.addf %1187, %1216 : vector<2x64xf32>
    %1218 = vector.extract_strided_slice %76 {offsets = [0, 16], sizes = [2, 48], strides = [1, 1]} : vector<2x64xf32> to vector<2x48xf32>
    %1219 = vector.extract_strided_slice %76 {offsets = [0, 0], sizes = [2, 16], strides = [1, 1]} : vector<2x64xf32> to vector<2x16xf32>
    %1220 = tpu.concatenate %1218, %1219 in 1 : vector<2x48xf32>, vector<2x16xf32> -> vector<2x64xf32>
    %cst_382 = arith.constant 2.000000e+00 : f32
    %1221 = vector.broadcast %cst_382 : f32 to vector<1x64xf32>
    %1222 = arith.addf %78, %1221 : vector<1x64xf32>
    %cst_383 = arith.constant 0.000000e+00 : f32
    %1223 = vector.broadcast %cst_383 : f32 to vector<1x64xf32>
    %1224 = arith.cmpf oge, %1222, %1223 : vector<1x64xf32>
    %cst_384 = arith.constant 2.000000e+00 : f32
    %1225 = vector.broadcast %cst_384 : f32 to vector<1x64xf32>
    %1226 = arith.addf %78, %1225 : vector<1x64xf32>
    %cst_385 = arith.constant 7.000000e+00 : f32
    %1227 = vector.broadcast %cst_385 : f32 to vector<1x64xf32>
    %1228 = arith.cmpf ole, %1226, %1227 : vector<1x64xf32>
    %1229 = arith.andi %1224, %1228 : vector<1x64xi1>
    %cst_386 = arith.constant 0.000000e+00 : f32
    %1230 = vector.broadcast %cst_386 : f32 to vector<1x64xf32>
    %1231 = arith.addf %79, %1230 : vector<1x64xf32>
    %cst_387 = arith.constant 0.000000e+00 : f32
    %1232 = vector.broadcast %cst_387 : f32 to vector<1x64xf32>
    %1233 = arith.cmpf oge, %1231, %1232 : vector<1x64xf32>
    %1234 = arith.andi %1229, %1233 : vector<1x64xi1>
    %cst_388 = arith.constant 0.000000e+00 : f32
    %1235 = vector.broadcast %cst_388 : f32 to vector<1x64xf32>
    %1236 = arith.addf %79, %1235 : vector<1x64xf32>
    %cst_389 = arith.constant 7.000000e+00 : f32
    %1237 = vector.broadcast %cst_389 : f32 to vector<1x64xf32>
    %1238 = arith.cmpf ole, %1236, %1237 : vector<1x64xf32>
    %1239 = arith.andi %1234, %1238 : vector<1x64xi1>
    %cst_390 = arith.constant 0.000000e+00 : f32
    %1240 = vector.shape_cast %1239 : vector<1x64xi1> to vector<1x64xi1>
    %1241 = vector.broadcast %1240 : vector<1x64xi1> to vector<2x64xi1>
    %1242 = vector.broadcast %cst_390 : f32 to vector<2x64xf32>
    %1243 = arith.select %1241, %1220, %1242 : vector<2x64xi1>, vector<2x64xf32>
    %1244 = vector.extract_strided_slice %77 {offsets = [0, 38], sizes = [2, 1], strides = [1, 1]} : vector<2x49xf32> to vector<2x1xf32>
    %1245 = vector.broadcast %1244 : vector<2x1xf32> to vector<2x64xf32>
    %1246 = arith.mulf %1243, %1245 : vector<2x64xf32>
    %1247 = arith.addf %1217, %1246 : vector<2x64xf32>
    %1248 = vector.extract_strided_slice %76 {offsets = [0, 17], sizes = [2, 47], strides = [1, 1]} : vector<2x64xf32> to vector<2x47xf32>
    %1249 = vector.extract_strided_slice %76 {offsets = [0, 0], sizes = [2, 17], strides = [1, 1]} : vector<2x64xf32> to vector<2x17xf32>
    %1250 = tpu.concatenate %1248, %1249 in 1 : vector<2x47xf32>, vector<2x17xf32> -> vector<2x64xf32>
    %cst_391 = arith.constant 2.000000e+00 : f32
    %1251 = vector.broadcast %cst_391 : f32 to vector<1x64xf32>
    %1252 = arith.addf %78, %1251 : vector<1x64xf32>
    %cst_392 = arith.constant 0.000000e+00 : f32
    %1253 = vector.broadcast %cst_392 : f32 to vector<1x64xf32>
    %1254 = arith.cmpf oge, %1252, %1253 : vector<1x64xf32>
    %cst_393 = arith.constant 2.000000e+00 : f32
    %1255 = vector.broadcast %cst_393 : f32 to vector<1x64xf32>
    %1256 = arith.addf %78, %1255 : vector<1x64xf32>
    %cst_394 = arith.constant 7.000000e+00 : f32
    %1257 = vector.broadcast %cst_394 : f32 to vector<1x64xf32>
    %1258 = arith.cmpf ole, %1256, %1257 : vector<1x64xf32>
    %1259 = arith.andi %1254, %1258 : vector<1x64xi1>
    %cst_395 = arith.constant 1.000000e+00 : f32
    %1260 = vector.broadcast %cst_395 : f32 to vector<1x64xf32>
    %1261 = arith.addf %79, %1260 : vector<1x64xf32>
    %cst_396 = arith.constant 0.000000e+00 : f32
    %1262 = vector.broadcast %cst_396 : f32 to vector<1x64xf32>
    %1263 = arith.cmpf oge, %1261, %1262 : vector<1x64xf32>
    %1264 = arith.andi %1259, %1263 : vector<1x64xi1>
    %cst_397 = arith.constant 1.000000e+00 : f32
    %1265 = vector.broadcast %cst_397 : f32 to vector<1x64xf32>
    %1266 = arith.addf %79, %1265 : vector<1x64xf32>
    %cst_398 = arith.constant 7.000000e+00 : f32
    %1267 = vector.broadcast %cst_398 : f32 to vector<1x64xf32>
    %1268 = arith.cmpf ole, %1266, %1267 : vector<1x64xf32>
    %1269 = arith.andi %1264, %1268 : vector<1x64xi1>
    %cst_399 = arith.constant 0.000000e+00 : f32
    %1270 = vector.shape_cast %1269 : vector<1x64xi1> to vector<1x64xi1>
    %1271 = vector.broadcast %1270 : vector<1x64xi1> to vector<2x64xi1>
    %1272 = vector.broadcast %cst_399 : f32 to vector<2x64xf32>
    %1273 = arith.select %1271, %1250, %1272 : vector<2x64xi1>, vector<2x64xf32>
    %1274 = vector.extract_strided_slice %77 {offsets = [0, 39], sizes = [2, 1], strides = [1, 1]} : vector<2x49xf32> to vector<2x1xf32>
    %1275 = vector.broadcast %1274 : vector<2x1xf32> to vector<2x64xf32>
    %1276 = arith.mulf %1273, %1275 : vector<2x64xf32>
    %1277 = arith.addf %1247, %1276 : vector<2x64xf32>
    %1278 = vector.extract_strided_slice %76 {offsets = [0, 18], sizes = [2, 46], strides = [1, 1]} : vector<2x64xf32> to vector<2x46xf32>
    %1279 = vector.extract_strided_slice %76 {offsets = [0, 0], sizes = [2, 18], strides = [1, 1]} : vector<2x64xf32> to vector<2x18xf32>
    %1280 = tpu.concatenate %1278, %1279 in 1 : vector<2x46xf32>, vector<2x18xf32> -> vector<2x64xf32>
    %cst_400 = arith.constant 2.000000e+00 : f32
    %1281 = vector.broadcast %cst_400 : f32 to vector<1x64xf32>
    %1282 = arith.addf %78, %1281 : vector<1x64xf32>
    %cst_401 = arith.constant 0.000000e+00 : f32
    %1283 = vector.broadcast %cst_401 : f32 to vector<1x64xf32>
    %1284 = arith.cmpf oge, %1282, %1283 : vector<1x64xf32>
    %cst_402 = arith.constant 2.000000e+00 : f32
    %1285 = vector.broadcast %cst_402 : f32 to vector<1x64xf32>
    %1286 = arith.addf %78, %1285 : vector<1x64xf32>
    %cst_403 = arith.constant 7.000000e+00 : f32
    %1287 = vector.broadcast %cst_403 : f32 to vector<1x64xf32>
    %1288 = arith.cmpf ole, %1286, %1287 : vector<1x64xf32>
    %1289 = arith.andi %1284, %1288 : vector<1x64xi1>
    %cst_404 = arith.constant 2.000000e+00 : f32
    %1290 = vector.broadcast %cst_404 : f32 to vector<1x64xf32>
    %1291 = arith.addf %79, %1290 : vector<1x64xf32>
    %cst_405 = arith.constant 0.000000e+00 : f32
    %1292 = vector.broadcast %cst_405 : f32 to vector<1x64xf32>
    %1293 = arith.cmpf oge, %1291, %1292 : vector<1x64xf32>
    %1294 = arith.andi %1289, %1293 : vector<1x64xi1>
    %cst_406 = arith.constant 2.000000e+00 : f32
    %1295 = vector.broadcast %cst_406 : f32 to vector<1x64xf32>
    %1296 = arith.addf %79, %1295 : vector<1x64xf32>
    %cst_407 = arith.constant 7.000000e+00 : f32
    %1297 = vector.broadcast %cst_407 : f32 to vector<1x64xf32>
    %1298 = arith.cmpf ole, %1296, %1297 : vector<1x64xf32>
    %1299 = arith.andi %1294, %1298 : vector<1x64xi1>
    %cst_408 = arith.constant 0.000000e+00 : f32
    %1300 = vector.shape_cast %1299 : vector<1x64xi1> to vector<1x64xi1>
    %1301 = vector.broadcast %1300 : vector<1x64xi1> to vector<2x64xi1>
    %1302 = vector.broadcast %cst_408 : f32 to vector<2x64xf32>
    %1303 = arith.select %1301, %1280, %1302 : vector<2x64xi1>, vector<2x64xf32>
    %1304 = vector.extract_strided_slice %77 {offsets = [0, 40], sizes = [2, 1], strides = [1, 1]} : vector<2x49xf32> to vector<2x1xf32>
    %1305 = vector.broadcast %1304 : vector<2x1xf32> to vector<2x64xf32>
    %1306 = arith.mulf %1303, %1305 : vector<2x64xf32>
    %1307 = arith.addf %1277, %1306 : vector<2x64xf32>
    %1308 = vector.extract_strided_slice %76 {offsets = [0, 19], sizes = [2, 45], strides = [1, 1]} : vector<2x64xf32> to vector<2x45xf32>
    %1309 = vector.extract_strided_slice %76 {offsets = [0, 0], sizes = [2, 19], strides = [1, 1]} : vector<2x64xf32> to vector<2x19xf32>
    %1310 = tpu.concatenate %1308, %1309 in 1 : vector<2x45xf32>, vector<2x19xf32> -> vector<2x64xf32>
    %cst_409 = arith.constant 2.000000e+00 : f32
    %1311 = vector.broadcast %cst_409 : f32 to vector<1x64xf32>
    %1312 = arith.addf %78, %1311 : vector<1x64xf32>
    %cst_410 = arith.constant 0.000000e+00 : f32
    %1313 = vector.broadcast %cst_410 : f32 to vector<1x64xf32>
    %1314 = arith.cmpf oge, %1312, %1313 : vector<1x64xf32>
    %cst_411 = arith.constant 2.000000e+00 : f32
    %1315 = vector.broadcast %cst_411 : f32 to vector<1x64xf32>
    %1316 = arith.addf %78, %1315 : vector<1x64xf32>
    %cst_412 = arith.constant 7.000000e+00 : f32
    %1317 = vector.broadcast %cst_412 : f32 to vector<1x64xf32>
    %1318 = arith.cmpf ole, %1316, %1317 : vector<1x64xf32>
    %1319 = arith.andi %1314, %1318 : vector<1x64xi1>
    %cst_413 = arith.constant 3.000000e+00 : f32
    %1320 = vector.broadcast %cst_413 : f32 to vector<1x64xf32>
    %1321 = arith.addf %79, %1320 : vector<1x64xf32>
    %cst_414 = arith.constant 0.000000e+00 : f32
    %1322 = vector.broadcast %cst_414 : f32 to vector<1x64xf32>
    %1323 = arith.cmpf oge, %1321, %1322 : vector<1x64xf32>
    %1324 = arith.andi %1319, %1323 : vector<1x64xi1>
    %cst_415 = arith.constant 3.000000e+00 : f32
    %1325 = vector.broadcast %cst_415 : f32 to vector<1x64xf32>
    %1326 = arith.addf %79, %1325 : vector<1x64xf32>
    %cst_416 = arith.constant 7.000000e+00 : f32
    %1327 = vector.broadcast %cst_416 : f32 to vector<1x64xf32>
    %1328 = arith.cmpf ole, %1326, %1327 : vector<1x64xf32>
    %1329 = arith.andi %1324, %1328 : vector<1x64xi1>
    %cst_417 = arith.constant 0.000000e+00 : f32
    %1330 = vector.shape_cast %1329 : vector<1x64xi1> to vector<1x64xi1>
    %1331 = vector.broadcast %1330 : vector<1x64xi1> to vector<2x64xi1>
    %1332 = vector.broadcast %cst_417 : f32 to vector<2x64xf32>
    %1333 = arith.select %1331, %1310, %1332 : vector<2x64xi1>, vector<2x64xf32>
    %1334 = vector.extract_strided_slice %77 {offsets = [0, 41], sizes = [2, 1], strides = [1, 1]} : vector<2x49xf32> to vector<2x1xf32>
    %1335 = vector.broadcast %1334 : vector<2x1xf32> to vector<2x64xf32>
    %1336 = arith.mulf %1333, %1335 : vector<2x64xf32>
    %1337 = arith.addf %1307, %1336 : vector<2x64xf32>
    %1338 = vector.extract_strided_slice %76 {offsets = [0, 21], sizes = [2, 43], strides = [1, 1]} : vector<2x64xf32> to vector<2x43xf32>
    %1339 = vector.extract_strided_slice %76 {offsets = [0, 0], sizes = [2, 21], strides = [1, 1]} : vector<2x64xf32> to vector<2x21xf32>
    %1340 = tpu.concatenate %1338, %1339 in 1 : vector<2x43xf32>, vector<2x21xf32> -> vector<2x64xf32>
    %cst_418 = arith.constant 3.000000e+00 : f32
    %1341 = vector.broadcast %cst_418 : f32 to vector<1x64xf32>
    %1342 = arith.addf %78, %1341 : vector<1x64xf32>
    %cst_419 = arith.constant 0.000000e+00 : f32
    %1343 = vector.broadcast %cst_419 : f32 to vector<1x64xf32>
    %1344 = arith.cmpf oge, %1342, %1343 : vector<1x64xf32>
    %cst_420 = arith.constant 3.000000e+00 : f32
    %1345 = vector.broadcast %cst_420 : f32 to vector<1x64xf32>
    %1346 = arith.addf %78, %1345 : vector<1x64xf32>
    %cst_421 = arith.constant 7.000000e+00 : f32
    %1347 = vector.broadcast %cst_421 : f32 to vector<1x64xf32>
    %1348 = arith.cmpf ole, %1346, %1347 : vector<1x64xf32>
    %1349 = arith.andi %1344, %1348 : vector<1x64xi1>
    %cst_422 = arith.constant -3.000000e+00 : f32
    %1350 = vector.broadcast %cst_422 : f32 to vector<1x64xf32>
    %1351 = arith.addf %79, %1350 : vector<1x64xf32>
    %cst_423 = arith.constant 0.000000e+00 : f32
    %1352 = vector.broadcast %cst_423 : f32 to vector<1x64xf32>
    %1353 = arith.cmpf oge, %1351, %1352 : vector<1x64xf32>
    %1354 = arith.andi %1349, %1353 : vector<1x64xi1>
    %cst_424 = arith.constant -3.000000e+00 : f32
    %1355 = vector.broadcast %cst_424 : f32 to vector<1x64xf32>
    %1356 = arith.addf %79, %1355 : vector<1x64xf32>
    %cst_425 = arith.constant 7.000000e+00 : f32
    %1357 = vector.broadcast %cst_425 : f32 to vector<1x64xf32>
    %1358 = arith.cmpf ole, %1356, %1357 : vector<1x64xf32>
    %1359 = arith.andi %1354, %1358 : vector<1x64xi1>
    %cst_426 = arith.constant 0.000000e+00 : f32
    %1360 = vector.shape_cast %1359 : vector<1x64xi1> to vector<1x64xi1>
    %1361 = vector.broadcast %1360 : vector<1x64xi1> to vector<2x64xi1>
    %1362 = vector.broadcast %cst_426 : f32 to vector<2x64xf32>
    %1363 = arith.select %1361, %1340, %1362 : vector<2x64xi1>, vector<2x64xf32>
    %1364 = vector.extract_strided_slice %77 {offsets = [0, 42], sizes = [2, 1], strides = [1, 1]} : vector<2x49xf32> to vector<2x1xf32>
    %1365 = vector.broadcast %1364 : vector<2x1xf32> to vector<2x64xf32>
    %1366 = arith.mulf %1363, %1365 : vector<2x64xf32>
    %1367 = arith.addf %1337, %1366 : vector<2x64xf32>
    %1368 = vector.extract_strided_slice %76 {offsets = [0, 22], sizes = [2, 42], strides = [1, 1]} : vector<2x64xf32> to vector<2x42xf32>
    %1369 = vector.extract_strided_slice %76 {offsets = [0, 0], sizes = [2, 22], strides = [1, 1]} : vector<2x64xf32> to vector<2x22xf32>
    %1370 = tpu.concatenate %1368, %1369 in 1 : vector<2x42xf32>, vector<2x22xf32> -> vector<2x64xf32>
    %cst_427 = arith.constant 3.000000e+00 : f32
    %1371 = vector.broadcast %cst_427 : f32 to vector<1x64xf32>
    %1372 = arith.addf %78, %1371 : vector<1x64xf32>
    %cst_428 = arith.constant 0.000000e+00 : f32
    %1373 = vector.broadcast %cst_428 : f32 to vector<1x64xf32>
    %1374 = arith.cmpf oge, %1372, %1373 : vector<1x64xf32>
    %cst_429 = arith.constant 3.000000e+00 : f32
    %1375 = vector.broadcast %cst_429 : f32 to vector<1x64xf32>
    %1376 = arith.addf %78, %1375 : vector<1x64xf32>
    %cst_430 = arith.constant 7.000000e+00 : f32
    %1377 = vector.broadcast %cst_430 : f32 to vector<1x64xf32>
    %1378 = arith.cmpf ole, %1376, %1377 : vector<1x64xf32>
    %1379 = arith.andi %1374, %1378 : vector<1x64xi1>
    %cst_431 = arith.constant -2.000000e+00 : f32
    %1380 = vector.broadcast %cst_431 : f32 to vector<1x64xf32>
    %1381 = arith.addf %79, %1380 : vector<1x64xf32>
    %cst_432 = arith.constant 0.000000e+00 : f32
    %1382 = vector.broadcast %cst_432 : f32 to vector<1x64xf32>
    %1383 = arith.cmpf oge, %1381, %1382 : vector<1x64xf32>
    %1384 = arith.andi %1379, %1383 : vector<1x64xi1>
    %cst_433 = arith.constant -2.000000e+00 : f32
    %1385 = vector.broadcast %cst_433 : f32 to vector<1x64xf32>
    %1386 = arith.addf %79, %1385 : vector<1x64xf32>
    %cst_434 = arith.constant 7.000000e+00 : f32
    %1387 = vector.broadcast %cst_434 : f32 to vector<1x64xf32>
    %1388 = arith.cmpf ole, %1386, %1387 : vector<1x64xf32>
    %1389 = arith.andi %1384, %1388 : vector<1x64xi1>
    %cst_435 = arith.constant 0.000000e+00 : f32
    %1390 = vector.shape_cast %1389 : vector<1x64xi1> to vector<1x64xi1>
    %1391 = vector.broadcast %1390 : vector<1x64xi1> to vector<2x64xi1>
    %1392 = vector.broadcast %cst_435 : f32 to vector<2x64xf32>
    %1393 = arith.select %1391, %1370, %1392 : vector<2x64xi1>, vector<2x64xf32>
    %1394 = vector.extract_strided_slice %77 {offsets = [0, 43], sizes = [2, 1], strides = [1, 1]} : vector<2x49xf32> to vector<2x1xf32>
    %1395 = vector.broadcast %1394 : vector<2x1xf32> to vector<2x64xf32>
    %1396 = arith.mulf %1393, %1395 : vector<2x64xf32>
    %1397 = arith.addf %1367, %1396 : vector<2x64xf32>
    %1398 = vector.extract_strided_slice %76 {offsets = [0, 23], sizes = [2, 41], strides = [1, 1]} : vector<2x64xf32> to vector<2x41xf32>
    %1399 = vector.extract_strided_slice %76 {offsets = [0, 0], sizes = [2, 23], strides = [1, 1]} : vector<2x64xf32> to vector<2x23xf32>
    %1400 = tpu.concatenate %1398, %1399 in 1 : vector<2x41xf32>, vector<2x23xf32> -> vector<2x64xf32>
    %cst_436 = arith.constant 3.000000e+00 : f32
    %1401 = vector.broadcast %cst_436 : f32 to vector<1x64xf32>
    %1402 = arith.addf %78, %1401 : vector<1x64xf32>
    %cst_437 = arith.constant 0.000000e+00 : f32
    %1403 = vector.broadcast %cst_437 : f32 to vector<1x64xf32>
    %1404 = arith.cmpf oge, %1402, %1403 : vector<1x64xf32>
    %cst_438 = arith.constant 3.000000e+00 : f32
    %1405 = vector.broadcast %cst_438 : f32 to vector<1x64xf32>
    %1406 = arith.addf %78, %1405 : vector<1x64xf32>
    %cst_439 = arith.constant 7.000000e+00 : f32
    %1407 = vector.broadcast %cst_439 : f32 to vector<1x64xf32>
    %1408 = arith.cmpf ole, %1406, %1407 : vector<1x64xf32>
    %1409 = arith.andi %1404, %1408 : vector<1x64xi1>
    %cst_440 = arith.constant -1.000000e+00 : f32
    %1410 = vector.broadcast %cst_440 : f32 to vector<1x64xf32>
    %1411 = arith.addf %79, %1410 : vector<1x64xf32>
    %cst_441 = arith.constant 0.000000e+00 : f32
    %1412 = vector.broadcast %cst_441 : f32 to vector<1x64xf32>
    %1413 = arith.cmpf oge, %1411, %1412 : vector<1x64xf32>
    %1414 = arith.andi %1409, %1413 : vector<1x64xi1>
    %cst_442 = arith.constant -1.000000e+00 : f32
    %1415 = vector.broadcast %cst_442 : f32 to vector<1x64xf32>
    %1416 = arith.addf %79, %1415 : vector<1x64xf32>
    %cst_443 = arith.constant 7.000000e+00 : f32
    %1417 = vector.broadcast %cst_443 : f32 to vector<1x64xf32>
    %1418 = arith.cmpf ole, %1416, %1417 : vector<1x64xf32>
    %1419 = arith.andi %1414, %1418 : vector<1x64xi1>
    %cst_444 = arith.constant 0.000000e+00 : f32
    %1420 = vector.shape_cast %1419 : vector<1x64xi1> to vector<1x64xi1>
    %1421 = vector.broadcast %1420 : vector<1x64xi1> to vector<2x64xi1>
    %1422 = vector.broadcast %cst_444 : f32 to vector<2x64xf32>
    %1423 = arith.select %1421, %1400, %1422 : vector<2x64xi1>, vector<2x64xf32>
    %1424 = vector.extract_strided_slice %77 {offsets = [0, 44], sizes = [2, 1], strides = [1, 1]} : vector<2x49xf32> to vector<2x1xf32>
    %1425 = vector.broadcast %1424 : vector<2x1xf32> to vector<2x64xf32>
    %1426 = arith.mulf %1423, %1425 : vector<2x64xf32>
    %1427 = arith.addf %1397, %1426 : vector<2x64xf32>
    %1428 = vector.extract_strided_slice %76 {offsets = [0, 24], sizes = [2, 40], strides = [1, 1]} : vector<2x64xf32> to vector<2x40xf32>
    %1429 = vector.extract_strided_slice %76 {offsets = [0, 0], sizes = [2, 24], strides = [1, 1]} : vector<2x64xf32> to vector<2x24xf32>
    %1430 = tpu.concatenate %1428, %1429 in 1 : vector<2x40xf32>, vector<2x24xf32> -> vector<2x64xf32>
    %cst_445 = arith.constant 3.000000e+00 : f32
    %1431 = vector.broadcast %cst_445 : f32 to vector<1x64xf32>
    %1432 = arith.addf %78, %1431 : vector<1x64xf32>
    %cst_446 = arith.constant 0.000000e+00 : f32
    %1433 = vector.broadcast %cst_446 : f32 to vector<1x64xf32>
    %1434 = arith.cmpf oge, %1432, %1433 : vector<1x64xf32>
    %cst_447 = arith.constant 3.000000e+00 : f32
    %1435 = vector.broadcast %cst_447 : f32 to vector<1x64xf32>
    %1436 = arith.addf %78, %1435 : vector<1x64xf32>
    %cst_448 = arith.constant 7.000000e+00 : f32
    %1437 = vector.broadcast %cst_448 : f32 to vector<1x64xf32>
    %1438 = arith.cmpf ole, %1436, %1437 : vector<1x64xf32>
    %1439 = arith.andi %1434, %1438 : vector<1x64xi1>
    %cst_449 = arith.constant 0.000000e+00 : f32
    %1440 = vector.broadcast %cst_449 : f32 to vector<1x64xf32>
    %1441 = arith.addf %79, %1440 : vector<1x64xf32>
    %cst_450 = arith.constant 0.000000e+00 : f32
    %1442 = vector.broadcast %cst_450 : f32 to vector<1x64xf32>
    %1443 = arith.cmpf oge, %1441, %1442 : vector<1x64xf32>
    %1444 = arith.andi %1439, %1443 : vector<1x64xi1>
    %cst_451 = arith.constant 0.000000e+00 : f32
    %1445 = vector.broadcast %cst_451 : f32 to vector<1x64xf32>
    %1446 = arith.addf %79, %1445 : vector<1x64xf32>
    %cst_452 = arith.constant 7.000000e+00 : f32
    %1447 = vector.broadcast %cst_452 : f32 to vector<1x64xf32>
    %1448 = arith.cmpf ole, %1446, %1447 : vector<1x64xf32>
    %1449 = arith.andi %1444, %1448 : vector<1x64xi1>
    %cst_453 = arith.constant 0.000000e+00 : f32
    %1450 = vector.shape_cast %1449 : vector<1x64xi1> to vector<1x64xi1>
    %1451 = vector.broadcast %1450 : vector<1x64xi1> to vector<2x64xi1>
    %1452 = vector.broadcast %cst_453 : f32 to vector<2x64xf32>
    %1453 = arith.select %1451, %1430, %1452 : vector<2x64xi1>, vector<2x64xf32>
    %1454 = vector.extract_strided_slice %77 {offsets = [0, 45], sizes = [2, 1], strides = [1, 1]} : vector<2x49xf32> to vector<2x1xf32>
    %1455 = vector.broadcast %1454 : vector<2x1xf32> to vector<2x64xf32>
    %1456 = arith.mulf %1453, %1455 : vector<2x64xf32>
    %1457 = arith.addf %1427, %1456 : vector<2x64xf32>
    %1458 = vector.extract_strided_slice %76 {offsets = [0, 25], sizes = [2, 39], strides = [1, 1]} : vector<2x64xf32> to vector<2x39xf32>
    %1459 = vector.extract_strided_slice %76 {offsets = [0, 0], sizes = [2, 25], strides = [1, 1]} : vector<2x64xf32> to vector<2x25xf32>
    %1460 = tpu.concatenate %1458, %1459 in 1 : vector<2x39xf32>, vector<2x25xf32> -> vector<2x64xf32>
    %cst_454 = arith.constant 3.000000e+00 : f32
    %1461 = vector.broadcast %cst_454 : f32 to vector<1x64xf32>
    %1462 = arith.addf %78, %1461 : vector<1x64xf32>
    %cst_455 = arith.constant 0.000000e+00 : f32
    %1463 = vector.broadcast %cst_455 : f32 to vector<1x64xf32>
    %1464 = arith.cmpf oge, %1462, %1463 : vector<1x64xf32>
    %cst_456 = arith.constant 3.000000e+00 : f32
    %1465 = vector.broadcast %cst_456 : f32 to vector<1x64xf32>
    %1466 = arith.addf %78, %1465 : vector<1x64xf32>
    %cst_457 = arith.constant 7.000000e+00 : f32
    %1467 = vector.broadcast %cst_457 : f32 to vector<1x64xf32>
    %1468 = arith.cmpf ole, %1466, %1467 : vector<1x64xf32>
    %1469 = arith.andi %1464, %1468 : vector<1x64xi1>
    %cst_458 = arith.constant 1.000000e+00 : f32
    %1470 = vector.broadcast %cst_458 : f32 to vector<1x64xf32>
    %1471 = arith.addf %79, %1470 : vector<1x64xf32>
    %cst_459 = arith.constant 0.000000e+00 : f32
    %1472 = vector.broadcast %cst_459 : f32 to vector<1x64xf32>
    %1473 = arith.cmpf oge, %1471, %1472 : vector<1x64xf32>
    %1474 = arith.andi %1469, %1473 : vector<1x64xi1>
    %cst_460 = arith.constant 1.000000e+00 : f32
    %1475 = vector.broadcast %cst_460 : f32 to vector<1x64xf32>
    %1476 = arith.addf %79, %1475 : vector<1x64xf32>
    %cst_461 = arith.constant 7.000000e+00 : f32
    %1477 = vector.broadcast %cst_461 : f32 to vector<1x64xf32>
    %1478 = arith.cmpf ole, %1476, %1477 : vector<1x64xf32>
    %1479 = arith.andi %1474, %1478 : vector<1x64xi1>
    %cst_462 = arith.constant 0.000000e+00 : f32
    %1480 = vector.shape_cast %1479 : vector<1x64xi1> to vector<1x64xi1>
    %1481 = vector.broadcast %1480 : vector<1x64xi1> to vector<2x64xi1>
    %1482 = vector.broadcast %cst_462 : f32 to vector<2x64xf32>
    %1483 = arith.select %1481, %1460, %1482 : vector<2x64xi1>, vector<2x64xf32>
    %1484 = vector.extract_strided_slice %77 {offsets = [0, 46], sizes = [2, 1], strides = [1, 1]} : vector<2x49xf32> to vector<2x1xf32>
    %1485 = vector.broadcast %1484 : vector<2x1xf32> to vector<2x64xf32>
    %1486 = arith.mulf %1483, %1485 : vector<2x64xf32>
    %1487 = arith.addf %1457, %1486 : vector<2x64xf32>
    %1488 = vector.extract_strided_slice %76 {offsets = [0, 26], sizes = [2, 38], strides = [1, 1]} : vector<2x64xf32> to vector<2x38xf32>
    %1489 = vector.extract_strided_slice %76 {offsets = [0, 0], sizes = [2, 26], strides = [1, 1]} : vector<2x64xf32> to vector<2x26xf32>
    %1490 = tpu.concatenate %1488, %1489 in 1 : vector<2x38xf32>, vector<2x26xf32> -> vector<2x64xf32>
    %cst_463 = arith.constant 3.000000e+00 : f32
    %1491 = vector.broadcast %cst_463 : f32 to vector<1x64xf32>
    %1492 = arith.addf %78, %1491 : vector<1x64xf32>
    %cst_464 = arith.constant 0.000000e+00 : f32
    %1493 = vector.broadcast %cst_464 : f32 to vector<1x64xf32>
    %1494 = arith.cmpf oge, %1492, %1493 : vector<1x64xf32>
    %cst_465 = arith.constant 3.000000e+00 : f32
    %1495 = vector.broadcast %cst_465 : f32 to vector<1x64xf32>
    %1496 = arith.addf %78, %1495 : vector<1x64xf32>
    %cst_466 = arith.constant 7.000000e+00 : f32
    %1497 = vector.broadcast %cst_466 : f32 to vector<1x64xf32>
    %1498 = arith.cmpf ole, %1496, %1497 : vector<1x64xf32>
    %1499 = arith.andi %1494, %1498 : vector<1x64xi1>
    %cst_467 = arith.constant 2.000000e+00 : f32
    %1500 = vector.broadcast %cst_467 : f32 to vector<1x64xf32>
    %1501 = arith.addf %79, %1500 : vector<1x64xf32>
    %cst_468 = arith.constant 0.000000e+00 : f32
    %1502 = vector.broadcast %cst_468 : f32 to vector<1x64xf32>
    %1503 = arith.cmpf oge, %1501, %1502 : vector<1x64xf32>
    %1504 = arith.andi %1499, %1503 : vector<1x64xi1>
    %cst_469 = arith.constant 2.000000e+00 : f32
    %1505 = vector.broadcast %cst_469 : f32 to vector<1x64xf32>
    %1506 = arith.addf %79, %1505 : vector<1x64xf32>
    %cst_470 = arith.constant 7.000000e+00 : f32
    %1507 = vector.broadcast %cst_470 : f32 to vector<1x64xf32>
    %1508 = arith.cmpf ole, %1506, %1507 : vector<1x64xf32>
    %1509 = arith.andi %1504, %1508 : vector<1x64xi1>
    %cst_471 = arith.constant 0.000000e+00 : f32
    %1510 = vector.shape_cast %1509 : vector<1x64xi1> to vector<1x64xi1>
    %1511 = vector.broadcast %1510 : vector<1x64xi1> to vector<2x64xi1>
    %1512 = vector.broadcast %cst_471 : f32 to vector<2x64xf32>
    %1513 = arith.select %1511, %1490, %1512 : vector<2x64xi1>, vector<2x64xf32>
    %1514 = vector.extract_strided_slice %77 {offsets = [0, 47], sizes = [2, 1], strides = [1, 1]} : vector<2x49xf32> to vector<2x1xf32>
    %1515 = vector.broadcast %1514 : vector<2x1xf32> to vector<2x64xf32>
    %1516 = arith.mulf %1513, %1515 : vector<2x64xf32>
    %1517 = arith.addf %1487, %1516 : vector<2x64xf32>
    %1518 = vector.extract_strided_slice %76 {offsets = [0, 27], sizes = [2, 37], strides = [1, 1]} : vector<2x64xf32> to vector<2x37xf32>
    %1519 = vector.extract_strided_slice %76 {offsets = [0, 0], sizes = [2, 27], strides = [1, 1]} : vector<2x64xf32> to vector<2x27xf32>
    %1520 = tpu.concatenate %1518, %1519 in 1 : vector<2x37xf32>, vector<2x27xf32> -> vector<2x64xf32>
    %cst_472 = arith.constant 3.000000e+00 : f32
    %1521 = vector.broadcast %cst_472 : f32 to vector<1x64xf32>
    %1522 = arith.addf %78, %1521 : vector<1x64xf32>
    %cst_473 = arith.constant 0.000000e+00 : f32
    %1523 = vector.broadcast %cst_473 : f32 to vector<1x64xf32>
    %1524 = arith.cmpf oge, %1522, %1523 : vector<1x64xf32>
    %cst_474 = arith.constant 3.000000e+00 : f32
    %1525 = vector.broadcast %cst_474 : f32 to vector<1x64xf32>
    %1526 = arith.addf %78, %1525 : vector<1x64xf32>
    %cst_475 = arith.constant 7.000000e+00 : f32
    %1527 = vector.broadcast %cst_475 : f32 to vector<1x64xf32>
    %1528 = arith.cmpf ole, %1526, %1527 : vector<1x64xf32>
    %1529 = arith.andi %1524, %1528 : vector<1x64xi1>
    %cst_476 = arith.constant 3.000000e+00 : f32
    %1530 = vector.broadcast %cst_476 : f32 to vector<1x64xf32>
    %1531 = arith.addf %79, %1530 : vector<1x64xf32>
    %cst_477 = arith.constant 0.000000e+00 : f32
    %1532 = vector.broadcast %cst_477 : f32 to vector<1x64xf32>
    %1533 = arith.cmpf oge, %1531, %1532 : vector<1x64xf32>
    %1534 = arith.andi %1529, %1533 : vector<1x64xi1>
    %cst_478 = arith.constant 3.000000e+00 : f32
    %1535 = vector.broadcast %cst_478 : f32 to vector<1x64xf32>
    %1536 = arith.addf %79, %1535 : vector<1x64xf32>
    %cst_479 = arith.constant 7.000000e+00 : f32
    %1537 = vector.broadcast %cst_479 : f32 to vector<1x64xf32>
    %1538 = arith.cmpf ole, %1536, %1537 : vector<1x64xf32>
    %1539 = arith.andi %1534, %1538 : vector<1x64xi1>
    %cst_480 = arith.constant 0.000000e+00 : f32
    %1540 = vector.shape_cast %1539 : vector<1x64xi1> to vector<1x64xi1>
    %1541 = vector.broadcast %1540 : vector<1x64xi1> to vector<2x64xi1>
    %1542 = vector.broadcast %cst_480 : f32 to vector<2x64xf32>
    %1543 = arith.select %1541, %1520, %1542 : vector<2x64xi1>, vector<2x64xf32>
    %1544 = vector.extract_strided_slice %77 {offsets = [0, 48], sizes = [2, 1], strides = [1, 1]} : vector<2x49xf32> to vector<2x1xf32>
    %1545 = vector.broadcast %1544 : vector<2x1xf32> to vector<2x64xf32>
    %1546 = arith.mulf %1543, %1545 : vector<2x64xf32>
    %1547 = arith.addf %1517, %1546 : vector<2x64xf32>
    %1548 = vector.extract_strided_slice %1547 {offsets = [0, 0], sizes = [1, 64], strides = [1, 1]} : vector<2x64xf32> to vector<1x64xf32>
    %1549 = vector.extract_strided_slice %1547 {offsets = [1, 0], sizes = [1, 64], strides = [1, 1]} : vector<2x64xf32> to vector<1x64xf32>
    %1550 = arith.addf %1548, %1549 : vector<1x64xf32>
    %cst_481 = arith.constant 0.000000e+00 : f32
    %1551 = vector.broadcast %cst_481 : f32 to vector<1x64xf32>
    %1552 = arith.subf %1551, %1550 : vector<1x64xf32>
    %1553 = math.exp %1552 : vector<1x64xf32>
    %cst_482 = arith.constant 1.000000e+00 : f32
    %1554 = vector.broadcast %cst_482 : f32 to vector<1x64xf32>
    %1555 = arith.addf %1554, %1553 : vector<1x64xf32>
    %1556 = tpu.reciprocal %1555 : vector<1x64xf32> -> vector<1x64xf32>
    %1557 = vector.broadcast %1556 : vector<1x64xf32> to vector<8x64xf32>
    %1558 = arith.mulf %69, %1557 : vector<8x64xf32>
    %c0_483 = arith.constant 0 : index
    %c0_484 = arith.constant 0 : index
    %c0_485 = arith.constant 0 : index
    %1559 = vector.load %arg10[%c0_483, %c0_484, %c0_485] : memref<1x8x64xf32, #tpu.memory_space<vmem>>, vector<1x8x64xf32>
    %1560 = vector.shape_cast %1559 : vector<1x8x64xf32> to vector<8x64xf32>
    %1561 = vector.shape_cast %1558 : vector<8x64xf32> to vector<1x8x64xf32>
    tpu.vector_store %arg10[%c0_483, %c0_484, %c0_485], %1561 {strides = array<i32>} : memref<1x8x64xf32, #tpu.memory_space<vmem>>, vector<1x8x64xf32>,
    return
  }
  func.func @transform_0(%arg0: i32) -> (i32, i32, i32) {
    %c0_i32 = arith.constant 0 : i32
    %c0_i32_0 = arith.constant 0 : i32
    %c0_i32_1 = arith.constant 0 : i32
    return %arg0, %c0_i32, %c0_i32_0 : i32, i32, i32
  }
  func.func @transform_1(%arg0: i32) -> (i32, i32) {
    %c0_i32 = arith.constant 0 : i32
    %c0_i32_0 = arith.constant 0 : i32
    %c0_i32_1 = arith.constant 0 : i32
    return %c0_i32, %c0_i32_0 : i32, i32
  }
  func.func @transform_2(%arg0: i32) -> (i32, i32) {
    %c0_i32 = arith.constant 0 : i32
    %c0_i32_0 = arith.constant 0 : i32
    %c0_i32_1 = arith.constant 0 : i32
    return %c0_i32, %c0_i32_0 : i32, i32
  }
  func.func @transform_3(%arg0: i32) -> (i32, i32) {
    %c0_i32 = arith.constant 0 : i32
    %c0_i32_0 = arith.constant 0 : i32
    %c0_i32_1 = arith.constant 0 : i32
    return %c0_i32, %c0_i32_0 : i32, i32
  }
  func.func @transform_4(%arg0: i32) -> (i32, i32) {
    %c0_i32 = arith.constant 0 : i32
    %c0_i32_0 = arith.constant 0 : i32
    %c0_i32_1 = arith.constant 0 : i32
    return %c0_i32, %c0_i32_0 : i32, i32
  }
  func.func @transform_5(%arg0: i32) -> (i32, i32) {
    %c0_i32 = arith.constant 0 : i32
    %c0_i32_0 = arith.constant 0 : i32
    %c0_i32_1 = arith.constant 0 : i32
    return %c0_i32, %c0_i32_0 : i32, i32
  }
  func.func @transform_6(%arg0: i32) -> (i32, i32) {
    %c0_i32 = arith.constant 0 : i32
    %c0_i32_0 = arith.constant 0 : i32
    %c0_i32_1 = arith.constant 0 : i32
    return %c0_i32, %c0_i32_0 : i32, i32
  }
  func.func @transform_7(%arg0: i32) -> (i32, i32) {
    %c0_i32 = arith.constant 0 : i32
    %c0_i32_0 = arith.constant 0 : i32
    %c0_i32_1 = arith.constant 0 : i32
    return %c0_i32, %c0_i32_0 : i32, i32
  }
  func.func @transform_8(%arg0: i32) -> (i32, i32) {
    %c0_i32 = arith.constant 0 : i32
    %c0_i32_0 = arith.constant 0 : i32
    %c0_i32_1 = arith.constant 0 : i32
    return %c0_i32, %c0_i32_0 : i32, i32
  }
  func.func @transform_9(%arg0: i32) -> (i32, i32, i32) {
    %c0_i32 = arith.constant 0 : i32
    %c0_i32_0 = arith.constant 0 : i32
    %c0_i32_1 = arith.constant 0 : i32
    return %arg0, %c0_i32, %c0_i32_0 : i32, i32, i32
  }
}

</mosaic_0001>

<bundles_post_ra>
// kernel: transition_forward.1
= control target key start
LH: loop header
LB: loop body
LE: loop exit
PB: predicated region body
PF: predicated region fallthrough
CT: control target
= control target key end

     0   :  { %s3090_s30 = smov 0   ;;  %s4587_s0 = inlined_call_operand.vmem [shape: f32[2,4,256], index: 0, kind: input, shape index: {}]   ;;  %s4588_s1 = inlined_call_operand.vmem [shape: f32[4,1], index: 1, kind: input, shape index: {}]   ;;  %s4589_s2 = inlined_call_operand.vmem [shape: f32[4,1], index: 2, kind: input, shape index: {}]   ;;  %s4590_s3 = inlined_call_operand.vmem [shape: f32[8,4], index: 3, kind: input, shape index: {}]   ;;  %s4591_s4 = inlined_call_operand.vmem [shape: f32[16,8], index: 4, kind: input, shape index: {}]   ;;  %s4592_s5 = inlined_call_operand.vmem [shape: f32[4,8], index: 5, kind: input, shape index: {}]   ;;  %s4593_s6 = inlined_call_operand.vmem [shape: f32[8,4], index: 6, kind: input, shape index: {}]   ;;  %s4594_s7 = inlined_call_operand.vmem [shape: f32[2,49], index: 7, kind: input, shape index: {}]   ;;  %s4595_s8 = inlined_call_operand.vmem [shape: f32[2,64], index: 8, kind: input, shape index: {}]   ;;  %s4596_s9 = inlined_call_operand.vmem [shape: f32[2,8,64], index: 9, kind: output, shape index: {}]  }
   0x1 LB: > { %s2537_s10 = sadd.s32 4294967295, %s2887_s30   ;;  %p2541_p0 = scmp.ge.s32.totalorder %s2887_s30, 1  ;;  %s2887_s30 = sphi %s3090_s30, %s19_s30  }
   0x2   : > { %p287_p1 = scmp.lt.s32.totalorder %s2887_s30, 3 }
   0x4   : > { %p288_p2 = pnand %p2541_p0, %p287_p1 }
   0x6   : > { %291 = sbr.rel (%p288_p2) target bundleno = 2243 (0x8c3), region = 56 }
   0xb   : > { %v332_v0 = vld [vmem:[%s4588_s1] sm:$0xf]  ;;  %v4597_v1 = vmov 0   ;;  %v3109_v3 = vld [vmem:[%s4591_s4 + $0x8] sm:$0xff]  ;;  %v2890_v4 = vmov 0.0   ;;  %p322_p3 = scmp.lt.s32.totalorder %s2537_s10, 1  ;;  %v340_v7 = vlaneseq }
   0xc   : > { %2821 = vset.pattern.permute.xlu0 %v4597_v1  ;;  %2822 = vset.pattern.permute.xlu1 %v4597_v1  ;;  %v346_v2 = vld [vmem:[%s4589_s2] sm:$0xf]  ;;  %v2891_v5 = vmov 839922192   ;;  %vm2892_vm0 = vmmov 0   ;;  %s2893_s23 = smov 96  }
   0xd   : > { %335 = vperm.xlu0 %2821, %v332_v0   ;;  %2591 = vmatprep.subr.mxu0 %v2890_v4  ;;  %v338_v6 = vunpack.c.l.s4 %v2891_v5  ;;  %s4935_s10 = smov (!%p322_p3, %s2537_s10), 1  ;;  %v3119_v9 = vshrl.u32 %v340_v7, 7  ;;  %v3126_v11 = vld [vmem:[%s4591_s4] sm:$0xff]  ;;  %s2894_s24 = smov 112   ;;  %vm4606_vm1 = vcmask 130048   ;;  %vm4605_vm2 = vcmask 64512  }
   0xe   : > { %2598 = vmatprep.subr.mxu1 %v2890_v4  ;;  %2592 = vmatpush3.msra.mxu0 %v3109_v3  ;;  %s2560_s17 = sshll.u32 %s4935_s10, 3  ;;  %s2895_s25 = smov 80   ;;  %vm4607_vm3 = vcmask 195584   ;;  %vm1021_vm4 = vcmask 261120   ;;  %vm4601_vm5 = vcmask 326656   ;;  %vm4602_vm6 = vcmask 392192  }
   0xf   : > { %2599 = vmatpush3.msra.mxu1 %v3109_v3  ;;  %2593 = vmatprep.subr.mxu0 %v2890_v4  ;;  %v339_v8 = vunpack.c.0.s8 %v338_v6  ;;  %s326_s22 = scalar_lea.vmem %s4587_s0, %s2560_s17  ;;  %s2896_s26 = smov 64   ;;  %vm4603_vm7 = vcmask 457728   ;;  %vm1034_vm8 = vcmask 1043456   ;;  %vm1030_vm9 = vcmask 31744  }
  0x10   : > { %2600 = vmatprep.subr.mxu1 %v2890_v4  ;;  %2594 = vmatpush3.msra.mxu0 %v3126_v11  ;;  %v331_v14 = vld [vmem:[%s326_s22] sm:$0xff]  ;;  %s2897_s27 = smov 48   ;;  %s2898_s28 = smov 32   ;;  %vm4600_vm10 = vcmask 523264   ;;  %vm4604_vm11 = vcmask 7168   ;;  %vm1301_vm12 = vcmask 1040384  }
  0x11   : > { %349 = vperm.xlu0 %2821, %v346_v2   ;;  %v342_v10 = vsub.s32 %v339_v8, %v3119_v9  ;;  %2595 = vmatprep.mubr.msk.f32.mxu0 %vm2892_vm0, %v2890_v4  ;;  %s2899_s29 = smov 16   ;;  %s2900_s11 = smov 8  }
  0x12   : > { %2605 = vmatprep.subr.mxu0 %v2890_v4  ;;  %2601 = vmatpush3.msra.mxu1 %v3126_v11  ;;  %s2901_s12 = smov 24   ;;  %s2902_s13 = smov 40  }
  0x13   : > { %2602 = vmatprep.mubr.msk.f32.mxu1 %vm2892_vm0, %v2890_v4  ;;  %2612 = vmatprep.subr.mxu1 %v2890_v4  ;;  %s2903_s14 = smov 56   ;;  %s2945_s15 = smov 91  }
  0x14   : > { %s2946_s16 = smov 90   ;;  %s2947_s18 = smov 26  }
  0x15   : > { %s2948_s19 = smov 89   ;;  %s2950_s20 = smov 25  }
  0x16   : > { %s2951_s21 = smov 88   ;;  %s2954_s22 = smov 87  }
  0x88   : > { %v336_v12 = vpop.permute.xlu0 %335 }
  0x89   : > { %v343_v13 = vrot.slane %v336_v12, %v342_v10 }
  0x8b   : > { %v345_v16 = vmul.f32 %v343_v13, %v331_v14 }
  0x8c   : > { %v350_v15 = vpop.permute.xlu0 %349 }
  0x8d   : > { %v357_v17 = vrot.slane %v350_v15, %v342_v10 }
  0x8f   : > { %v359_v18 = vadd.f32 %v357_v17, %v345_v16 }
  0x91   : > { %v360_v19 = vmax.f32 %v359_v18, 0.0 }
  0x93   : > { %742 = vrot.lane.b32.xlu0 %v360_v19, %s2893_s23  ;;  %364 = vrot.lane.b32.xlu1 %v360_v19, %s2894_s24  ;;  %v664_v27 = vrot.slane %v360_v19, 4 }
  0x97   : > { %746 = vrot.lane.b32.xlu1 %v360_v19, %s2895_s25 }
 0x105   : > { %v365_v20 = vpop.permute.xlu1 %364  ;;  %v743_v22 = vpop.permute.xlu0 %742 }
 0x106   : > { %v367_v21 = vadd.f32 %v365_v20, %v360_v19  ;;  %v666_v24 = vrot.slane %v365_v20, 4  ;;  %v744_v36 = vrot.slane %v743_v22, 4  ;;  %v2904_v22 = vmov 1  }
 0x107   : > { %2823 = vset.pattern.permute.xlu0 %v2904_v22 }
 0x108   : > { %516 = vrot.lane.b32.xlu0 %v367_v21, %s2896_s26  ;;  %442 = vrot.lane.b32.xlu1 %v367_v21, %s2893_s23  ;;  %v668_v28 = vadd.f32 %v666_v24, %v664_v27  ;;  %v2906_v24 = vmov 3   ;;  %v2909_v27 = vmov 6   ;;  %s2956_s23 = smov 23  }
 0x109   : > { %2596 = vmatmul.mubr.msk.f32.vlgmr.msra.gmra.mxu0 %vm4606_vm1, %v367_v21  ;;  %v747_v23 = vpop.permute.xlu1 %746 }
 0x10a   : > { %2606 = vmatpush3.msra.mxu0 %v3109_v3  ;;  %2609 = vmatprep.mubr.msk.f32.mxu0 %vm2892_vm0, %v2890_v4  ;;  %v748_v33 = vrot.slane %v747_v23, 4  ;;  %v2905_v23 = vmov 2  }
 0x10b   : > { %2607 = vmatprep.subr.mxu0 %v2890_v4 }
 0x10c   : > { %824 = vrot.lane.b32.xlu0 %v360_v19, %s2896_s26  ;;  %828 = vrot.lane.b32.xlu1 %v360_v19, %s2897_s27  ;;  %v750_v38 = vadd.f32 %v748_v33, %v744_v36  ;;  %v2915_v33 = vmov 12   ;;  %s2917_s26 = smov 127  }
 0x10d   : > { %2608 = vmatpush3.msra.mxu0 %v3126_v11 }
 0x10e   : > { %2619 = vmatprep.subr.mxu0 %v2890_v4 }
 0x110   : > { %906 = vrot.lane.b32.xlu0 %v360_v19, %s2898_s28  ;;  %590 = vrot.lane.b32.xlu1 %v367_v21, %s2898_s28  ;;  %v3230_v21 = vld [vmem:[%s4594_s7] sm:$0x3] }
 0x114   : > { %910 = vrot.lane.b32.xlu1 %v360_v19, %s2899_s29 }
 0x17a   : > { %v517_v25 = vpop.permute.xlu0 %516  ;;  %v443_v26 = vpop.permute.xlu1 %442 }
 0x17b   : > { %2603 = vmatmul.mubr.msk.f32.vlgmr.msra.gmra.mxu1 %vm4606_vm1, %v443_v26  ;;  %2610 = vmatmul.mubr.msk.f32.vlgmr.msra.gmra.mxu0 %vm4606_vm1, %v517_v25  ;;  %v2907_v25 = vmov 4   ;;  %v2908_v26 = vmov 5  }
 0x17c   : > { %2620 = vmatpush3.msra.mxu0 %v3109_v3  ;;  %2623 = vmatprep.mubr.msk.f32.mxu0 %vm2892_vm0, %v2890_v4 }
 0x17d   : > { %2621 = vmatprep.subr.mxu0 %v2890_v4  ;;  %2613 = vmatpush3.msra.mxu1 %v3109_v3 }
 0x17e   : > { %v825_v29 = vpop.permute.xlu0 %824  ;;  %2622 = vmatpush3.msra.mxu0 %v3126_v11  ;;  %v829_v30 = vpop.permute.xlu1 %828  ;;  %2614 = vmatprep.subr.mxu1 %v2890_v4 }
 0x17f   : > { %v826_v31 = vrot.slane %v825_v29, 4  ;;  %v830_v32 = vrot.slane %v829_v30, 4  ;;  %2624 = vmatmul.mubr.msk.f32.vlgmr.msra.gmra.mxu0 %vm4606_vm1, %v668_v28  ;;  %2633 = vmatprep.subr.mxu0 %v2890_v4  ;;  %v2910_v28 = vmov 7   ;;  %v2911_v29 = vmov 8  }
 0x180   : > { %2634 = vmatpush3.msra.mxu0 %v3109_v3  ;;  %2615 = vmatpush3.msra.mxu1 %v3126_v11  ;;  %v2912_v30 = vmov 9  }
 0x181   : > { %v832_v34 = vadd.f32 %v830_v32, %v826_v31  ;;  %2635 = vmatprep.subr.mxu0 %v2890_v4  ;;  %2616 = vmatprep.mubr.msk.f32.mxu1 %vm2892_vm0, %v2890_v4  ;;  %v2913_v31 = vmov 10   ;;  %v2914_v32 = vmov 11  }
 0x182   : > { %v591_v35 = vpop.permute.xlu1 %590  ;;  %2636 = vmatpush3.msra.mxu0 %v3126_v11  ;;  %2637 = vmatprep.mubr.msk.f32.mxu0 %vm2892_vm0, %v2890_v4  ;;  %v907_v37 = vpop.permute.xlu0 %906 }
 0x183   : > { %2617 = vmatmul.mubr.msk.f32.vlgmr.msra.gmra.mxu1 %vm4606_vm1, %v591_v35  ;;  %2626 = vmatprep.subr.mxu1 %v2890_v4  ;;  %v908_v40 = vrot.slane %v907_v37, 4  ;;  %v1193_v37 = vld [vmem:[%s4593_s6] sm:$0xff] }
 0x184   : > { %2638 = vmatmul.mubr.msk.f32.vlgmr.msra.gmra.mxu0 %vm4606_vm1, %v832_v34  ;;  %2627 = vmatpush3.msra.mxu1 %v3109_v3  ;;  %v2916_v34 = vmov 13  }
 0x185   : > { %2628 = vmatprep.subr.mxu1 %v2890_v4  ;;  %2630 = vmatprep.mubr.msk.f32.mxu1 %vm2892_vm0, %v2890_v4 }
 0x186   : > { %2629 = vmatpush3.msra.mxu1 %v3126_v11  ;;  %v911_v39 = vpop.permute.xlu1 %910  ;;  %2647 = vmatprep.subr.mxu0 %v2890_v4 }
 0x187   : > { %v912_v41 = vrot.slane %v911_v39, 4  ;;  %2631 = vmatmul.mubr.msk.f32.vlgmr.msra.gmra.mxu1 %vm4606_vm1, %v750_v38  ;;  %2640 = vmatprep.subr.mxu1 %v2890_v4 }
 0x188   : > { %2641 = vmatpush3.msra.mxu1 %v3109_v3  ;;  %2644 = vmatprep.mubr.msk.f32.mxu1 %vm2892_vm0, %v2890_v4 }
 0x189   : > { %v914_v42 = vadd.f32 %v912_v41, %v908_v40  ;;  %2642 = vmatprep.subr.mxu1 %v2890_v4  ;;  %2649 = vmatprep.mubr.msk.f32.mxu0 %vm2892_vm0, %v2890_v4  ;;  %v2918_v41 = vmov 24  }
 0x18a   : > { %2643 = vmatpush3.msra.mxu1 %v3126_v11  ;;  %v1029_v11 = vld [vmem:[%s4590_s3] sm:$0xff] }
 0x18b   : > { %2645 = vmatmul.mubr.msk.f32.vlgmr.msra.gmra.mxu1 %vm4606_vm1, %v914_v42  ;;  %2652 = vmatprep.subr.mxu1 %v2890_v4  ;;  %v2919_v42 = vmov 25  }
 0x18c   : > { %2654 = vmatprep.mubr.msk.f32.mxu1 %vm2892_vm0, %v2890_v4 }
 0x1c9   : > { %v438_v43 = vpop.f32.mrf.mxu0 }
 0x1cb   : > { %v2597_v44 = vpop.f32.mrf.mxu0 }
 0x1cc   : > { %v2921_v44 = vmov 33  }
 0x23b   : > { %v512_v45 = vpop.f32.mrf.mxu1  ;;  %v586_v46 = vpop.f32.mrf.mxu0 }
 0x23c   : > { %993 = vrot.lane.b32.xlu1 %v586_v46, %s2899_s29  ;;  %989 = vrot.lane.b32.xlu0 %v512_v45, %s2900_s11  ;;  %v2922_v45 = vmov 14   ;;  %v2923_v46 = vmov 15  }
 0x23d   : > { %v2604_v47 = vpop.f32.mrf.mxu1  ;;  %v2611_v48 = vpop.f32.mrf.mxu0 }
 0x23e   : > { %v2924_v47 = vmov 16  }
 0x23f   : > { %v738_v49 = vpop.f32.mrf.mxu0 }
 0x240   : > { %1001 = vrot.lane.b32.xlu1 %v738_v49, %s2898_s28  ;;  %v2925_v49 = vmov 17   ;;  %s2944_s28 = smov 27  }
 0x241   : > { %v2625_v50 = vpop.f32.mrf.mxu0 }
 0x243   : > { %v660_v51 = vpop.f32.mrf.mxu1 }
 0x244   : > { %v902_v52 = vpop.f32.mrf.mxu0  ;;  %997 = vrot.lane.b32.xlu0 %v660_v51, %s2901_s12  ;;  %v2926_v51 = vmov 18  }
 0x245   : > { %1009 = vrot.lane.b32.xlu1 %v902_v52, %s2897_s27  ;;  %v2618_v53 = vpop.f32.mrf.mxu1 }
 0x246   : > { %v2639_v54 = vpop.f32.mrf.mxu0  ;;  %v2927_v53 = vmov 19  }
 0x247   : > { %v820_v55 = vpop.f32.mrf.mxu1 }
 0x248   : > { %1005 = vrot.lane.b32.xlu0 %v820_v55, %s2902_s13  ;;  %v2928_v55 = vmov 20  }
 0x249   : > { %v2632_v56 = vpop.f32.mrf.mxu1 }
 0x24a   : > { %v2929_v56 = vmov 21  }
 0x24b   : > { %v984_v57 = vpop.f32.mrf.mxu1 }
 0x24c   : > { %1013 = vrot.lane.b32.xlu0 %v984_v57, %s2903_s14 }
 0x24d   : > { %v2646_v58 = vpop.f32.mrf.mxu1 }
 0x24e   : > { %v2930_v58 = vmov 22  }
 0x2ae   : > { %v990_v59 = vpop.permute.xlu0 %989  ;;  %v994_v60 = vpop.permute.xlu1 %993 }
 0x2af   : > { %v1017_v61 = vsel %vm4605_vm2, %v438_v43, %v990_v59  ;;  %v2920_v43 = vmov 31  }
 0x2b0   : > { %v1018_v62 = vsel %vm4606_vm1, %v1017_v61, %v994_v60  ;;  %v2931_v60 = vmov 23  }
 0x2b2   : > { %v1002_v0 = vpop.permute.xlu1 %1001 }
 0x2b6   : > { %v998_v63 = vpop.permute.xlu0 %997 }
 0x2b7   : > { %v1020_v2 = vsel %vm4607_vm3, %v1018_v62, %v998_v63  ;;  %v1010_v7 = vpop.permute.xlu1 %1009  ;;  %v2932_v62 = vmov 26  }
 0x2b8   : > { %v1022_v5 = vsel %vm1021_vm4, %v1020_v2, %v1002_v0  ;;  %v2933_v0 = vmov 27  }
 0x2ba   : > { %v1006_v3 = vpop.permute.xlu0 %1005 }
 0x2bb   : > { %v1024_v6 = vsel %vm4601_vm5, %v1022_v5, %v1006_v3  ;;  %v2934_v3 = vmov 28   ;;  %v2935_v5 = vmov 29  }
 0x2bc   : > { %v1026_v10 = vsel %vm4602_vm6, %v1024_v6, %v1010_v7  ;;  %v2936_v7 = vmov 30  }
 0x2be   : > { %v1014_v8 = vpop.permute.xlu0 %1013 }
 0x2bf   : > { %v1028_v12 = vsel %vm4603_vm7, %v1026_v10, %v1014_v8  ;;  %v2937_v10 = vmov 32  }
 0x2c0   : > { %2648 = vmatpush3.msk.msra.mxu0 %vm1034_vm8, %v1028_v12  ;;  %v2938_v12 = vmov 34  }
 0x2c1   : > { %2650 = vmatmul.mubr.msk.f32.vlgmr.msra.gmra.mxu0 %vm1030_vm9, %v1029_v11  ;;  %2657 = vmatprep.subr.mxu0 %v2890_v4 }
 0x2c2   : > { %2659 = vmatprep.mubr.msk.f32.mxu0 %vm2892_vm0, %v2890_v4  ;;  %v1118_v4 = vld [vmem:[%s4592_s5] sm:$0xf] }
 0x381   : > { %v3216_v13 = vpop.f32.mrf.mxu0 }
 0x382   : > { %v1113_v14 = vsel %vm4600_vm10, %v3216_v13, -inf  ;;  %v1109_v15 = vsel %vm4600_vm10, %v3216_v13, 0.0 }
 0x383   : > { %1114 = vmax.xlane.f32.xlu0 %v1113_v14  ;;  %1110 = vadd.xlane.f32.xlu1 %v1109_v15  ;;  %v2651_v16 = vpop.f32.mrf.mxu0  ;;  %v2939_v15 = vmov 35  }
 0x394   : > { %1333 = vperm.xlu1 %2822, %v3230_v21  }
 0x398   : > { %2846 = vset.pattern.permute.xlu1 %v2918_v41 }
 0x399   : > { %1359 = vperm.xlu0 %2823, %v3230_v21   ;;  %1903 = vperm.xlu1 %2846, %v3230_v21  }
 0x39d   : > { %2824 = vset.pattern.permute.xlu0 %v2905_v23  ;;  %2847 = vset.pattern.permute.xlu1 %v2919_v42 }
 0x39e   : > { %1385 = vperm.xlu0 %2824, %v3230_v21   ;;  %1926 = vperm.xlu1 %2847, %v3230_v21  }
 0x3a2   : > { %2825 = vset.pattern.permute.xlu0 %v2906_v24  ;;  %2853 = vset.pattern.permute.xlu1 %v2920_v43 }
 0x3a3   : > { %1410 = vperm.xlu0 %2825, %v3230_v21   ;;  %2067 = vperm.xlu1 %2853, %v3230_v21  }
 0x3a7   : > { %2826 = vset.pattern.permute.xlu0 %v2907_v25  ;;  %2855 = vset.pattern.permute.xlu1 %v2921_v44  ;;  %v2942_v25 = vmov 38  }
 0x3a8   : > { %1436 = vperm.xlu0 %2826, %v3230_v21   ;;  %2113 = vperm.xlu1 %2855, %v3230_v21  }
 0x3ac   : > { %2827 = vset.pattern.permute.xlu0 %v2908_v26  ;;  %2861 = vset.pattern.permute.xlu1 %v4597_v1  ;;  %v2943_v26 = vmov 39   ;;  %v3488_v1 = vld [vmem:[%s4595_s8] sm:$0x1] }
 0x3ad   : > { %1462 = vperm.xlu0 %2827, %v3230_v21  }
 0x3b1   : > { %2828 = vset.pattern.permute.xlu0 %v2909_v27 }
 0x3b2   : > { %1488 = vperm.xlu0 %2828, %v3230_v21  }
 0x3b6   : > { %2829 = vset.pattern.permute.xlu0 %v2910_v28 }
 0x3b7   : > { %1515 = vperm.xlu0 %2829, %v3230_v21  }
 0x3bb   : > { %2830 = vset.pattern.permute.xlu0 %v2911_v29 }
 0x3bc   : > { %1538 = vperm.xlu0 %2830, %v3230_v21  }
 0x3c0   : > { %2831 = vset.pattern.permute.xlu0 %v2912_v30 }
 0x3c1   : > { %1561 = vperm.xlu0 %2831, %v3230_v21  }
 0x3c5   : > { %2832 = vset.pattern.permute.xlu0 %v2913_v31 }
 0x3c6   : > { %1583 = vperm.xlu0 %2832, %v3230_v21  }
 0x3ca   : > { %2833 = vset.pattern.permute.xlu0 %v2914_v32 }
 0x3cb   : > { %1606 = vperm.xlu0 %2833, %v3230_v21  }
 0x3cf   : > { %2834 = vset.pattern.permute.xlu0 %v2915_v33 }
 0x3d0   : > { %1629 = vperm.xlu0 %2834, %v3230_v21  }
 0x3d4   : > { %2835 = vset.pattern.permute.xlu0 %v2916_v34 }
 0x3d5   : > { %1652 = vperm.xlu0 %2835, %v3230_v21  }
 0x3d9   : > { %2836 = vset.pattern.permute.xlu0 %v2922_v45 }
 0x40c   : > { %v1111_v17 = vpop.xlane.xlu1 %1110  ;;  %v1115_v19 = vpop.xlane.xlu0 %1114 }
 0x40d   : > { %v1112_v18 = vmul.f32 0.015625, %v1111_v17  ;;  %v2940_v17 = vmov 36  }
 0x40f   : > { %v1117_v20 = vsel %vm4604_vm11, %v1112_v18, %v1115_v19 }
 0x410   : > { %2653 = vmatpush3.msra.mxu1 %v1117_v20  ;;  %v2941_v20 = vmov 37   ;;  %v3308_v27 = vpop.permute.xlu1 %1333 }
 0x411   : > { %2655 = vmatmul.mubr.msk.f32.vlgmr.msra.gmra.mxu1 %vm4605_vm2, %v1118_v4 }
 0x414   : > { %v3263_v48 = vpop.permute.xlu0 %1359  ;;  %v3310_v28 = vpop.permute.xlu1 %1903 }
 0x415   : > { %4625 = vst [vmem:[#allocation5_spill] sm:$0xff] %v3310_v28 }
 0x419   : > { %v3266_v50 = vpop.permute.xlu0 %1385  ;;  %v3312_v29 = vpop.permute.xlu1 %1926 }
 0x41a   : > { %4626 = vst [vmem:[#allocation6_spill] sm:$0xff] %v3312_v29 }
 0x41e   : > { %v3269_v52 = vpop.permute.xlu0 %1410  ;;  %v3314_v30 = vpop.permute.xlu1 %2067 }
 0x41f   : > { %4627 = vst [vmem:[#allocation7_spill] sm:$0xff] %v3314_v30 }
 0x423   : > { %v3272_v54 = vpop.permute.xlu0 %1436  ;;  %v3316_v31 = vpop.permute.xlu1 %2113 }
 0x424   : > { %4628 = vst [vmem:[#allocation8_spill] sm:$0xff] %v3316_v31  ;;  %v3496_v31 = vld [vmem:[%s4595_s8 + $0x1] sm:$0x1] }
 0x425   : > { %v3547_v29 = vadd.f32 2.0, %v3496_v31  ;;  %vm4615_vm3 = vcmp.le.f32.partialorder %v3496_v31, 7.0 }
 0x428   : > { %v3275_v57 = vpop.permute.xlu0 %1462 }
 0x42d   : > { %v3279_v59 = vpop.permute.xlu0 %1488 }
 0x432   : > { %v3282_v61 = vpop.permute.xlu0 %1515 }
 0x437   : > { %v3285_v63 = vpop.permute.xlu0 %1538 }
 0x43c   : > { %v3288_v2 = vpop.permute.xlu0 %1561 }
 0x441   : > { %v3291_v6 = vpop.permute.xlu0 %1583 }
 0x446   : > { %v3295_v8 = vpop.permute.xlu0 %1606 }
 0x447   : > { %4622 = vst [vmem:[#allocation2_spill] sm:$0xff] %v3295_v8 }
 0x44b   : > { %v3298_v11 = vpop.permute.xlu0 %1629 }
 0x44c   : > { %4623 = vst [vmem:[#allocation3_spill] sm:$0xff] %v3298_v11 }
 0x450   : > { %v3301_v14 = vpop.permute.xlu0 %1652 }
 0x451   : > { %4624 = vst [vmem:[#allocation4_spill] sm:$0xff] %v3301_v14  ;;  %v3619_v14 = vsub.s32 0, %v3119_v9 }
 0x4d1   : > { %v1188_v35 = vpop.f32.mrf.mxu1 }
 0x4d2   : > { %v1192_v36 = vmax.f32 %v1188_v35, 0.0 }
 0x4d3   : > { %v2656_v38 = vpop.f32.mrf.mxu1 }
 0x4d4   : > { %2658 = vmatpush3.msk.msra.mxu0 %vm1034_vm8, %v1192_v36 }
 0x4d5   : > { %2660 = vmatmul.mubr.msk.f32.vlgmr.msra.gmra.mxu0 %vm1030_vm9, %v1193_v37 }
 0x595   : > { %v3251_v39 = vpop.f32.mrf.mxu0 }
 0x596   : > { %1271 = vrot.lane.b32.xlu0 %v3251_v39, %s2917_s26 }
 0x597   : > { %v2661_v40 = vpop.f32.mrf.mxu0 }
 0x59a   : > { %1679 = vperm.xlu0 %2836, %v3230_v21  }
 0x59e   : > { %2837 = vset.pattern.permute.xlu0 %v2923_v46 }
 0x59f   : > { %1702 = vperm.xlu0 %2837, %v3230_v21  }
 0x5a3   : > { %2838 = vset.pattern.permute.xlu0 %v2924_v47 }
 0x5a4   : > { %1725 = vperm.xlu0 %2838, %v3230_v21  }
 0x5a8   : > { %2839 = vset.pattern.permute.xlu0 %v2925_v49 }
 0x5a9   : > { %1747 = vperm.xlu0 %2839, %v3230_v21  }
 0x5ad   : > { %2840 = vset.pattern.permute.xlu0 %v2926_v51  ;;  %v2949_v51 = vmov 40  }
 0x5ae   : > { %1770 = vperm.xlu0 %2840, %v3230_v21  }
 0x5b2   : > { %2841 = vset.pattern.permute.xlu0 %v2927_v53  ;;  %v2952_v53 = vmov 41  }
 0x5b3   : > { %1793 = vperm.xlu0 %2841, %v3230_v21  }
 0x5b7   : > { %2842 = vset.pattern.permute.xlu0 %v2928_v55  ;;  %v2953_v55 = vmov 42  }
 0x5b8   : > { %1816 = vperm.xlu0 %2842, %v3230_v21  }
 0x5bc   : > { %2843 = vset.pattern.permute.xlu0 %v2929_v56  ;;  %v2955_v56 = vmov 43  }
 0x5bd   : > { %1843 = vperm.xlu0 %2843, %v3230_v21  }
 0x5c1   : > { %2844 = vset.pattern.permute.xlu0 %v2930_v58  ;;  %v2959_v58 = vmov 44  }
 0x5c2   : > { %1866 = vperm.xlu0 %2844, %v3230_v21  }
 0x5c6   : > { %2845 = vset.pattern.permute.xlu0 %v2931_v60  ;;  %v2965_v60 = vmov 45  }
 0x5c7   : > { %1888 = vperm.xlu0 %2845, %v3230_v21  }
 0x5cb   : > { %2848 = vset.pattern.permute.xlu0 %v2932_v62  ;;  %v2967_v62 = vmov 46  }
 0x5cc   : > { %1949 = vperm.xlu0 %2848, %v3230_v21  }
 0x5d0   : > { %2849 = vset.pattern.permute.xlu0 %v2933_v0  ;;  %v2970_v0 = vmov 47  }
 0x5d1   : > { %1972 = vperm.xlu0 %2849, %v3230_v21  }
 0x5d5   : > { %2850 = vset.pattern.permute.xlu0 %v2934_v3  ;;  %v2972_v3 = vmov 48  }
 0x5d6   : > { %1999 = vperm.xlu0 %2850, %v3230_v21  }
 0x5da   : > { %2851 = vset.pattern.permute.xlu0 %v2935_v5 }
 0x5db   : > { %2022 = vperm.xlu0 %2851, %v3230_v21  }
 0x5df   : > { %2852 = vset.pattern.permute.xlu0 %v2936_v7 }
 0x5e0   : > { %2045 = vperm.xlu0 %2852, %v3230_v21  }
 0x5e4   : > { %2854 = vset.pattern.permute.xlu0 %v2937_v10 }
 0x5e5   : > { %2090 = vperm.xlu0 %2854, %v3230_v21  }
 0x5e9   : > { %2856 = vset.pattern.permute.xlu0 %v2938_v12 }
 0x5ea   : > { %2136 = vperm.xlu0 %2856, %v3230_v21  }
 0x5ee   : > { %2857 = vset.pattern.permute.xlu0 %v2939_v15 }
 0x5ef   : > { %2163 = vperm.xlu0 %2857, %v3230_v21  }
 0x5f3   : > { %2858 = vset.pattern.permute.xlu0 %v2940_v17 }
 0x5f4   : > { %2186 = vperm.xlu0 %2858, %v3230_v21  }
 0x5f8   : > { %2859 = vset.pattern.permute.xlu0 %v2941_v20 }
 0x5f9   : > { %2209 = vperm.xlu0 %2859, %v3230_v21  }
 0x5fd   : > { %2860 = vset.pattern.permute.xlu0 %v2942_v25 }
 0x5fe   : > { %2231 = vperm.xlu0 %2860, %v3230_v21  }
 0x602   : > { %2862 = vset.pattern.permute.xlu0 %v2943_v26 }
 0x608   : > { %v1272_v16 = vpop.permute.xlu0 %1271 }
 0x609   : > { %v1274_v18 = vadd.f32 %v1272_v16, %v3251_v39 }
 0x60b   : > { %v1275_v19 = vsub.f32 0.0, %v1274_v18 }
 0x60d   : > { %v1276_v4 = vmul.f32 1.442695, %v1275_v19 }
 0x60f   : > { %2872 = vpow2.f32 %v1276_v4 }
 0x61c   : > { %v2873_v22 = vpop.eup %2872 }
 0x61d   : > { %v1278_v23 = vadd.f32 1.0, %v2873_v22 }
 0x61f   : > { %2874 = vrcp.f32 %v1278_v23 }
 0x62c   : > { %v2875_v24 = vpop.eup %2874 }
 0x62d   : > { %1282 = vperm.xlu1 %2861, %v2875_v24  }
 0x6a8   : > { %v1283_v32 = vpop.permute.xlu1 %1282 }
 0x6a9   : > { %v3319_v33 = vmul.f32 %v1283_v32, %v3216_v13 }
 0x6ab   : > { %4629 = vst [vmem:[#allocation9_spill] sm:$0xff] %v3319_v33  ;;  %v1286_v34 = vsel %vm4600_vm10, %v3319_v33, 0.0  ;;  %v1294_v35 = vsel %vm4600_vm10, %v3319_v33, -inf  ;;  %v1315_v33 = vadd.f32 -3.0, %v3488_v1 }
 0x6ac   : > { %v1287_v36 = vrot.slane %v1286_v34, 4  ;;  %v1295_v37 = vrot.slane %v1294_v35, 4 }
 0x6ad   : > { %vm1316_vm13 = vcmp.ge.f32.partialorder %v1315_v33, 0.0  ;;  %vm1317_vm14 = vcmp.le.f32.partialorder %v1315_v33, 7.0 }
 0x6ae   : > { %v1288_v38 = vadd.f32 %v1287_v36, %v1286_v34  ;;  %v1296_v39 = vmax.f32 %v1294_v35, %v1295_v37  ;;  %vm3510_vm15 = vmand %vm1316_vm13, %vm1317_vm14 }
 0x6b0   : > { %v1289_v40 = vrot.slane %v1288_v38, 2  ;;  %v1297_v41 = vrot.slane %v1296_v39, 2 }
 0x6b2   : > { %v1290_v42 = vadd.f32 %v1289_v40, %v1288_v38  ;;  %v1298_v43 = vmax.f32 %v1296_v39, %v1297_v41 }
 0x6b4   : > { %v1291_v44 = vrot.slane %v1290_v42, 1  ;;  %v1299_v45 = vrot.slane %v1298_v43, 1 }
 0x6b6   : > { %v1292_v46 = vadd.f32 %v1291_v44, %v1290_v42  ;;  %v1300_v47 = vmax.f32 %v1298_v43, %v1299_v45 }
 0x6b8   : > { %v1293_v13 = vmul.f32 0.125, %v1292_v46 }
 0x6ba   : > { %v3325_v49 = vsel %vm1301_vm12, %v1293_v13, %v1300_v47 }
 0x6bb   : > { %1310 = vrot.lane.b32.xlu0 %v3325_v49, %s2944_s28  ;;  %1307 = vrot.lane.b32.xlu1 %v3325_v49, %s2945_s15  ;;  %s2957_s28 = smov 63   ;;  %s2958_s15 = smov 86  }
 0x6bf   : > { %1338 = vrot.lane.b32.xlu0 %v3325_v49, %s2946_s16  ;;  %1341 = vrot.lane.b32.xlu1 %v3325_v49, %s2947_s18  ;;  %s2961_s16 = smov 22   ;;  %s2962_s18 = smov 85  }
 0x6c3   : > { %2254 = vperm.xlu0 %2862, %v3230_v21   ;;  %1364 = vrot.lane.b32.xlu1 %v3325_v49, %s2948_s19  ;;  %s2963_s19 = smov 119  }
 0x6c7   : > { %2863 = vset.pattern.permute.xlu0 %v2949_v51  ;;  %1367 = vrot.lane.b32.xlu1 %v3325_v49, %s2950_s20  ;;  %s2964_s20 = smov 21  }
 0x6c8   : > { %2277 = vperm.xlu0 %2863, %v3230_v21  }
 0x6cb   : > { %1390 = vrot.lane.b32.xlu1 %v3325_v49, %s2951_s21  ;;  %s2966_s21 = smov 83  }
 0x6cc   : > { %2864 = vset.pattern.permute.xlu0 %v2952_v53 }
 0x6cd   : > { %2300 = vperm.xlu0 %2864, %v3230_v21  }
 0x6cf   : > { %1393 = vrot.lane.b32.xlu1 %v3325_v49, %s2901_s12  ;;  %s2960_s12 = smov 126  }
 0x6d1   : > { %2865 = vset.pattern.permute.xlu0 %v2953_v55 }
 0x6d2   : > { %2327 = vperm.xlu0 %2865, %v3230_v21  }
 0x6d3   : > { %1415 = vrot.lane.b32.xlu1 %v3325_v49, %s2954_s22  ;;  %s2968_s22 = smov 19  }
 0x6d6   : > { %2866 = vset.pattern.permute.xlu0 %v2955_v56 }
 0x6d7   : > { %2350 = vperm.xlu0 %2866, %v3230_v21   ;;  %1418 = vrot.lane.b32.xlu1 %v3325_v49, %s2956_s23  ;;  %s2969_s23 = smov 82  }
 0x6db   : > { %1911 = vrot.lane.b32.xlu0 %v3325_v49, %s2957_s28  ;;  %1441 = vrot.lane.b32.xlu1 %v3325_v49, %s2958_s15  ;;  %s2971_s28 = smov 18   ;;  %s2973_s15 = smov 81  }
 0x6dc   : > { %2867 = vset.pattern.permute.xlu0 %v2959_v58 }
 0x6df   : > { %1931 = vrot.lane.b32.xlu0 %v3325_v49, %s2960_s12  ;;  %1444 = vrot.lane.b32.xlu1 %v3325_v49, %s2961_s16  ;;  %s2974_s12 = smov 101   ;;  %s2975_s16 = smov 17  }
 0x6e3   : > { %2373 = vperm.xlu0 %2867, %v3230_v21   ;;  %1467 = vrot.lane.b32.xlu1 %v3325_v49, %s2962_s18  ;;  %s2976_s18 = smov 79  }
 0x6e7   : > { %2072 = vrot.lane.b32.xlu0 %v3325_v49, %s2963_s19  ;;  %1470 = vrot.lane.b32.xlu1 %v3325_v49, %s2964_s20  ;;  %s2977_s19 = smov 15   ;;  %s2978_s20 = smov 78  }
 0x6e8   : > { %2868 = vset.pattern.permute.xlu0 %v2965_v60 }
 0x6eb   : > { %2395 = vperm.xlu0 %2868, %v3230_v21   ;;  %1493 = vrot.lane.b32.xlu1 %v3325_v49, %s2966_s21  ;;  %s2979_s21 = smov 14  }
 0x6ef   : > { %2869 = vset.pattern.permute.xlu0 %v2967_v62  ;;  %1496 = vrot.lane.b32.xlu1 %v3325_v49, %s2968_s22  ;;  %s2980_s22 = smov 77  }
 0x6f0   : > { %2418 = vperm.xlu0 %2869, %v3230_v21  }
 0x6f3   : > { %1520 = vrot.lane.b32.xlu1 %v3325_v49, %s2969_s23  ;;  %s2981_s23 = smov 13  }
 0x6f4   : > { %2870 = vset.pattern.permute.xlu0 %v2970_v0 }
 0x6f5   : > { %2441 = vperm.xlu0 %2870, %v3230_v21  }
 0x6f7   : > { %1523 = vrot.lane.b32.xlu1 %v3325_v49, %s2971_s28  ;;  %s2984_s28 = smov 74  }
 0x6f9   : > { %2871 = vset.pattern.permute.xlu0 %v2972_v3 }
 0x6fa   : > { %2464 = vperm.xlu0 %2871, %v3230_v21   ;;  %v3372_v21 = vpop.permute.xlu0 %1679 }
 0x6fb   : > { %1543 = vrot.lane.b32.xlu1 %v3325_v49, %s2973_s15  ;;  %4630 = vst [vmem:[#allocation10_spill] sm:$0xff] %v3372_v21  ;;  %s2985_s15 = smov 10  }
 0x6fe   : > { %2446 = vrot.lane.b32.xlu0 %v3325_v49, %s2974_s12  ;;  %v3376_v5 = vpop.permute.xlu0 %1702  ;;  %s2986_s12 = smov 73  }
 0x6ff   : > { %1546 = vrot.lane.b32.xlu1 %v3325_v49, %s2975_s16  ;;  %4631 = vst [vmem:[#allocation11_spill] sm:$0xff] %v3376_v5  ;;  %s2987_s16 = smov 9   ;;  %v4669_v5 = vmov 0  }
 0x702   : > { %v3381_v10 = vpop.permute.xlu0 %1725 }
 0x703   : > { %1566 = vrot.lane.b32.xlu1 %v3325_v49, %s2895_s25  ;;  %s2982_s25 = smov 75   ;;  %4632 = vst [vmem:[#allocation12_spill] sm:$0xff] %v3381_v10 }
 0x706   : > { %v3387_v15 = vpop.permute.xlu0 %1747 }
 0x707   : > { %1569 = vrot.lane.b32.xlu1 %v3325_v49, %s2899_s29  ;;  %s2983_s29 = smov 11   ;;  %4633 = vst [vmem:[#allocation13_spill] sm:$0xff] %v3387_v15 }
 0x70a   : > { %v3394_v18 = vpop.permute.xlu0 %1770 }
 0x70b   : > { %1588 = vrot.lane.b32.xlu1 %v3325_v49, %s2976_s18  ;;  %4634 = vst [vmem:[#allocation14_spill] sm:$0xff] %v3394_v18  ;;  %s2988_s18 = smov 72  }
 0x70e   : > { %v3401_v4 = vpop.permute.xlu0 %1793 }
 0x70f   : > { %1591 = vrot.lane.b32.xlu1 %v3325_v49, %s2977_s19  ;;  %4635 = vst [vmem:[#allocation15_spill] sm:$0xff] %v3401_v4  ;;  %s2989_s19 = smov 71  }
 0x712   : > { %v3408_v23 = vpop.permute.xlu0 %1816 }
 0x713   : > { %1611 = vrot.lane.b32.xlu1 %v3325_v49, %s2978_s20  ;;  %4636 = vst [vmem:[#allocation16_spill] sm:$0xff] %v3408_v23  ;;  %s2990_s20 = smov 7   ;;  %v3580_v23 = vadd.f32 3.0, %v3496_v31 }
 0x716   : > { %v3414_v25 = vpop.permute.xlu0 %1843 }
 0x717   : > { %1614 = vrot.lane.b32.xlu1 %v3325_v49, %s2979_s21  ;;  %s2991_s21 = smov 70   ;;  %4637 = vst [vmem:[#allocation17_spill] sm:$0xff] %v3414_v25 }
 0x71a   : > { %v3421_v34 = vpop.permute.xlu0 %1866 }
 0x71b   : > { %1634 = vrot.lane.b32.xlu1 %v3325_v49, %s2980_s22  ;;  %4638 = vst [vmem:[#allocation18_spill] sm:$0xff] %v3421_v34  ;;  %s2993_s22 = smov 69  }
 0x71e   : > { %v3427_v36 = vpop.permute.xlu0 %1888 }
 0x71f   : > { %1637 = vrot.lane.b32.xlu1 %v3325_v49, %s2981_s23  ;;  %s2994_s23 = smov 5   ;;  %4639 = vst [vmem:[#allocation19_spill] sm:$0xff] %v3427_v36 }
 0x722   : > { %v3434_v39 = vpop.permute.xlu0 %1949 }
 0x723   : > { %1657 = vrot.lane.b32.xlu1 %v3325_v49, %s2982_s25  ;;  %s2995_s25 = smov 67   ;;  %4640 = vst [vmem:[#allocation20_spill] sm:$0xff] %v3434_v39 }
 0x726   : > { %v3440_v41 = vpop.permute.xlu0 %1972 }
 0x727   : > { %1660 = vrot.lane.b32.xlu1 %v3325_v49, %s2983_s29  ;;  %s2996_s29 = smov 3   ;;  %4641 = vst [vmem:[#allocation21_spill] sm:$0xff] %v3440_v41  ;;  %v3531_v41 = vadd.f32 1.0, %v3496_v31 }
 0x729   : > { %vm4613_vm11 = vcmp.ge.f32.partialorder %v3531_v41, 0.0 }
 0x72a   : > { %v3447_v44 = vpop.permute.xlu0 %1999 }
 0x72b   : > { %1684 = vrot.lane.b32.xlu1 %v3325_v49, %s2984_s28  ;;  %s2997_s28 = smov 66   ;;  %4642 = vst [vmem:[#allocation22_spill] sm:$0xff] %v3447_v44 }
 0x72d   : > { %v3379_v7 = vpop.permute.xlu1 %1307 }
 0x72e   : > { %v3453_v46 = vpop.permute.xlu0 %2022 }
 0x72f   : > { %1687 = vrot.lane.b32.xlu1 %v3325_v49, %s2985_s15  ;;  %s2998_s15 = smov 2   ;;  %4643 = vst [vmem:[#allocation23_spill] sm:$0xff] %v3453_v46 }
 0x731   : > { %v3384_v12 = vpop.permute.xlu1 %1341 }
 0x732   : > { %v3461_v51 = vpop.permute.xlu0 %2045 }
 0x733   : > { %1707 = vrot.lane.b32.xlu1 %v3325_v49, %s2986_s12  ;;  %s2999_s12 = smov 65   ;;  %4644 = vst [vmem:[#allocation24_spill] sm:$0xff] %v3461_v51  ;;  %v3507_v51 = vadd.f32 -2.0, %v3496_v31 }
 0x735   : > { %v3389_v16 = vpop.permute.xlu1 %1364  ;;  %vm4614_vm4 = vcmp.ge.f32.partialorder %v3507_v51, 0.0  ;;  %vm4611_vm14 = vcmp.le.f32.partialorder %v3507_v51, 7.0 }
 0x736   : > { %v3467_v55 = vpop.permute.xlu0 %2090  ;;  %vm1348_vm13 = vmand %vm3510_vm15, %vm4614_vm4 }
 0x737   : > { %1710 = vrot.lane.b32.xlu1 %v3325_v49, %s2987_s16  ;;  %s3000_s16 = smov 1   ;;  %4645 = vst [vmem:[#allocation25_spill] sm:$0xff] %v3467_v55  ;;  %v3502_v55 = vadd.f32 -3.0, %v3496_v31  ;;  %vm3560_vm7 = vmand %vm1348_vm13, %vm4611_vm14  ;;  %vm4620_vm13 = vcmp.ge.f32.partialorder %v3547_v29, 0.0 }
 0x739   : > { %v3392_v17 = vpop.permute.xlu1 %1367  ;;  %vm4617_vm0 = vcmp.ge.f32.partialorder %v3502_v55, 0.0  ;;  %vm4612_vm9 = vcmp.le.f32.partialorder %v3502_v55, 7.0 }
 0x73a   : > { %v3474_v60 = vpop.permute.xlu0 %2136  ;;  %vm1321_vm8 = vmand %vm3510_vm15, %vm4617_vm0 }
 0x73b   : > { %1730 = vrot.lane.b32.xlu1 %v3325_v49, %s2988_s18  ;;  %s3001_s18 = smov 62   ;;  %4646 = vst [vmem:[#allocation26_spill] sm:$0xff] %v3474_v60  ;;  %vm3542_vm10 = vmand %vm1321_vm8, %vm4612_vm9  ;;  %vm4608_vm8 = vcmp.ge.f32.partialorder %v3496_v31, 0.0 }
 0x73c   : > { %vm1399_vm2 = vmand %vm3510_vm15, %vm4608_vm8 }
 0x73d   : > { %v3397_v19 = vpop.permute.xlu1 %1390  ;;  %vm1425_vm8 = vmand %vm3510_vm15, %vm4613_vm11  ;;  %vm4616_vm11 = vcmp.le.f32.partialorder %v3547_v29, 7.0 }
 0x73e   : > { %v3480_v0 = vpop.permute.xlu0 %2163  ;;  %vm1451_vm9 = vmand %vm3510_vm15, %vm4620_vm13 }
 0x73f   : > { %1733 = vrot.lane.b32.xlu1 %v3325_v49, %s2900_s11  ;;  %s2992_s11 = smov 6   ;;  %4647 = vst [vmem:[#allocation27_spill] sm:$0xff] %v3480_v0 }
 0x741   : > { %v3403_v20 = vpop.permute.xlu1 %1393 }
 0x742   : > { %v3498_v0 = vpop.permute.xlu0 %2186 }
 0x743   : > { %1752 = vrot.lane.b32.xlu1 %v3325_v49, %s2989_s19  ;;  %s3002_s19 = smov 125   ;;  %4649 = vst [vmem:[#allocation29_spill] sm:$0xff] %v3498_v0  ;;  %v3516_v0 = vadd.f32 -1.0, %v3496_v31 }
 0x745   : > { %v3406_v22 = vpop.permute.xlu1 %1415  ;;  %vm4609_vm12 = vcmp.ge.f32.partialorder %v3516_v0, 0.0  ;;  %vm4610_vm6 = vcmp.le.f32.partialorder %v3516_v0, 7.0 }
 0x746   : > { %v3518_v44 = vpop.permute.xlu0 %2209  ;;  %vm1374_vm5 = vmand %vm3510_vm15, %vm4609_vm12  ;;  %vm4621_vm12 = vcmp.le.f32.partialorder %v3531_v41, 7.0 }
 0x747   : > { %1755 = vrot.lane.b32.xlu1 %v3325_v49, %s2990_s20  ;;  %s3003_s20 = smov 61   ;;  %4653 = vst [vmem:[#allocation31_spill] sm:$0xff] %v3518_v44  ;;  %vm3574_vm1 = vmand %vm1374_vm5, %vm4610_vm6 }
 0x748   : > { %vm3592_vm5 = vmand %vm1399_vm2, %vm4615_vm3  ;;  %vm4619_vm2 = vcmp.ge.f32.partialorder %v3580_v23, 0.0 }
 0x749   : > { %v3411_v24 = vpop.permute.xlu1 %1418  ;;  %vm3605_vm4 = vmand %vm1425_vm8, %vm4621_vm12  ;;  %v1402_v25 = vsel %vm3592_vm5, 1, %v4669_v5  ;;  %vm1313_vm5 = vcmask 220160  }
 0x74a   : > { %v3549_v28 = vpop.permute.xlu0 %2231 }
 0x74b   : > { %1775 = vrot.lane.b32.xlu1 %v3325_v49, %s2991_s21  ;;  %s3005_s21 = smov 59   ;;  %4658 = vst [vmem:[#allocation34_spill] sm:$0xff] %v3549_v28  ;;  %v1501_v28 = vadd.f32 -2.0, %v3488_v1 }
 0x74d   : > { %v3416_v26 = vpop.permute.xlu1 %1441  ;;  %vm1502_vm6 = vcmp.ge.f32.partialorder %v1501_v28, 0.0  ;;  %vm1503_vm14 = vcmp.le.f32.partialorder %v1501_v28, 7.0  ;;  %v1351_v28 = vsel %vm3560_vm7, 1, %v4669_v5  ;;  %vm1477_vm7 = vmand %vm3510_vm15, %vm4619_vm2  ;;  %vm4675_vm15 = vcmp.ge.f32.partialorder %v3507_v51, 0.0 }
 0x74e   : > { %v1311_v18 = vpop.permute.xlu0 %1310  ;;  %vm3613_vm3 = vmand %vm1502_vm6, %vm1503_vm14  ;;  %vm4618_vm14 = vcmp.le.f32.partialorder %v3580_v23, 7.0  ;;  %v1355_v39 = vrot.slane %v1351_v28, %v3619_v14 }
 0x74f   : > { %1778 = vrot.lane.b32.xlu1 %v3325_v49, %s2992_s11  ;;  %s3006_s11 = smov 122   ;;  %vm3629_vm6 = vmand %vm1451_vm9, %vm4616_vm11  ;;  %vm1370_vm11 = vcmask 203776  }
 0x750   : > { %vm1528_vm9 = vmand %vm3613_vm3, %vm4675_vm15 }
 0x751   : > { %v3419_v32 = vpop.permute.xlu1 %1444  ;;  %vm3657_vm8 = vmand %vm1477_vm7, %vm4618_vm14  ;;  %vm3673_vm7 = vcmp.eq.s32.totalorder %v1355_v39, 1 }
 0x752   : > { %v1339_v46 = vpop.permute.xlu0 %1338 }
 0x753   : > { %1798 = vrot.lane.b32.xlu1 %v3325_v49, %s2993_s22  ;;  %s3018_s22 = smov 114  }
 0x755   : > { %v3424_v35 = vpop.permute.xlu1 %1467 }
 0x757   : > { %1801 = vrot.lane.b32.xlu1 %v3325_v49, %s2994_s23  ;;  %s3019_s23 = smov 50  }
 0x759   : > { %v3429_v37 = vpop.permute.xlu1 %1470 }
 0x75b   : > { %1821 = vrot.lane.b32.xlu1 %v3325_v49, %s2995_s25  ;;  %s3020_s25 = smov 113  }
 0x75d   : > { %v3432_v38 = vpop.permute.xlu1 %1493 }
 0x75f   : > { %1824 = vrot.lane.b32.xlu1 %v3325_v49, %s2996_s29  ;;  %s3021_s29 = smov 49  }
 0x761   : > { %v3437_v40 = vpop.permute.xlu1 %1496 }
 0x763   : > { %1848 = vrot.lane.b32.xlu1 %v3325_v49, %s2997_s28  ;;  %s3007_s28 = smov 58  }
 0x765   : > { %v3442_v42 = vpop.permute.xlu1 %1520 }
 0x767   : > { %1851 = vrot.lane.b32.xlu1 %v3325_v49, %s2998_s15  ;;  %s3008_s15 = smov 121  }
 0x769   : > { %v3445_v43 = vpop.permute.xlu1 %1523 }
 0x76b   : > { %1871 = vrot.lane.b32.xlu1 %v3325_v49, %s2999_s12  ;;  %s3009_s12 = smov 57  }
 0x76d   : > { %v3450_v45 = vpop.permute.xlu1 %1543 }
 0x76f   : > { %1874 = vrot.lane.b32.xlu1 %v3325_v49, %s3000_s16  ;;  %s3010_s16 = smov 120  }
 0x771   : > { %v3455_v13 = vpop.permute.xlu1 %1546 }
 0x773   : > { %1908 = vrot.lane.b32.xlu1 %v3325_v49, %s2917_s26  ;;  %s3004_s26 = smov 123  }
 0x775   : > { %v3459_v47 = vpop.permute.xlu1 %1566 }
 0x777   : > { %1934 = vrot.lane.b32.xlu1 %v3325_v49, %s3001_s18  ;;  %s3012_s18 = smov 118  }
 0x779   : > { %v3464_v53 = vpop.permute.xlu1 %1569 }
 0x77b   : > { %1954 = vrot.lane.b32.xlu1 %v3325_v49, %s3002_s19  ;;  %s3013_s19 = smov 54  }
 0x77d   : > { %v3469_v56 = vpop.permute.xlu1 %1588 }
 0x77f   : > { %1957 = vrot.lane.b32.xlu1 %v3325_v49, %s3003_s20  ;;  %s3014_s20 = smov 117  }
 0x781   : > { %v3472_v58 = vpop.permute.xlu1 %1591 }
 0x783   : > { %1977 = vrot.lane.b32.xlu1 %v3325_v49, %s3004_s26  ;;  %s3015_s26 = smov 53  }
 0x785   : > { %v3477_v62 = vpop.permute.xlu1 %1611 }
 0x787   : > { %1980 = vrot.lane.b32.xlu1 %v3325_v49, %s3005_s21  ;;  %s3016_s21 = smov 115  }
 0x789   : > { %v3482_v3 = vpop.permute.xlu1 %1614 }
 0x78b   : > { %2004 = vrot.lane.b32.xlu1 %v3325_v49, %s3006_s11  ;;  %s3017_s11 = smov 51  }
 0x78d   : > { %v3491_v60 = vpop.permute.xlu1 %1634 }
 0x78e   : > { %4648 = vst [vmem:[#allocation28_spill] sm:$0xff] %v3491_v60  ;;  %v1665_v60 = vadd.f32 -1.0, %v3488_v1 }
 0x78f   : > { %2007 = vrot.lane.b32.xlu1 %v3325_v49, %s3007_s28  ;;  %s3024_s28 = smov 110  }
 0x790   : > { %vm1667_vm13 = vcmp.le.f32.partialorder %v1665_v60, 7.0 }
 0x791   : > { %v3504_v30 = vpop.permute.xlu1 %1637 }
 0x792   : > { %4650 = vst [vmem:[#allocation30_spill] sm:$0xff] %v3504_v30 }
 0x793   : > { %2027 = vrot.lane.b32.xlu1 %v3325_v49, %s3008_s15  ;;  %s3025_s15 = smov 46  }
 0x795   : > { %v3520_v33 = vpop.permute.xlu1 %1657 }
 0x796   : > { %4654 = vst [vmem:[#allocation32_spill] sm:$0xff] %v3520_v33 }
 0x797   : > { %2030 = vrot.lane.b32.xlu1 %v3325_v49, %s3009_s12  ;;  %s3026_s12 = smov 109  }
 0x799   : > { %v3538_v44 = vpop.permute.xlu1 %1660 }
 0x79a   : > { %4655 = vst [vmem:[#allocation33_spill] sm:$0xff] %v3538_v44 }
 0x79b   : > { %2050 = vrot.lane.b32.xlu1 %v3325_v49, %s3010_s16  ;;  %s3027_s16 = smov 45  }
 0x79d   : > { %v3570_v34 = vpop.permute.xlu1 %1684 }
 0x79e   : > { %4661 = vst [vmem:[#allocation35_spill] sm:$0xff] %v3570_v34  ;;  %v1324_v34 = vsel %vm3542_vm10, 1, %v4669_v5  ;;  %vm1344_vm10 = vcmask 211968  }
 0x79f   : > { %2053 = vrot.lane.b32.xlu1 %v3325_v49, %s2903_s14  ;;  %s3011_s14 = smov 55   ;;  %v1328_v11 = vrot.slane %v1324_v34, %v3619_v14  ;;  %v1406_v34 = vrot.slane %v1402_v25, %v3619_v14  ;;  %v1345_v8 = vsel %vm1344_vm10, %v1339_v46, %v3384_v12  ;;  %v1454_v25 = vsel %vm3629_vm6, 1, %v4669_v5 }
 0x7a0   : > { %vm4691_vm10 = vcmp.ge.f32.partialorder %v3516_v0, 0.0  ;;  %v1480_v46 = vsel %vm3657_vm8, 1, %v4669_v5  ;;  %vm4699_vm8 = vcmp.ge.f32.partialorder %v3531_v41, 0.0 }
 0x7a1   : > { %v3601_v15 = vpop.permute.xlu1 %1687  ;;  %vm3700_vm6 = vmand %vm3613_vm3, %vm4691_vm10 }
 0x7a2   : > { %4666 = vst [vmem:[#allocation36_spill] sm:$0xff] %v3601_v15  ;;  %v1377_v15 = vsel %vm3574_vm1, 1, %v4669_v5  ;;  %vm1505_vm1 = vmand %vm3613_vm3, %vm4617_vm0  ;;  %vm4678_vm0 = vcmp.le.f32.partialorder %v3502_v55, 7.0 }
 0x7a3   : > { %2075 = vrot.lane.b32.xlu1 %v3325_v49, %s3011_s14  ;;  %v1381_v33 = vrot.slane %v1377_v15, %v3619_v14  ;;  %v1428_v15 = vsel %vm3605_vm4, 1, %v4669_v5  ;;  %vm3667_vm15 = vmand %vm1505_vm1, %vm4678_vm0  ;;  %vm4684_vm4 = vcmp.le.f32.partialorder %v3507_v51, 7.0  ;;  %vm3688_vm0 = vcmp.eq.s32.totalorder %v1328_v11, 1  ;;  %s3028_s14 = smov 107  }
 0x7a4   : > { %vm3683_vm14 = vmand %vm1528_vm9, %vm4684_vm4  ;;  %v1314_v11 = vsel %vm1313_vm5, %v3379_v7, %v1311_v18  ;;  %v1432_v36 = vrot.slane %v1428_v15, %v3619_v14  ;;  %vm4694_vm9 = vcmp.ge.f32.partialorder %v3496_v31, 0.0  ;;  %v1357_v7 = vsel %vm3673_vm7, %v1345_v8, 0.0 }
 0x7a5   : > { %v3638_v9 = vpop.permute.xlu1 %1707  ;;  %vm3692_vm1 = vcmp.eq.s32.totalorder %v1381_v33, 1  ;;  %v1371_v33 = vsel %vm1370_vm11, %v3389_v16, %v3392_v17  ;;  %vm3718_vm4 = vmand %vm3613_vm3, %vm4694_vm9  ;;  %vm3724_vm5 = vcmp.eq.s32.totalorder %v1406_v34, 1  ;;  %vm1421_vm11 = vcmask 187392  }
 0x7a6   : > { %4674 = vst [vmem:[#allocation37_spill] sm:$0xff] %v3638_v9  ;;  %v1458_v16 = vrot.slane %v1454_v25, %v3619_v14  ;;  %vm3733_vm10 = vmand %vm3613_vm3, %vm4699_vm8  ;;  %vm4702_vm7 = vcmask 195584   ;;  %v1507_v44 = vsel %vm3667_vm15, 1, %v4669_v5  ;;  %vm4703_vm9 = vcmp.le.f32.partialorder %v3516_v0, 7.0 }
 0x7a7   : > { %2095 = vrot.lane.b32.xlu1 %v3325_v49, %s3012_s18  ;;  %v1396_v8 = vsel %vm4702_vm7, %v3397_v19, %v3403_v20  ;;  %vm3749_vm2 = vmand %vm3700_vm6, %vm4703_vm9  ;;  %vm1666_vm8 = vcmp.ge.f32.partialorder %v1665_v60, 0.0  ;;  %v1330_v15 = vsel %vm3688_vm0, %v1314_v11, 0.0  ;;  %v1383_v19 = vsel %vm3692_vm1, %v1371_v33, 0.0  ;;  %s3029_s18 = smov 43  }
 0x7a8   : > { %vm1447_vm7 = vcmask 179200   ;;  %v1484_v20 = vrot.slane %v1480_v46, %v3619_v14  ;;  %vm4706_vm15 = vcmp.le.f32.partialorder %v3496_v31, 7.0  ;;  %vm3768_vm0 = vcmp.eq.s32.totalorder %v1432_v36, 1 }
 0x7a9   : > { %v3671_v9 = vpop.permute.xlu1 %1710  ;;  %vm3762_vm12 = vmand %vm3718_vm4, %vm4706_vm15  ;;  %v1422_v39 = vsel %vm1421_vm11, %v3406_v22, %v3411_v24  ;;  %v1530_v30 = vsel %vm3683_vm14, 1, %v4669_v5  ;;  %vm4711_vm1 = vcmp.le.f32.partialorder %v3531_v41, 7.0  ;;  %vm3788_vm4 = vcmp.eq.s32.totalorder %v1458_v16, 1 }
 0x7aa   : > { %4681 = vst [vmem:[#allocation38_spill] sm:$0xff] %v3671_v9  ;;  %v1362_v9 = vmul.f32 %v3263_v48, %v1357_v7  ;;  %vm3782_vm6 = vmand %vm3733_vm10, %vm4711_vm1  ;;  %v1408_v48 = vsel %vm3724_vm5, %v1396_v8, 0.0  ;;  %vm1473_vm11 = vcmask 171008   ;;  %v1511_v22 = vrot.slane %v1507_v44, %v3619_v14 }
 0x7ab   : > { %2098 = vrot.lane.b32.xlu1 %v3325_v49, %s3013_s19  ;;  %vm3795_vm14 = vmand %vm1666_vm8, %vm1667_vm13  ;;  %v1336_v33 = vmul.f32 %v3308_v27, %v1330_v15  ;;  %v1388_v36 = vmul.f32 %v3266_v50, %v1383_v19  ;;  %v1448_v46 = vsel %vm1447_vm7, %v3416_v26, %v3419_v32  ;;  %v1553_v7 = vsel %vm3749_vm2, 1, %v4669_v5  ;;  %s3030_s19 = smov 106  }
 0x7ac   : > { %vm4718_vm5 = vcmp.ge.f32.partialorder %v3547_v29, 0.0  ;;  %v1434_v27 = vsel %vm3768_vm0, %v1422_v39, 0.0  ;;  %vm3819_vm10 = vcmp.eq.s32.totalorder %v1484_v20, 1  ;;  %vm1499_vm9 = vcmask 154624  }
 0x7ad   : > { %v3737_v4 = vpop.permute.xlu1 %1730  ;;  %vm3813_vm13 = vmand %vm3613_vm3, %vm4718_vm5  ;;  %v1534_v26 = vrot.slane %v1530_v30, %v3619_v14  ;;  %vm4723_vm2 = vcmp.ge.f32.partialorder %v3580_v23, 0.0  ;;  %v1363_v18 = vadd.f32 %v1362_v9, %v1336_v33  ;;  %v1413_v16 = vmul.f32 %v3269_v52, %v1408_v48 }
 0x7ae   : > { %vm3828_vm8 = vmand %vm3613_vm3, %vm4723_vm2  ;;  %v1474_v17 = vsel %vm1473_vm11, %v3424_v35, %v3429_v37  ;;  %v1575_v8 = vsel %vm3762_vm12, 1, %v4669_v5  ;;  %vm4726_vm7 = vcmp.ge.f32.partialorder %v3502_v55, 0.0  ;;  %v1460_v44 = vsel %vm3788_vm4, %v1448_v46, 0.0 }
 0x7af   : > { %2118 = vrot.lane.b32.xlu1 %v3325_v49, %s3014_s20  ;;  %vm3844_vm3 = vmand %vm3795_vm14, %vm4726_vm7  ;;  %vm3850_vm15 = vcmp.eq.s32.totalorder %v1511_v22, 1  ;;  %vm1526_vm0 = vcmask 146432   ;;  %v1557_v35 = vrot.slane %v1553_v7, %v3619_v14  ;;  %vm4731_vm12 = vcmp.le.f32.partialorder %v3547_v29, 7.0  ;;  %s3031_s20 = smov 42  }
 0x7b0   : > { %vm3859_vm1 = vmand %vm3813_vm13, %vm4731_vm12  ;;  %v1389_v15 = vadd.f32 %v1388_v36, %v1363_v18  ;;  %v1439_v19 = vmul.f32 %v3272_v54, %v1434_v27  ;;  %v1500_v20 = vsel %vm1499_vm9, %v3432_v38, %v3437_v40  ;;  %v1598_v28 = vsel %vm3782_vm6, 1, %v4669_v5  ;;  %v4793_v27 = vld [vmem:[#allocation33_spill] sm:$0xff] }
 0x7b1   : > { %v3799_v10 = vpop.permute.xlu1 %1733  ;;  %vm4734_vm4 = vcmp.le.f32.partialorder %v3580_v23, 7.0  ;;  %v1486_v25 = vsel %vm3819_vm10, %v1474_v17, 0.0  ;;  %vm3882_vm5 = vcmp.eq.s32.totalorder %v1534_v26, 1  ;;  %vm1549_vm13 = vcmask 138240   ;;  %v4798_v17 = vld [vmem:[#allocation3_spill] sm:$0xff] }
 0x7b2   : > { %vm3876_vm11 = vmand %vm3828_vm8, %vm4734_vm4  ;;  %v1579_v38 = vrot.slane %v1575_v8, %v3619_v14  ;;  %vm4739_vm6 = vcmp.le.f32.partialorder %v3502_v55, 7.0  ;;  %v1414_v39 = vadd.f32 %v1413_v16, %v1389_v15  ;;  %v1465_v30 = vmul.f32 %v3275_v57, %v1460_v44  ;;  %v4802_v15 = vld [vmem:[#allocation4_spill] sm:$0xff] }
 0x7b3   : > { %2121 = vrot.lane.b32.xlu1 %v3325_v49, %s3015_s26  ;;  %vm3891_vm9 = vmand %vm3844_vm3, %vm4739_vm6  ;;  %v1527_v12 = vsel %vm1526_vm0, %v3442_v42, %v3445_v43  ;;  %v1621_v48 = vsel %vm3859_vm1, 1, %v4669_v5  ;;  %vm4742_vm10 = vcmp.ge.f32.partialorder %v3507_v51, 0.0  ;;  %vm1830_vm8 = vcmp.ge.f32.partialorder %v3488_v1, 0.0  ;;  %s3032_s26 = smov 105  }
 0x7b4   : > { %vm3907_vm2 = vmand %vm3795_vm14, %vm4742_vm10  ;;  %vm1831_vm7 = vcmp.le.f32.partialorder %v3488_v1, 7.0  ;;  %v1513_v57 = vsel %vm3850_vm15, %v1500_v20, 0.0  ;;  %vm3915_vm3 = vcmp.eq.s32.totalorder %v1557_v35, 1  ;;  %v1602_v43 = vrot.slane %v1598_v28, %v3619_v14 }
 0x7b5   : > { %v3863_v34 = vpop.permute.xlu1 %1752  ;;  %vm4747_vm0 = vcmp.ge.f32.partialorder %v3516_v0, 0.0  ;;  %v1440_v36 = vadd.f32 %v1439_v19, %v1414_v39  ;;  %v1491_v46 = vmul.f32 %v3279_v59, %v1486_v25  ;;  %v1550_v7 = vsel %vm1549_vm13, %v3450_v45, %v3455_v13 }
 0x7b6   : > { %vm3924_vm12 = vmand %vm3795_vm14, %vm4747_vm0  ;;  %v1644_v60 = vsel %vm3876_vm11, 1, %v4669_v5  ;;  %vm4750_vm15 = vcmp.ge.f32.partialorder %v3496_v31, 0.0  ;;  %v1536_v50 = vsel %vm3882_vm5, %v1527_v12, 0.0  ;;  %vm3947_vm4 = vcmp.eq.s32.totalorder %v1579_v38, 1  ;;  %v4781_v12 = vld [vmem:[#allocation28_spill] sm:$0xff] }
 0x7b7   : > { %2141 = vrot.lane.b32.xlu1 %v3325_v49, %s3016_s21  ;;  %vm3941_vm1 = vmand %vm3795_vm14, %vm4750_vm15  ;;  %vm1594_vm13 = vcmask 121856   ;;  %v1625_v45 = vrot.slane %v1621_v48, %v3619_v14  ;;  %vm4755_vm11 = vcmp.le.f32.partialorder %v3507_v51, 7.0  ;;  %v1466_v26 = vadd.f32 %v1465_v30, %v1440_v36  ;;  %v4780_v30 = vld [vmem:[#allocation30_spill] sm:$0xff]  ;;  %s3033_s21 = smov 41  }
 0x7b8   : > { %vm3956_vm6 = vmand %vm3907_vm2, %vm4755_vm11  ;;  %v1518_v32 = vmul.f32 %v3282_v61, %v1513_v57  ;;  %vm4758_vm5 = vcmask 130048   ;;  %v1671_v16 = vsel %vm3891_vm9, 1, %v4669_v5  ;;  %vm4759_vm10 = vcmp.le.f32.partialorder %v3516_v0, 7.0  ;;  %v4799_v61 = vld [vmem:[#allocation36_spill] sm:$0xff] }
 0x7b9   : > { %v3928_v33 = vpop.permute.xlu1 %1755  ;;  %v1572_v18 = vsel %vm4758_vm5, %v3459_v47, %v3464_v53  ;;  %vm3972_vm2 = vmand %vm3924_vm12, %vm4759_vm10  ;;  %v1559_v8 = vsel %vm3915_vm3, %v1550_v7, 0.0  ;;  %vm3978_vm0 = vcmp.eq.s32.totalorder %v1602_v43, 1  ;;  %vm1617_vm15 = vcmask 113664   ;;  %v4792_v7 = vld [vmem:[#allocation2_spill] sm:$0xff] }
 0x7ba   : > { %v1648_v47 = vrot.slane %v1644_v60, %v3619_v14  ;;  %vm4764_vm9 = vcmp.le.f32.partialorder %v3496_v31, 7.0  ;;  %v1492_v44 = vadd.f32 %v1491_v46, %v1466_v26  ;;  %v1541_v52 = vmul.f32 %v3285_v63, %v1536_v50  ;;  %v4794_v50 = vld [vmem:[#allocation32_spill] sm:$0xff] }
 0x7bb   : > { %2144 = vrot.lane.b32.xlu1 %v3325_v49, %s3017_s11  ;;  %vm3987_vm11 = vmand %vm3941_vm1, %vm4764_vm9  ;;  %v1595_v35 = vsel %vm1594_vm13, %v3469_v56, %v3472_v58  ;;  %v1694_v37 = vsel %vm3956_vm6, 1, %v4669_v5  ;;  %vm4767_vm3 = vcmp.ge.f32.partialorder %v3531_v41, 0.0  ;;  %v1581_v19 = vsel %vm3947_vm4, %v1572_v18, 0.0  ;;  %v4806_v58 = vld [vmem:[#allocation37_spill] sm:$0xff]  ;;  %s3034_s11 = smov 104  }
 0x7bc   : > { %vm4004_vm12 = vmand %vm3795_vm14, %vm4767_vm3  ;;  %vm4010_vm1 = vcmp.eq.s32.totalorder %v1625_v45, 1  ;;  %vm1640_vm13 = vcmask 105472   ;;  %v1675_v56 = vrot.slane %v1671_v16, %v3619_v14  ;;  %vm4772_vm6 = vcmp.ge.f32.partialorder %v3547_v29, 0.0  ;;  %v4094_v45 = vpop.permute.xlu0 %2254 }
 0x7bd   : > { %v3991_v21 = vpop.permute.xlu1 %1775  ;;  %vm4020_vm5 = vmand %vm3795_vm14, %vm4772_vm6  ;;  %v1519_v20 = vadd.f32 %v1518_v32, %v1492_v44  ;;  %v1564_v28 = vmul.f32 %v3288_v2, %v1559_v8  ;;  %v1618_v9 = vsel %vm1617_vm15, %v3477_v62, %v3482_v3  ;;  %v1717_v25 = vsel %vm3972_vm2, 1, %v4669_v5  ;;  %v4810_v2 = vld [vmem:[#allocation10_spill] sm:$0xff] }
 0x7be   : > { %v1604_v54 = vsel %vm3978_vm0, %v1595_v35, 0.0  ;;  %vm4033_vm4 = vcmp.eq.s32.totalorder %v1648_v47, 1  ;;  %vm1663_vm10 = vcmask 89088   ;;  %v1698_v40 = vrot.slane %v1694_v37, %v3619_v14  ;;  %v4800_v47 = vld [vmem:[#allocation35_spill] sm:$0xff] }
 0x7bf   : > { %2168 = vrot.lane.b32.xlu1 %v3325_v49, %s3018_s22  ;;  %vm4777_vm9 = vcmp.le.f32.partialorder %v3531_v41, 7.0  ;;  %v1542_v3 = vadd.f32 %v1541_v52, %v1519_v20  ;;  %v1586_v39 = vmul.f32 %v3291_v6, %v1581_v19  ;;  %v1641_v48 = vsel %vm1640_vm13, %v4781_v12, %v4780_v30  ;;  %s3035_s22 = smov 103  }
 0x7c0   : > { %vm4042_vm3 = vmand %vm4004_vm12, %vm4777_vm9  ;;  %v1739_v11 = vsel %vm3987_vm11, 1, %v4669_v5  ;;  %vm4782_vm2 = vcmp.le.f32.partialorder %v3547_v29, 7.0  ;;  %v1627_v42 = vsel %vm4010_vm1, %v1618_v9, 0.0  ;;  %vm4065_vm15 = vcmp.eq.s32.totalorder %v1675_v56, 1  ;;  %v4805_v56 = vld [vmem:[#allocation38_spill] sm:$0xff]  ;;  %v4148_v12 = vpop.permute.xlu0 %2277 }
 0x7c1   : > { %v4046_v62 = vpop.permute.xlu1 %1778  ;;  %vm4059_vm0 = vmand %vm4020_vm5, %vm4782_vm2  ;;  %vm1690_vm12 = vcmask 80896   ;;  %v1721_v43 = vrot.slane %v1717_v25, %v3619_v14  ;;  %vm4787_vm11 = vcmp.ge.f32.partialorder %v3580_v23, 0.0  ;;  %v1565_v46 = vadd.f32 %v1564_v28, %v1542_v3 }
 0x7c2   : > { %vm4075_vm13 = vmand %vm3795_vm14, %vm4787_vm11  ;;  %v1609_v60 = vmul.f32 %v4792_v7, %v1604_v54  ;;  %v1664_v59 = vsel %vm1663_vm10, %v4794_v50, %v4793_v27  ;;  %v1762_v24 = vsel %vm4042_vm3, 1, %v4669_v5  ;;  %v1650_v13 = vsel %vm4033_vm4, %v1641_v48, 0.0  ;;  %v4820_v27 = vld [vmem:[#allocation12_spill] sm:$0xff] }
 0x7c3   : > { %2171 = vrot.lane.b32.xlu1 %v3325_v49, %s3019_s23  ;;  %vm4083_vm1 = vmand %vm1830_vm8, %vm1831_vm7  ;;  %vm4098_vm14 = vcmp.eq.s32.totalorder %v1698_v40, 1  ;;  %vm1713_vm8 = vcmask 72704   ;;  %v1743_v32 = vrot.slane %v1739_v11, %v3619_v14  ;;  %vm4797_vm7 = vcmp.ge.f32.partialorder %v3502_v55, 0.0  ;;  %s3037_s23 = smov 102  }
 0x7c4   : > { %vm1833_vm6 = vmand %vm4083_vm1, %vm4797_vm7  ;;  %v1587_v16 = vadd.f32 %v1586_v39, %v1565_v46  ;;  %v1632_v8 = vmul.f32 %v4798_v17, %v1627_v42  ;;  %v1691_v53 = vsel %vm1690_vm12, %v4800_v47, %v4799_v61  ;;  %v1785_v44 = vsel %vm4059_vm0, 1, %v4669_v5  ;;  %v4826_v47 = vld [vmem:[#allocation14_spill] sm:$0xff] }
 0x7c5   : > { %v1799_v18 = vpop.permute.xlu1 %1798  ;;  %vm4801_vm5 = vcmp.le.f32.partialorder %v3580_v23, 7.0  ;;  %v1677_v52 = vsel %vm4065_vm15, %v1664_v59, 0.0  ;;  %v1766_v35 = vrot.slane %v1762_v24, %v3619_v14  ;;  %v1655_v19 = vmul.f32 %v4802_v15, %v1650_v13  ;;  %v4822_v13 = vld [vmem:[#allocation13_spill] sm:$0xff] }
 0x7c6   : > { %vm1807_vm4 = vmand %vm4075_vm13, %vm4801_vm5  ;;  %v1610_v37 = vadd.f32 %v1609_v60, %v1587_v16  ;;  %vm4123_vm10 = vcmp.eq.s32.totalorder %v1721_v43, 1  ;;  %v1714_v20 = vsel %vm1713_vm8, %v4806_v58, %v4805_v56  ;;  %vm4807_vm9 = vcmp.le.f32.partialorder %v3502_v55, 7.0 }
 0x7c7   : > { %2191 = vrot.lane.b32.xlu1 %v3325_v49, %s3020_s25  ;;  %vm4132_vm3 = vmand %vm1833_vm6, %vm4807_vm9  ;;  %v1700_v9 = vsel %vm4098_vm14, %v1691_v53, 0.0  ;;  %vm1758_vm2 = vcmask 56320   ;;  %v1789_v25 = vrot.slane %v1785_v44, %v3619_v14  ;;  %v1808_v54 = vsel %vm1807_vm4, 1, %v4669_v5  ;;  %v4847_v44 = vld [vmem:[#allocation6_spill] sm:$0xff]  ;;  %s3038_s25 = smov 38  }
 0x7c8   : > { %v1633_v40 = vadd.f32 %v1632_v8, %v1610_v37  ;;  %v1682_v3 = vmul.f32 %v4810_v2, %v1677_v52  ;;  %vm4141_vm0 = vcmp.eq.s32.totalorder %v1743_v32, 1  ;;  %vm4813_vm15 = vcmask 64512   ;;  %v4830_v37 = vld [vmem:[#allocation15_spill] sm:$0xff] }
 0x7c9   : > { %v1802_v38 = vpop.permute.xlu1 %1801  ;;  %v1736_v30 = vsel %vm4813_vm15, %v3737_v4, %v3799_v10  ;;  %v1723_v48 = vsel %vm4123_vm10, %v1714_v20, 0.0  ;;  %vm4152_vm12 = vcmp.eq.s32.totalorder %v1766_v35, 1  ;;  %vm1781_vm11 = vcmask 48128   ;;  %v4817_v10 = vld [vmem:[#allocation11_spill] sm:$0xff]  ;;  %v4832_v20 = vld [vmem:[#allocation16_spill] sm:$0xff] }
 0x7ca   : > { %v1835_v57 = vsel %vm4132_vm3, 1, %v4669_v5  ;;  %vm4816_vm13 = vcmp.ge.f32.partialorder %v3507_v51, 0.0  ;;  %v1656_v4 = vadd.f32 %v1655_v19, %v1633_v40  ;;  %v1705_v42 = vmul.f32 %v4817_v10, %v1700_v9 }
 0x7cb   : > { %2194 = vrot.lane.b32.xlu1 %v3325_v49, %s3021_s29  ;;  %vm1856_vm14 = vmand %vm4083_vm1, %vm4816_vm13  ;;  %v1759_v6 = vsel %vm1758_vm2, %v3863_v34, %v3928_v33  ;;  %v1812_v43 = vrot.slane %v1808_v54, %v3619_v14  ;;  %v1745_v22 = vsel %vm4141_vm0, %v1736_v30, 0.0  ;;  %vm4171_vm8 = vcmp.eq.s32.totalorder %v1789_v25, 1  ;;  %v4835_v54 = vld [vmem:[#allocation17_spill] sm:$0xff]  ;;  %s3039_s29 = smov 37  }
 0x7cc   : > { %vm1804_vm7 = vcmask 39936   ;;  %v1683_v60 = vadd.f32 %v1682_v3, %v1656_v4  ;;  %v1728_v50 = vmul.f32 %v4820_v27, %v1723_v48  ;;  %v1782_v59 = vsel %vm1781_vm11, %v3991_v21, %v4046_v62  ;;  %v4190_v62 = vpop.permute.xlu0 %2300  ;;  %v4838_v4 = vld [vmem:[#allocation18_spill] sm:$0xff] }
 0x7cd   : > { %v1822_v7 = vpop.permute.xlu1 %1821  ;;  %v1839_v24 = vrot.slane %v1835_v57, %v3619_v14  ;;  %vm4821_vm6 = vcmp.le.f32.partialorder %v3507_v51, 7.0  ;;  %v1768_v34 = vsel %vm4152_vm12, %v1759_v6, 0.0  ;;  %vm1827_vm4 = vcmask 23552  }
 0x7ce   : > { %vm1857_vm5 = vmand %vm1856_vm14, %vm4821_vm6  ;;  %v1706_v33 = vadd.f32 %v1705_v42, %v1683_v60  ;;  %v1750_v26 = vmul.f32 %v4822_v13, %v1745_v22  ;;  %vm4186_vm10 = vcmp.eq.s32.totalorder %v1812_v43, 1  ;;  %v1805_v21 = vsel %vm1804_vm7, %v1799_v18, %v1802_v38 }
 0x7cf   : > { %2214 = vrot.lane.b32.xlu1 %v3325_v49, %s2894_s24  ;;  %v1791_v16 = vsel %vm4171_vm8, %v1782_v59, 0.0  ;;  %v1858_v8 = vsel %vm1857_vm5, 1, %v4669_v5  ;;  %vm4825_vm9 = vcmp.ge.f32.partialorder %v3496_v31, 0.0  ;;  %v1773_v53 = vmul.f32 %v4826_v47, %v1768_v34  ;;  %s3022_s24 = smov 111  }
 0x7d0   : > { %vm1893_vm3 = vmand %vm4083_vm1, %vm4825_vm9  ;;  %v1729_v61 = vadd.f32 %v1728_v50, %v1706_v33  ;;  %vm4200_vm2 = vcmp.eq.s32.totalorder %v1839_v24, 1  ;;  %v1814_v52 = vsel %vm4186_vm10, %v1805_v21, 0.0  ;;  %vm4829_vm0 = vcmp.ge.f32.partialorder %v3516_v0, 0.0  ;;  %v4221_v9 = vpop.permute.xlu0 %2327 }
 0x7d1   : > { %v1825_v17 = vpop.permute.xlu1 %1824  ;;  %vm1878_vm15 = vmand %vm4083_vm1, %vm4829_vm0  ;;  %v1796_v15 = vmul.f32 %v4830_v37, %v1791_v16  ;;  %v1862_v19 = vrot.slane %v1858_v8, %v3619_v14  ;;  %vm4831_vm12 = vcmp.le.f32.partialorder %v3496_v31, 7.0  ;;  %v1819_v28 = vmul.f32 %v4832_v20, %v1814_v52 }
 0x7d2   : > { %v1828_v18 = vsel %vm1827_vm4, %v1822_v7, %v1825_v17  ;;  %v1751_v35 = vadd.f32 %v1750_v26, %v1729_v61  ;;  %vm1894_vm11 = vmand %vm1893_vm3, %vm4831_vm12  ;;  %vm4833_vm13 = vcmp.le.f32.partialorder %v3516_v0, 7.0  ;;  %vm1854_vm8 = vcmask 15360   ;;  %v4844_v26 = vld [vmem:[#allocation19_spill] sm:$0xff]  ;;  %v4845_v17 = vld [vmem:[#allocation5_spill] sm:$0xff] }
 0x7d3   : > { %2217 = vrot.lane.b32.xlu1 %v3325_v49, %s2897_s27  ;;  %v1841_v63 = vsel %vm4200_vm2, %v1828_v18, 0.0  ;;  %vm1879_vm14 = vmand %vm1878_vm15, %vm4833_vm13  ;;  %vm4834_vm7 = vcmp.ge.f32.partialorder %v3531_v41, 0.0  ;;  %vm1863_vm5 = vcmp.eq.s32.totalorder %v1862_v19, 1  ;;  %v1895_v40 = vsel %vm1894_vm11, 1, %v4669_v5  ;;  %s3023_s27 = smov 47  }
 0x7d4   : > { %v1774_v58 = vadd.f32 %v1773_v53, %v1751_v35  ;;  %vm1916_vm6 = vmand %vm4083_vm1, %vm4834_vm7  ;;  %v1846_v38 = vmul.f32 %v4835_v54, %v1841_v63  ;;  %v1880_v3 = vsel %vm1879_vm14, 1, %v4669_v5  ;;  %vm4836_vm4 = vcmp.le.f32.partialorder %v3531_v41, 7.0  ;;  %v4241_v6 = vpop.permute.xlu0 %2350 }
 0x7d5   : > { %v1849_v56 = vpop.permute.xlu1 %1848  ;;  %vm1917_vm10 = vmand %vm1916_vm6, %vm4836_vm4  ;;  %vm4837_vm9 = vcmp.ge.f32.partialorder %v3547_v29, 0.0  ;;  %v1899_v11 = vrot.slane %v1895_v40, %v3619_v14  ;;  %v1884_v42 = vrot.slane %v1880_v3, %v3619_v14  ;;  %vm4839_vm2 = vcmp.le.f32.partialorder %v3547_v29, 7.0 }
 0x7d6   : > { %v1797_v25 = vadd.f32 %v1796_v15, %v1774_v58  ;;  %vm1939_vm3 = vmand %vm4083_vm1, %vm4837_vm9  ;;  %v1918_v22 = vsel %vm1917_vm10, 1, %v4669_v5  ;;  %v1985_v59 = vadd.f32 1.0, %v3488_v1  ;;  %vm4842_vm11 = vcmask 7168   ;;  %v4851_v58 = vld [vmem:[#allocation20_spill] sm:$0xff] }
 0x7d7   : > { %2236 = vrot.lane.b32.xlu1 %v3325_v49, %s3022_s24  ;;  %vm1940_vm0 = vmand %vm1939_vm3, %vm4839_vm2  ;;  %vm4247_vm15 = vcmp.eq.s32.totalorder %v1899_v11, 1  ;;  %vm1885_vm12 = vcmp.eq.s32.totalorder %v1884_v42, 1  ;;  %v1922_v60 = vrot.slane %v1918_v22, %v3619_v14  ;;  %vm1914_vm13 = vcmask 515072   ;;  %v4857_v22 = vld [vmem:[#allocation22_spill] sm:$0xff] }
 0x7d8   : > { %v1820_v39 = vadd.f32 %v1819_v28, %v1797_v25  ;;  %v1941_v50 = vsel %vm1940_vm0, 1, %v4669_v5  ;;  %v1901_v34 = vsel %vm4247_vm15, %v3325_v49, 0.0  ;;  %v1912_v33 = vpop.permute.xlu0 %1911  ;;  %vm4843_vm14 = vcmp.ge.f32.partialorder %v3580_v23, 0.0 }
 0x7d9   : > { %v1852_v2 = vpop.permute.xlu1 %1851  ;;  %vm1923_vm7 = vcmp.eq.s32.totalorder %v1922_v60, 1  ;;  %v1945_v21 = vrot.slane %v1941_v50, %v3619_v14  ;;  %vm1986_vm6 = vcmp.ge.f32.partialorder %v1985_v59, 0.0  ;;  %v1906_v8 = vmul.f32 %v4845_v17, %v1901_v34 }
 0x7da   : > { %v1855_v30 = vsel %vm1854_vm8, %v1849_v56, %v1852_v2  ;;  %v1847_v57 = vadd.f32 %v1846_v38, %v1820_v39  ;;  %vm1962_vm8 = vmand %vm4083_vm1, %vm4843_vm14  ;;  %vm4846_vm4 = vcmp.le.f32.partialorder %v3580_v23, 7.0  ;;  %vm1937_vm1 = vcmask 506880   ;;  %v4854_v39 = vld [vmem:[#allocation21_spill] sm:$0xff] }
 0x7db   : > { %v1864_v48 = vsel %vm1863_vm5, %v1855_v30, 0.0  ;;  %2239 = vrot.lane.b32.xlu1 %v3325_v49, %s3023_s27  ;;  %vm1987_vm5 = vcmp.le.f32.partialorder %v1985_v59, 7.0  ;;  %vm1963_vm10 = vmand %vm1962_vm8, %vm4846_vm4  ;;  %vm1946_vm9 = vcmp.eq.s32.totalorder %v1945_v21, 1  ;;  %vm4850_vm2 = vcmp.ge.f32.partialorder %v3502_v55, 0.0 }
 0x7dc   : > { %v1869_v10 = vmul.f32 %v4838_v4, %v1864_v48  ;;  %vm4270_vm3 = vmand %vm1986_vm6, %vm1987_vm5  ;;  %v1932_v35 = vpop.permute.xlu0 %1931  ;;  %v1964_v15 = vsel %vm1963_vm10, 1, %v4669_v5  ;;  %vm4852_vm15 = vcmp.le.f32.partialorder %v3502_v55, 7.0  ;;  %vm4853_vm14 = vcmp.ge.f32.partialorder %v3507_v51, 0.0 }
 0x7dd   : > { %v1872_v43 = vpop.permute.xlu1 %1871  ;;  %vm1989_vm0 = vmand %vm4270_vm3, %vm4850_vm2  ;;  %v1968_v28 = vrot.slane %v1964_v15, %v3619_v14  ;;  %vm1983_vm5 = vcmask 482304   ;;  %vm4856_vm10 = vcmp.ge.f32.partialorder %v3516_v0, 0.0 }
 0x7de   : > { %v1870_v46 = vadd.f32 %v1869_v10, %v1847_v57  ;;  %vm2012_vm8 = vmand %vm4270_vm3, %vm4853_vm14 }
 0x7df   : > { %2259 = vrot.lane.b32.xlu1 %v3325_v49, %s3024_s28 }
 0x7e1   : > { %v1875_v27 = vpop.permute.xlu1 %1874 }
 0x7e2   : > { %v1877_v24 = vsel %vm4842_vm11, %v1872_v43, %v1875_v27  ;;  %vm1960_vm11 = vcmask 498688  }
 0x7e3   : > { %v1886_v13 = vsel %vm1885_vm12, %v1877_v24, 0.0  ;;  %2262 = vrot.lane.b32.xlu1 %v3325_v49, %s3025_s15  ;;  %vm1990_vm12 = vmand %vm1989_vm0, %vm4852_vm15  ;;  %vm2010_vm0 = vcmask 474112  }
 0x7e4   : > { %v1891_v32 = vmul.f32 %v4844_v26, %v1886_v13  ;;  %v1991_v40 = vsel %vm1990_vm12, 1, %v4669_v5  ;;  %vm4859_vm12 = vcmp.ge.f32.partialorder %v3496_v31, 0.0 }
 0x7e5   : > { %v1909_v16 = vpop.permute.xlu1 %1908  ;;  %v1995_v48 = vrot.slane %v1991_v40, %v3619_v14 }
 0x7e6   : > { %v1892_v61 = vadd.f32 %v1891_v32, %v1870_v46  ;;  %v1915_v47 = vsel %vm1914_vm13, %v1909_v16, %v1912_v33  ;;  %vm1969_vm13 = vcmp.eq.s32.totalorder %v1968_v28, 1  ;;  %v4860_v33 = vld [vmem:[#allocation23_spill] sm:$0xff] }
 0x7e7   : > { %v1924_v53 = vsel %vm1923_vm7, %v1915_v47, 0.0  ;;  %2282 = vrot.lane.b32.xlu1 %v3325_v49, %s3026_s12  ;;  %vm4855_vm7 = vcmp.le.f32.partialorder %v3507_v51, 7.0  ;;  %vm1996_vm4 = vcmp.eq.s32.totalorder %v1995_v48, 1  ;;  %v4864_v47 = vld [vmem:[#allocation24_spill] sm:$0xff]  ;;  %s330_s12 = scalar_lea.vmem %s4596_s9, %s2560_s17 }
 0x7e8   : > { %v1907_v36 = vadd.f32 %v1906_v8, %v1892_v61  ;;  %v1929_v18 = vmul.f32 %v4847_v44, %v1924_v53  ;;  %vm2013_vm6 = vmand %vm2012_vm8, %vm4855_vm7  ;;  %vm2033_vm8 = vcmask 465920   ;;  %vm4862_vm7 = vcmp.ge.f32.partialorder %v3531_v41, 0.0 }
 0x7e9   : > { %v1935_v37 = vpop.permute.xlu1 %1934  ;;  %v2014_v10 = vsel %vm2013_vm6, 1, %v4669_v5  ;;  %vm2080_vm6 = vmand %vm4270_vm3, %vm4862_vm7 }
 0x7ea   : > { %v1930_v19 = vadd.f32 %v1929_v18, %v1907_v36  ;;  %v1938_v63 = vsel %vm1937_vm1, %v1932_v35, %v1935_v37  ;;  %vm2035_vm1 = vmand %vm4270_vm3, %vm4856_vm10  ;;  %v2018_v7 = vrot.slane %v2014_v10, %v3619_v14  ;;  %v4330_v37 = vpop.permute.xlu0 %2373 }
 0x7eb   : > { %v1947_v56 = vsel %vm1946_vm9, %v1938_v63, 0.0  ;;  %2285 = vrot.lane.b32.xlu1 %v3325_v49, %s3027_s16  ;;  %vm4858_vm9 = vcmp.le.f32.partialorder %v3516_v0, 7.0 }
 0x7ec   : > { %v1952_v20 = vmul.f32 %v4851_v58, %v1947_v56  ;;  %vm2036_vm2 = vmand %vm2035_vm1, %vm4858_vm9  ;;  %vm2019_vm15 = vcmp.eq.s32.totalorder %v2018_v7, 1  ;;  %vm4865_vm1 = vcmp.ge.f32.partialorder %v3547_v29, 0.0  ;;  %v4868_v58 = vld [vmem:[#allocation7_spill] sm:$0xff] }
 0x7ed   : > { %v1955_v25 = vpop.permute.xlu1 %1954  ;;  %v2037_v59 = vsel %vm2036_vm2, 1, %v4669_v5  ;;  %vm2103_vm9 = vmand %vm4270_vm3, %vm4865_vm1 }
 0x7ee   : > { %v1953_v54 = vadd.f32 %v1952_v20, %v1930_v19  ;;  %v2041_v26 = vrot.slane %v2037_v59, %v3619_v14  ;;  %v2073_v28 = vpop.permute.xlu0 %2072 }
 0x7ef   : > { %2305 = vrot.lane.b32.xlu1 %v3325_v49, %s3028_s14 }
 0x7f1   : > { %v1958_v38 = vpop.permute.xlu1 %1957 }
 0x7f2   : > { %v1961_v2 = vsel %vm1960_vm11, %v1955_v25, %v1958_v38  ;;  %vm2057_vm11 = vmand %vm4270_vm3, %vm4859_vm12  ;;  %v2149_v38 = vadd.f32 2.0, %v3488_v1 }
 0x7f3   : > { %v1970_v3 = vsel %vm1969_vm13, %v1961_v2, 0.0  ;;  %2308 = vrot.lane.b32.xlu1 %v3325_v49, %s3029_s18  ;;  %vm4861_vm13 = vcmp.le.f32.partialorder %v3496_v31, 7.0 }
 0x7f4   : > { %v1975_v30 = vmul.f32 %v4854_v39, %v1970_v3  ;;  %vm2058_vm14 = vmand %vm2057_vm11, %vm4861_vm13  ;;  %vm2078_vm11 = vcmask 449536   ;;  %v4870_v39 = vld [vmem:[#allocation25_spill] sm:$0xff]  ;;  %vm2150_vm7 = vcmp.ge.f32.partialorder %v2149_v38, 0.0 }
 0x7f5   : > { %v1978_v11 = vpop.permute.xlu1 %1977  ;;  %v2059_v17 = vsel %vm2058_vm14, 1, %v4669_v5  ;;  %vm4869_vm14 = vcmp.ge.f32.partialorder %v3580_v23, 0.0 }
 0x7f6   : > { %v1976_v57 = vadd.f32 %v1975_v30, %v1953_v54  ;;  %v2063_v36 = vrot.slane %v2059_v17, %v3619_v14 }
 0x7f7   : > { %2332 = vrot.lane.b32.xlu1 %v3325_v49, %s3030_s19 }
 0x7f8   : > { %vm2064_vm2 = vcmp.eq.s32.totalorder %v2063_v36, 1 }
 0x7f9   : > { %v1981_v4 = vpop.permute.xlu1 %1980 }
 0x7fa   : > { %v1984_v42 = vsel %vm1983_vm5, %v1978_v11, %v1981_v4  ;;  %vm2042_vm5 = vcmp.eq.s32.totalorder %v2041_v26, 1 }
 0x7fb   : > { %v1997_v43 = vsel %vm1996_vm4, %v1984_v42, 0.0  ;;  %2335 = vrot.lane.b32.xlu1 %v3325_v49, %s3031_s20  ;;  %vm4863_vm4 = vcmp.le.f32.partialorder %v3531_v41, 7.0 }
 0x7fc   : > { %v2002_v46 = vmul.f32 %v4857_v22, %v1997_v43  ;;  %vm2081_vm10 = vmand %vm2080_vm6, %vm4863_vm4  ;;  %vm2151_vm6 = vcmp.le.f32.partialorder %v2149_v38, 7.0  ;;  %v4875_v43 = vld [vmem:[#allocation8_spill] sm:$0xff]  ;;  %v4884_v38 = vld [vmem:[#allocation31_spill] sm:$0xff] }
 0x7fd   : > { %v2005_v60 = vpop.permute.xlu1 %2004  ;;  %v2082_v18 = vsel %vm2081_vm10, 1, %v4669_v5  ;;  %vm2101_vm10 = vcmask 441344  }
 0x7fe   : > { %v2003_v27 = vadd.f32 %v2002_v46, %v1976_v57  ;;  %v2086_v15 = vrot.slane %v2082_v18, %v3619_v14 }
 0x7ff   : > { %2355 = vrot.lane.b32.xlu1 %v3325_v49, %s3032_s26 }
 0x800   : > { %vm2087_vm13 = vcmp.eq.s32.totalorder %v2086_v15, 1 }
 0x801   : > { %v2008_v50 = vpop.permute.xlu1 %2007 }
 0x802   : > { %v2011_v24 = vsel %vm2010_vm0, %v2005_v60, %v2008_v50  ;;  %vm4866_vm0 = vcmask 457728  }
 0x803   : > { %v2020_v34 = vsel %vm2019_vm15, %v2011_v24, 0.0  ;;  %2358 = vrot.lane.b32.xlu1 %v3325_v49, %s3033_s21  ;;  %vm4867_vm15 = vcmp.le.f32.partialorder %v3547_v29, 7.0  ;;  %v4878_v24 = vld [vmem:[#allocation26_spill] sm:$0xff] }
 0x804   : > { %v2025_v13 = vmul.f32 %v4860_v33, %v2020_v34  ;;  %vm2104_vm12 = vmand %vm2103_vm9, %vm4867_vm15 }
 0x805   : > { %v2028_v32 = vpop.permute.xlu1 %2027  ;;  %v2105_v54 = vsel %vm2104_vm12, 1, %v4669_v5  ;;  %vm4355_vm9 = vmand %vm2150_vm7, %vm2151_vm6  ;;  %vm2124_vm12 = vcmask 433152   ;;  %vm2147_vm6 = vcmask 416768  }
 0x806   : > { %v2026_v21 = vadd.f32 %v2025_v13, %v2003_v27  ;;  %v2109_v48 = vrot.slane %v2105_v54, %v3619_v14 }
 0x807   : > { %2378 = vrot.lane.b32.xlu1 %v3325_v49, %s3034_s11 }
 0x808   : > { %vm2110_vm1 = vcmp.eq.s32.totalorder %v2109_v48, 1 }
 0x809   : > { %v2031_v16 = vpop.permute.xlu1 %2030 }
 0x80a   : > { %v2034_v8 = vsel %vm2033_vm8, %v2028_v32, %v2031_v16  ;;  %vm2126_vm8 = vmand %vm4270_vm3, %vm4869_vm14  ;;  %vm4874_vm3 = vcmp.ge.f32.partialorder %v3502_v55, 0.0 }
 0x80b   : > { %v2043_v61 = vsel %vm2042_vm5, %v2034_v8, 0.0  ;;  %2381 = vrot.lane.b32.xlu1 %v3325_v49, %s2902_s13  ;;  %s3036_s13 = smov 39   ;;  %vm4871_vm5 = vcmp.le.f32.partialorder %v3580_v23, 7.0  ;;  %v4881_v8 = vld [vmem:[#allocation27_spill] sm:$0xff] }
 0x80c   : > { %v2048_v53 = vmul.f32 %v4864_v47, %v2043_v61  ;;  %vm2127_vm4 = vmand %vm2126_vm8, %vm4871_vm5  ;;  %vm4879_vm8 = vcmp.le.f32.partialorder %v3507_v51, 7.0 }
 0x80d   : > { %v2051_v44 = vpop.permute.xlu1 %2050  ;;  %v2128_v4 = vsel %vm2127_vm4, 1, %v4669_v5  ;;  %vm4880_vm4 = vcmp.ge.f32.partialorder %v3516_v0, 0.0 }
 0x80e   : > { %v2049_v35 = vadd.f32 %v2048_v53, %v2026_v21  ;;  %v2132_v46 = vrot.slane %v2128_v4, %v3619_v14 }
 0x80f   : > { %2400 = vrot.lane.b32.xlu1 %v3325_v49, %s3035_s22 }
 0x811   : > { %v2054_v19 = vpop.permute.xlu1 %2053 }
 0x812   : > { %v2056_v63 = vsel %vm4866_vm0, %v2051_v44, %v2054_v19  ;;  %vm4876_vm0 = vcmp.le.f32.partialorder %v3502_v55, 7.0  ;;  %v4883_v19 = vld [vmem:[#allocation29_spill] sm:$0xff] }
 0x813   : > { %v2065_v56 = vsel %vm2064_vm2, %v2056_v63, 0.0  ;;  %2403 = vrot.lane.b32.xlu1 %v3325_v49, %s3036_s13  ;;  %vm2153_vm2 = vmand %vm4355_vm9, %vm4874_vm3 }
 0x814   : > { %v2070_v20 = vmul.f32 %v4868_v58, %v2065_v56  ;;  %vm2154_vm15 = vmand %vm2153_vm2, %vm4876_vm0  ;;  %vm2174_vm2 = vcmask 408576  }
 0x815   : > { %v2076_v25 = vpop.permute.xlu1 %2075  ;;  %v2155_v50 = vsel %vm2154_vm15, 1, %v4669_v5  ;;  %vm2197_vm15 = vcmask 400384  }
 0x816   : > { %v2071_v40 = vadd.f32 %v2070_v20, %v2049_v35  ;;  %v2079_v2 = vsel %vm2078_vm11, %v2073_v28, %v2076_v25  ;;  %vm2133_vm11 = vcmp.eq.s32.totalorder %v2132_v46, 1  ;;  %v2159_v33 = vrot.slane %v2155_v50, %v3619_v14 }
 0x817   : > { %v2088_v3 = vsel %vm2087_vm13, %v2079_v2, 0.0  ;;  %2423 = vrot.lane.b32.xlu1 %v3325_v49, %s3037_s23  ;;  %vm4877_vm13 = vcmp.ge.f32.partialorder %v3507_v51, 0.0 }
 0x818   : > { %v2093_v30 = vmul.f32 %v4870_v39, %v2088_v3  ;;  %vm2176_vm14 = vmand %vm4355_vm9, %vm4877_vm13  ;;  %vm2160_vm5 = vcmp.eq.s32.totalorder %v2159_v33, 1 }
 0x819   : > { %v2096_v11 = vpop.permute.xlu1 %2095  ;;  %vm2177_vm7 = vmand %vm2176_vm14, %vm4879_vm8  ;;  %vm4886_vm14 = vcmp.ge.f32.partialorder %v3531_v41, 0.0 }
 0x81a   : > { %v2094_v57 = vadd.f32 %v2093_v30, %v2071_v40  ;;  %v2178_v21 = vsel %vm2177_vm7, 1, %v4669_v5  ;;  %vm2244_vm8 = vmand %vm4355_vm9, %vm4886_vm14  ;;  %vm4894_vm14 = vcmp.le.f32.partialorder %v3547_v29, 7.0 }
 0x81b   : > { %2426 = vrot.lane.b32.xlu1 %v3325_v49, %s3038_s25  ;;  %v2182_v47 = vrot.slane %v2178_v21, %v3619_v14 }
 0x81d   : > { %v2099_v52 = vpop.permute.xlu1 %2098  ;;  %vm2183_vm0 = vcmp.eq.s32.totalorder %v2182_v47, 1 }
 0x81e   : > { %v2102_v10 = vsel %vm2101_vm10, %v2096_v11, %v2099_v52  ;;  %vm2199_vm10 = vmand %vm4355_vm9, %vm4880_vm4 }
 0x81f   : > { %v2111_v42 = vsel %vm2110_vm1, %v2102_v10, 0.0  ;;  %2449 = vrot.lane.b32.xlu1 %v3325_v49, %s3039_s29  ;;  %vm4882_vm1 = vcmp.le.f32.partialorder %v3516_v0, 7.0 }
 0x820   : > { %v2116_v22 = vmul.f32 %v4875_v43, %v2111_v42  ;;  %vm2200_vm3 = vmand %vm2199_vm10, %vm4882_vm1  ;;  %v2880_v43 = vld [vmem:[%s4595_s8] sm:$0x1]  ;;  %vm4888_vm10 = vcmp.le.f32.partialorder %v3531_v41, 7.0 }
 0x821   : > { %v2119_v7 = vpop.permute.xlu1 %2118  ;;  %v2201_v18 = vsel %vm2200_vm3, 1, %v4669_v5  ;;  %vm2245_vm1 = vmand %vm2244_vm8, %vm4888_vm10  ;;  %vm4897_vm10 = vcmp.ge.f32.partialorder %v3507_v51, 0.0 }
 0x822   : > { %v2117_v60 = vadd.f32 %v2116_v22, %v2094_v57  ;;  %v2205_v56 = vrot.slane %v2201_v18, %v3619_v14  ;;  %v2313_v22 = vadd.f32 3.0, %v2880_v43 }
 0x824   : > { %vm2314_vm7 = vcmp.ge.f32.partialorder %v2313_v22, 0.0 }
 0x825   : > { %v2122_v27 = vpop.permute.xlu1 %2121 }
 0x826   : > { %v2125_v49 = vsel %vm2124_vm12, %v2119_v7, %v2122_v27  ;;  %vm2206_vm12 = vcmp.eq.s32.totalorder %v2205_v56, 1 }
 0x827   : > { %v2134_v59 = vsel %vm2133_vm11, %v2125_v49, 0.0  ;;  %vm4885_vm11 = vcmp.ge.f32.partialorder %v3496_v31, 0.0  ;;  %v2246_v49 = vsel %vm2245_vm1, 1, %v4669_v5  ;;  %vm2242_vm1 = vcmask 384000  }
 0x828   : > { %v2139_v34 = vmul.f32 %v4878_v24, %v2134_v59  ;;  %vm2221_vm13 = vmand %vm4355_vm9, %vm4885_vm11  ;;  %vm4893_vm11 = vcmp.ge.f32.partialorder %v3502_v55, 0.0 }
 0x829   : > { %v2142_v13 = vpop.permute.xlu1 %2141 }
 0x82a   : > { %v2140_v26 = vadd.f32 %v2139_v34, %v2117_v60  ;;  %v2250_v34 = vrot.slane %v2246_v49, %v3619_v14 }
 0x82d   : > { %v2145_v32 = vpop.permute.xlu1 %2144 }
 0x82e   : > { %v2148_v16 = vsel %vm2147_vm6, %v2142_v13, %v2145_v32  ;;  %vm2315_vm6 = vcmp.le.f32.partialorder %v2313_v22, 7.0 }
 0x82f   : > { %v2161_v17 = vsel %vm2160_vm5, %v2148_v16, 0.0  ;;  %vm4887_vm5 = vcmp.le.f32.partialorder %v3496_v31, 7.0  ;;  %vm4414_vm3 = vmand %vm2314_vm7, %vm2315_vm6  ;;  %vm4895_vm7 = vcmp.le.f32.partialorder %v3580_v23, 7.0  ;;  %v4469_v16 = vpop.permute.xlu0 %2395 }
 0x830   : > { %v2166_v61 = vmul.f32 %v4881_v8, %v2161_v17  ;;  %vm2222_vm4 = vmand %vm2221_vm13, %vm4887_vm5  ;;  %vm4896_vm5 = vcmp.le.f32.partialorder %v3502_v55, 7.0 }
 0x831   : > { %v2169_v53 = vpop.permute.xlu1 %2168  ;;  %vm2317_vm13 = vmand %vm4414_vm3, %vm4893_vm11  ;;  %v2223_v27 = vsel %vm2222_vm4, 1, %v4669_v5 }
 0x832   : > { %v2167_v36 = vadd.f32 %v2166_v61, %v2140_v26  ;;  %v2227_v1 = vrot.slane %v2223_v27, %v3619_v14  ;;  %vm2340_vm4 = vmand %vm4414_vm3, %vm4897_vm10  ;;  %vm4475_vm10 = vcmp.eq.s32.totalorder %v2250_v34, 1 }
 0x834   : > { %vm4456_vm11 = vcmp.eq.s32.totalorder %v2227_v1, 1 }
 0x835   : > { %v2172_v44 = vpop.permute.xlu1 %2171 }
 0x836   : > { %v2175_v35 = vsel %vm2174_vm2, %v2169_v53, %v2172_v44  ;;  %vm4891_vm2 = vcmp.ge.f32.partialorder %v3547_v29, 0.0 }
 0x837   : > { %v2184_v15 = vsel %vm2183_vm0, %v2175_v35, 0.0  ;;  %vm2267_vm0 = vmand %vm4355_vm9, %vm4891_vm2  ;;  %vm4898_vm2 = vcmp.ge.f32.partialorder %v3516_v0, 0.0 }
 0x838   : > { %v2189_v63 = vmul.f32 %v4883_v19, %v2184_v15  ;;  %vm2268_vm8 = vmand %vm2267_vm0, %vm4894_vm14  ;;  %vm4903_vm14 = vcmp.le.f32.partialorder %v3516_v0, 7.0 }
 0x839   : > { %v2192_v58 = vpop.permute.xlu1 %2191  ;;  %v2269_v59 = vsel %vm2268_vm8, 1, %v4669_v5  ;;  %vm2363_vm0 = vmand %vm4414_vm3, %vm4898_vm2  ;;  %vm2288_vm2 = vcmask 367616  }
 0x83a   : > { %v2190_v20 = vadd.f32 %v2189_v63, %v2167_v36  ;;  %v2273_v26 = vrot.slane %v2269_v59, %v3619_v14  ;;  %vm4465_vm8 = vmand %vm2363_vm0, %vm4903_vm14  ;;  %v4914_v63 = vld [vmem:[#allocation34_spill] sm:$0xff] }
 0x83b   : > { %v2365_v15 = vsel %vm4465_vm8, 1, %v4669_v5  ;;  %vm2338_vm8 = vcmask 343040  }
 0x83c   : > { %vm4488_vm0 = vcmp.eq.s32.totalorder %v2273_v26, 1 }
 0x83d   : > { %v2195_v28 = vpop.permute.xlu1 %2194 }
 0x83e   : > { %v2198_v25 = vsel %vm2197_vm15, %v2192_v58, %v2195_v28  ;;  %vm4892_vm15 = vcmp.ge.f32.partialorder %v3580_v23, 0.0 }
 0x83f   : > { %v2207_v54 = vsel %vm2206_vm12, %v2198_v25, 0.0  ;;  %vm2290_vm12 = vmand %vm4355_vm9, %vm4892_vm15  ;;  %vm4899_vm15 = vcmp.le.f32.partialorder %v3507_v51, 7.0 }
 0x840   : > { %v2212_v40 = vmul.f32 %v4884_v38, %v2207_v54  ;;  %vm2291_vm6 = vmand %vm2290_vm12, %vm4895_vm7  ;;  %vm2265_vm7 = vcmask 375808  }
 0x841   : > { %v2215_v2 = vpop.permute.xlu1 %2214  ;;  %vm2318_vm9 = vmand %vm2317_vm13, %vm4896_vm5  ;;  %v2292_v55 = vsel %vm2291_vm6, 1, %v4669_v5  ;;  %vm4902_vm13 = vcmask 392192   ;;  %vm4906_vm6 = vcmp.ge.f32.partialorder %v3496_v31, 0.0 }
 0x842   : > { %v4391_v3 = vadd.f32 %v2212_v40, %v2190_v20  ;;  %vm2341_vm12 = vmand %vm2340_vm4, %vm4899_vm15  ;;  %v2319_v32 = vsel %vm2318_vm9, 1, %v4669_v5  ;;  %v2296_v0 = vrot.slane %v2292_v55, %v3619_v14  ;;  %vm4909_vm9 = vcmp.ge.f32.partialorder %v3531_v41, 0.0  ;;  %v2419_v20 = vpop.permute.xlu0 %2418 }
 0x843   : > { %vm2385_vm5 = vmand %vm4414_vm3, %vm4906_vm6  ;;  %v2342_v61 = vsel %vm2341_vm12, 1, %v4669_v5  ;;  %v2323_v53 = vrot.slane %v2319_v32, %v3619_v14  ;;  %vm2311_vm12 = vcmask 351232   ;;  %vm4919_vm6 = vcmp.ge.f32.partialorder %v3547_v29, 0.0 }
 0x844   : > { %vm2408_vm4 = vmand %vm4414_vm3, %vm4909_vm9  ;;  %v2346_v35 = vrot.slane %v2342_v61, %v3619_v14  ;;  %vm4503_vm14 = vcmp.eq.s32.totalorder %v2296_v0, 1  ;;  %v2369_v40 = vrot.slane %v2365_v15, %v3619_v14  ;;  %vm2361_vm9 = vcmask 334848  }
 0x845   : > { %v2218_v39 = vpop.permute.xlu1 %2217 }
 0x846   : > { %v2220_v13 = vsel %vm4902_vm13, %v2215_v2, %v2218_v39  ;;  %v2442_v43 = vpop.permute.xlu0 %2441 }
 0x847   : > { %v2229_v47 = vsel %vm4456_vm11, %v2220_v13, 0.0  ;;  %vm4913_vm11 = vcmp.le.f32.partialorder %v3531_v41, 7.0 }
 0x848   : > { %vm2409_vm13 = vmand %vm2408_vm4, %vm4913_vm11  ;;  %v2234_v56 = vmul.f32 %v4914_v63, %v2229_v47  ;;  %vm4922_vm4 = vcmp.le.f32.partialorder %v3547_v29, 7.0  ;;  %vm4928_vm11 = vcmask 326656  }
 0x849   : > { %v2237_v30 = vpop.permute.xlu1 %2236  ;;  %v2410_v2 = vsel %vm2409_vm13, 1, %v4669_v5  ;;  %vm4929_vm13 = vcmp.le.f32.partialorder %v3580_v23, 7.0 }
 0x84a   : > { %v2465_v32 = vpop.permute.xlu0 %2464 }
 0x84d   : > { %v2240_v48 = vpop.permute.xlu1 %2239 }
 0x84e   : > { %v2243_v8 = vsel %vm2242_vm1, %v2237_v30, %v2240_v48  ;;  %vm4912_vm1 = vcmp.le.f32.partialorder %v3496_v31, 7.0 }
 0x84f   : > { %vm2386_vm15 = vmand %vm2385_vm5, %vm4912_vm1  ;;  %v2252_v18 = vsel %vm4475_vm10, %v2243_v8, 0.0  ;;  %vm4525_vm10 = vcmp.eq.s32.totalorder %v2346_v35, 1 }
 0x850   : > { %v2387_v54 = vsel %vm2386_vm15, 1, %v4669_v5  ;;  %vm2431_vm5 = vmand %vm4414_vm3, %vm4919_vm6  ;;  %v2257_v41 = vmul.f32 %v4094_v45, %v2252_v18  ;;  %vm4544_vm15 = vcmp.eq.s32.totalorder %v2369_v40, 1 }
 0x851   : > { %v2260_v11 = vpop.permute.xlu1 %2259 }
 0x855   : > { %v2263_v57 = vpop.permute.xlu1 %2262 }
 0x856   : > { %v2266_v44 = vsel %vm2265_vm7, %v2260_v11, %v2263_v57  ;;  %vm4509_vm7 = vcmp.eq.s32.totalorder %v2323_v53, 1  ;;  %v2235_v11 = vadd.f32 %v2234_v56, %v4391_v3 }
 0x857   : > { %v2275_v28 = vsel %vm4488_vm0, %v2266_v44, 0.0  ;;  %vm4923_vm0 = vcmp.ge.f32.partialorder %v3580_v23, 0.0 }
 0x858   : > { %v2280_v45 = vmul.f32 %v4148_v12, %v2275_v28  ;;  %vm2454_vm1 = vmand %vm4414_vm3, %vm4923_vm0  ;;  %v2258_v3 = vadd.f32 %v2257_v41, %v2235_v11 }
 0x859   : > { %v2283_v52 = vpop.permute.xlu1 %2282 }
 0x85a   : > { %v2281_v27 = vadd.f32 %v2280_v45, %v2258_v3 }
 0x85d   : > { %v2286_v4 = vpop.permute.xlu1 %2285 }
 0x85e   : > { %v2289_v31 = vsel %vm2288_vm2, %v2283_v52, %v2286_v4  ;;  %v2391_v52 = vrot.slane %v2387_v54, %v3619_v14  ;;  %vm2432_vm2 = vmand %vm2431_vm5, %vm4922_vm4  ;;  %vm2452_vm5 = vcmask 302080  }
 0x85f   : > { %v2298_v39 = vsel %vm4503_vm14, %v2289_v31, 0.0  ;;  %vm2455_vm14 = vmand %vm2454_vm1, %vm4929_vm13 }
 0x860   : > { %v2303_v12 = vmul.f32 %v4190_v62, %v2298_v39  ;;  %vm4553_vm3 = vcmp.eq.s32.totalorder %v2391_v52, 1  ;;  %v2456_v23 = vsel %vm2455_vm14, 1, %v4669_v5 }
 0x861   : > { %v4393_v10 = vpop.permute.xlu1 %2305  ;;  %v2460_v17 = vrot.slane %v2456_v23, %v3619_v14 }
 0x862   : > { %v2304_v59 = vadd.f32 %v2303_v12, %v2281_v27 }
 0x865   : > { %v4395_v42 = vpop.permute.xlu1 %2308 }
 0x866   : > { %v2312_v38 = vsel %vm2311_vm12, %v4393_v10, %v4395_v42  ;;  %v2414_v10 = vrot.slane %v2410_v2, %v3619_v14  ;;  %vm2406_vm12 = vcmask 318464  }
 0x867   : > { %v2325_v4 = vsel %vm4509_vm7, %v2312_v38, 0.0  ;;  %v4932_v38 = vld [vmem:[#allocation9_spill] sm:$0xff] }
 0x868   : > { %v2330_v7 = vmul.f32 %v4221_v9, %v2325_v4  ;;  %vm4562_vm7 = vcmp.eq.s32.totalorder %v2414_v10, 1 }
 0x869   : > { %v4408_v46 = vpop.permute.xlu1 %2332 }
 0x86a   : > { %v2331_v13 = vadd.f32 %v2330_v7, %v2304_v59 }
 0x86d   : > { %v4418_v60 = vpop.permute.xlu1 %2335 }
 0x86e   : > { %v2339_v57 = vsel %vm2338_vm8, %v4408_v46, %v4418_v60  ;;  %v2433_v60 = vsel %vm2432_vm2, 1, %v4669_v5  ;;  %vm2429_vm8 = vcmask 310272  }
 0x86f   : > { %v2348_v22 = vsel %vm4525_vm10, %v2339_v57, 0.0  ;;  %v2437_v34 = vrot.slane %v2433_v60, %v3619_v14  ;;  %vm2461_vm10 = vcmp.eq.s32.totalorder %v2460_v17, 1 }
 0x871   : > { %v4435_v50 = vpop.permute.xlu1 %2355  ;;  %vm2438_vm6 = vcmp.eq.s32.totalorder %v2437_v34, 1 }
 0x875   : > { %v2359_v24 = vpop.permute.xlu1 %2358 }
 0x876   : > { %v2362_v29 = vsel %vm2361_vm9, %v4435_v50, %v2359_v24  ;;  %v2353_v24 = vmul.f32 %v4241_v6, %v2348_v22  ;;  %vm4933_vm9 = vcmask 523264  }
 0x877   : > { %v2371_v50 = vsel %vm4544_vm15, %v2362_v29, 0.0 }
 0x878   : > { %v2376_v26 = vmul.f32 %v4330_v37, %v2371_v50  ;;  %v2447_v37 = vpop.permute.xlu0 %2446 }
 0x879   : > { %v2379_v51 = vpop.permute.xlu1 %2378 }
 0x87d   : > { %v2382_v19 = vpop.permute.xlu1 %2381 }
 0x87e   : > { %v2384_v62 = vsel %vm4928_vm11, %v2379_v51, %v2382_v19  ;;  %v2354_v51 = vadd.f32 %v2353_v24, %v2331_v13 }
 0x87f   : > { %v2393_v55 = vsel %vm4553_vm3, %v2384_v62, 0.0 }
 0x880   : > { %v2398_v6 = vmul.f32 %v4469_v16, %v2393_v55  ;;  %v2377_v0 = vadd.f32 %v2376_v26, %v2354_v51 }
 0x881   : > { %v2401_v48 = vpop.permute.xlu1 %2400 }
 0x882   : > { %v2399_v5 = vadd.f32 %v2398_v6, %v2377_v0 }
 0x885   : > { %v2404_v46 = vpop.permute.xlu1 %2403 }
 0x886   : > { %v2407_v9 = vsel %vm2406_vm12, %v2401_v48, %v2404_v46 }
 0x887   : > { %v2416_v21 = vsel %vm4562_vm7, %v2407_v9, 0.0 }
 0x888   : > { %v2421_v61 = vmul.f32 %v2419_v20, %v2416_v21 }
 0x889   : > { %v2424_v33 = vpop.permute.xlu1 %2423 }
 0x88a   : > { %v2422_v18 = vadd.f32 %v2421_v61, %v2399_v5 }
 0x88d   : > { %v2427_v8 = vpop.permute.xlu1 %2426 }
 0x88e   : > { %v2430_v47 = vsel %vm2429_vm8, %v2424_v33, %v2427_v8 }
 0x88f   : > { %v2439_v53 = vsel %vm2438_vm6, %v2430_v47, 0.0 }
 0x890   : > { %v2444_v36 = vmul.f32 %v2442_v43, %v2439_v53 }
 0x891   : > { %v2450_v44 = vpop.permute.xlu1 %2449 }
 0x892   : > { %v2453_v35 = vsel %vm2452_vm5, %v2447_v37, %v2450_v44  ;;  %v2445_v19 = vadd.f32 %v2444_v36, %v2422_v18 }
 0x893   : > { %v2462_v15 = vsel %vm2461_vm10, %v2453_v35, 0.0 }
 0x894   : > { %v2467_v16 = vmul.f32 %v2465_v32, %v2462_v15 }
 0x896   : > { %v2468_v63 = vadd.f32 %v2467_v16, %v2445_v19 }
 0x898   : > { %v2470_v56 = vrot.slane %v2468_v63, 1 }
 0x89a   : > { %v2472_v58 = vadd.f32 %v2470_v56, %v2468_v63 }
 0x89c   : > { %v2473_v31 = vsub.f32 0.0, %v2472_v58 }
 0x89e   : > { %v2474_v28 = vmul.f32 1.442695, %v2473_v31 }
 0x8a0   : > { %2876 = vpow2.f32 %v2474_v28 }
 0x8ad   : > { %v2877_v20 = vpop.eup %2876 }
 0x8ae   : > { %v2476_v25 = vadd.f32 1.0, %v2877_v20 }
 0x8b0   : > { %2878 = vrcp.f32 %v2476_v25 }
 0x8bd   : > { %v2879_v54 = vpop.eup %2878 }
 0x8be   : > { %v2481_v41 = vrot.slane %v2879_v54, %v3619_v14 }
 0x8c0   : > { %v2482_v40 = vmul.f32 %v2481_v41, %v4932_v38 }
 0x8c2   : > { %2483 = vst.msk [vmem:[%s330_s12] sm:$0xff] %vm4933_vm9, %v2482_v40 }
 0x8c3 PF: > { %s19_s30 = sadd.s32 1, %s2887_s30  }
 0x8c4   : > { %p16_p4 = scmp.ge.s32.totalorder %s19_s30, 4  }
 0x8c6   :  { %18 = sbr.rel (!%p16_p4) target bundleno = 1 (0x1), region = 86 }

</bundles_post_ra>
